<compile_context>
chip_gen: v7x
topology: tpu7x:2x2x1
jax: 0.10.0
libtpu: 0.0.40
codegen_flags: <defaults>
</compile_context>

<pallas_src>
import jax
import jax.numpy as jnp
from jax.experimental import pallas as pl
from jax.experimental.pallas import tpu as pltpu


# ---------------------------------------------------------------------------
# Pallas kernel: wavefront-scheduled multi-layer LSTM recurrence
# ---------------------------------------------------------------------------
def _lstm_wavefront_kernel(xg_src_ref,    # (S,  B, 4H) layer-0 gate preact (enc)
                           xg_tgt_ref,    # (Td, B, 4H) layer-0 gate preact (dec)
                           w_packed_ref,  # (L+1, K, L*4H) block-diag weight blends
                           b_packed_ref,  # (L+1, 1, L*4H) packed biases (l>=1)
                           htop_ref):     # (Td, B, H) decoder top hidden states
    S, B, G = xg_src_ref.shape
    Td = xg_tgt_ref.shape[0]
    L = w_packed_ref.shape[0] - 1
    H = G // 4
    n_comb = S + Td                       # combined encoder+decoder steps

    zero = jnp.zeros((B, H), jnp.float32)
    h = [zero] * L                        # hidden state, kept in vregs
    c = [zero] * L                        # cell state, kept in vregs
    x_pend = [zero] * L                   # x_pend[l] = next input of layer l>=1
    htop = []                             # decoder top hidden, kept in vregs

    # fully unrolled wavefront: at step w, layer l handles combined step w-l
    for w in range(n_comb + L - 1):
        # lhs = [h0 | x1 h1 | x2 h2 | ...]  (B, K) built from live values
        chunks = [h[0]]
        for l in range(1, L):
            chunks += [x_pend[l], h[l]]
        lhs = chunks[0] if L == 1 else jnp.concatenate(chunks, axis=1)

        # static blend index: layers 0..j-1 are already in decoder mode
        j = min(max(w - S + 1, 0), L)
        g_all = jnp.dot(lhs, w_packed_ref[j],
                        preferred_element_type=jnp.float32) + b_packed_ref[j]

        new_x = list(x_pend)
        for l in range(L):
            k = w - l                      # combined time step of this layer
            if k < 0 or k >= n_comb:       # inactive at wavefront edges
                continue                   # (static skip, unrolled loop)
            gates = g_all[:, l * G:(l + 1) * G]
            if l == 0:                     # add hoisted layer-0 projection
                gates = gates + (xg_src_ref[k] if k < S else xg_tgt_ref[k - S])
            # PyTorch gate order i, f, g, o.  g-gate columns were pre-scaled
            # by 2 in the wrapper so tanh(x) == 2*sigmoid(2x) - 1: a single
            # full-width sigmoid EUP pass per cell.
            sig = jax.nn.sigmoid(gates)
            i_g = sig[:, 0 * H:1 * H]
            f_g = sig[:, 1 * H:2 * H]
            g_g = 2.0 * sig[:, 2 * H:3 * H] - 1.0
            o_g = sig[:, 3 * H:4 * H]
            c_new = f_g * c[l] + i_g * g_g
            h_new = o_g * jnp.tanh(c_new)
            c[l] = c_new
            h[l] = h_new
            if l + 1 < L:                  # feeds layer l+1 next wavefront step
                new_x[l + 1] = h_new
            if l == L - 1 and k >= S:      # decoder top hidden state
                htop.append(h_new)
        x_pend = new_x

    # single epilogue store of all decoder top hidden states
    htop_ref[...] = jnp.stack(htop, axis=0)


# ---------------------------------------------------------------------------
# Wrapper: embedding gather, hoisted layer-0 projections, weight packing,
# lm_head + softmax, output assembly (all batched XLA ops)
# ---------------------------------------------------------------------------
@jax.jit
def lstm_seq2seq_forward(source, target, params):
    """source: (B, S) int32, target: (B, T) int32 -> (B, T, V) float32."""
    B, S = source.shape
    _, T = target.shape
    L = len(params["enc_wih"])
    H = params["enc_whh"][0].shape[1]
    V = params["lm_w"].shape[0]
    G = 4 * H
    Td = T - 1                                  # decoder steps producing output
    K = H + (L - 1) * 2 * H                     # fused lhs width
    g_sl = slice(2 * H, 3 * H)                  # g-gate columns (tanh gate)

    def pack_side(wih, whh, bih, bhh, emb):
        # Hoist the layer-0 input projection (+ both biases) off the serial
        # recurrence; pre-scale g-gate columns by 2 (tanh(x)=2*sigmoid(2x)-1).
        wih0 = wih[0].at[g_sl, :].multiply(2.0)                  # (4H, E)
        b0 = (bih[0] + bhh[0]).at[g_sl].multiply(2.0)
        xg = jnp.einsum("sbe,ge->sbg", emb, wih0) + b0[None, None, :]
        whh0 = whh[0].T.at[:, g_sl].multiply(2.0)                # (H, 4H)
        wfs, bfs = [], []
        for l in range(1, L):
            wf = jnp.concatenate([wih[l].T, whh[l].T], axis=0)   # (2H, 4H)
            wfs.append(wf.at[:, g_sl].multiply(2.0))
            bfs.append((bih[l] + bhh[l]).at[g_sl].multiply(2.0))
        return xg, whh0, wfs, bfs

    emb_src = jnp.transpose(params["enc_emb"][source], (1, 0, 2))          # (S,B,E)
    emb_tgt = jnp.transpose(params["dec_emb"][target[:, :Td]], (1, 0, 2))  # (Td,B,E)

    xg_src, enc_whh0, enc_wfs, enc_bfs = pack_side(
        params["enc_wih"], params["enc_whh"],
        params["enc_bih"], params["enc_bhh"], emb_src)
    xg_tgt, dec_whh0, dec_wfs, dec_bfs = pack_side(
        params["dec_wih"], params["dec_whh"],
        params["dec_bih"], params["dec_bhh"], emb_tgt)

    def block_diag(whh0, wfs, bfs):
        W = jnp.zeros((K, L * G), jnp.float32)
        b = jnp.zeros((L * G,), jnp.float32)
        W = W.at[0:H, 0:G].set(whh0)
        for l in range(1, L):
            r0 = H + (l - 1) * 2 * H
            c0 = l * G
            W = W.at[r0:r0 + 2 * H, c0:c0 + G].set(wfs[l - 1])
            b = b.at[c0:c0 + G].set(bfs[l - 1])
        return W, b

    # L+1 encoder/decoder blends: blend j => layers 0..j-1 use decoder weights
    w_blend, b_blend = [], []
    for j in range(L + 1):
        whh0 = dec_whh0 if j > 0 else enc_whh0
        wfs = [dec_wfs[l - 1] if l < j else enc_wfs[l - 1] for l in range(1, L)]
        bfs = [dec_bfs[l - 1] if l < j else enc_bfs[l - 1] for l in range(1, L)]
        Wj, bj = block_diag(whh0, wfs, bfs)
        w_blend.append(Wj)
        b_blend.append(bj)
    w_packed = jnp.stack(w_blend, axis=0)               # (L+1, K, L*4H)
    b_packed = jnp.stack(b_blend, axis=0)[:, None, :]   # (L+1, 1, L*4H)

    vmem = pl.BlockSpec(memory_space=pltpu.MemorySpace.VMEM)
    htop = pl.pallas_call(
        _lstm_wavefront_kernel,
        out_shape=jax.ShapeDtypeStruct((Td, B, H), jnp.float32),
        in_specs=[vmem] * 4,
        out_specs=vmem,
        # total VMEM residency is tens of KiB: no vmem_limit / grid needed.
    )(xg_src, xg_tgt, w_packed, b_packed)

    # lm_head + softmax as one batched XLA matmul over all decoder steps
    logits = jnp.einsum("tbh,vh->tbv", htop, params["lm_w"]) + params["lm_b"]
    probs = jax.nn.softmax(logits, axis=-1)                      # (Td, B, V)
    out_tm = jnp.concatenate([jnp.zeros((1, B, V), jnp.float32), probs], axis=0)
    return jnp.transpose(out_tm, (1, 0, 2))                      # (B, T, V)


# ---------------------------------------------------------------------------
# Pure-JAX reference (mirrors the PyTorch forward) for a correctness check
# ---------------------------------------------------------------------------
def reference_forward(source, target, params):
    B, T = target.shape
    L = len(params["enc_wih"])
    H = params["enc_whh"][0].shape[1]
    V = params["lm_w"].shape[0]
    emb_src = params["enc_emb"][source]
    emb_tgt = params["dec_emb"][target]

    def cell(x, h, c, wih, whh, bih, bhh):
        g = x @ wih.T + h @ whh.T + bih + bhh
        i_g = jax.nn.sigmoid(g[:, :H])
        f_g = jax.nn.sigmoid(g[:, H:2 * H])
        g_g = jnp.tanh(g[:, 2 * H:3 * H])
        o_g = jax.nn.sigmoid(g[:, 3 * H:])
        c_new = f_g * c + i_g * g_g
        return o_g * jnp.tanh(c_new), c_new

    h = [jnp.zeros((B, H), jnp.float32) for _ in range(L)]
    c = [jnp.zeros((B, H), jnp.float32) for _ in range(L)]
    for t in range(source.shape[1]):
        inp = emb_src[:, t]
        for l in range(L):
            h[l], c[l] = cell(inp, h[l], c[l], params["enc_wih"][l],
                              params["enc_whh"][l], params["enc_bih"][l],
                              params["enc_bhh"][l])
            inp = h[l]
    outs = [jnp.zeros((B, V), jnp.float32)]
    for t in range(1, T):
        inp = emb_tgt[:, t - 1]
        for l in range(L):
            h[l], c[l] = cell(inp, h[l], c[l], params["dec_wih"][l],
                              params["dec_whh"][l], params["dec_bih"][l],
                              params["dec_bhh"][l])
            inp = h[l]
        logits = inp @ params["lm_w"].T + params["lm_b"]
        outs.append(jax.nn.softmax(logits, axis=-1))
    return jnp.stack(outs, axis=1)


# ---------------------------------------------------------------------------
# Deterministic parameter init (shapes follow the module's __init__)
# ---------------------------------------------------------------------------
def init_params(key, input_size, out_size, emb_dim, hidden_size, num_layers):
    keys = iter(jax.random.split(key, 64))

    def rnd(shape, scale=0.1):
        return scale * jax.random.normal(next(keys), shape, jnp.float32)

    params = {
        "enc_emb": rnd((input_size, emb_dim)),
        "dec_emb": rnd((out_size, emb_dim)),
        "lm_w": rnd((out_size, hidden_size)),
        "lm_b": rnd((out_size,)),
    }
    for prefix in ("enc", "dec"):
        wih, whh, bih, bhh = [], [], [], []
        for l in range(num_layers):
            in_dim = emb_dim if l == 0 else hidden_size
            wih.append(rnd((4 * hidden_size, in_dim)))
            whh.append(rnd((4 * hidden_size, hidden_size)))
            bih.append(rnd((4 * hidden_size,)))
            bhh.append(rnd((4 * hidden_size,)))
        params[f"{prefix}_wih"] = wih
        params[f"{prefix}_whh"] = whh
        params[f"{prefix}_bih"] = bih
        params[f"{prefix}_bhh"] = bhh
    return params


if __name__ == "__main__":
    # Config: input_size=20, emb=32, hidden=32, vocab=32, num_layers=2, dropout=0.0
    INPUT_SIZE, OUT_SIZE = 20, 32
    EMB, HID, LAYERS = 32, 32, 2
    B, SRC_LEN, TGT_LEN = 2, 8, 8

    key = jax.random.PRNGKey(0)
    kp, ks, kt = jax.random.split(key, 3)
    params = init_params(kp, INPUT_SIZE, OUT_SIZE, EMB, HID, LAYERS)

    source = jax.random.randint(ks, (B, SRC_LEN), 0, INPUT_SIZE, dtype=jnp.int32)
    target = jax.random.randint(kt, (B, TGT_LEN), 0, OUT_SIZE, dtype=jnp.int32)

    out = lstm_seq2seq_forward(source, target, params)
    out = jax.block_until_ready(out)

    ref = reference_forward(source, target, params)
    assert out.shape == (B, TGT_LEN, OUT_SIZE)
    assert jnp.allclose(out, ref, atol=2e-5, rtol=2e-5), "mismatch vs reference"

    print("KERNEL_OK")
</pallas_src>

<mosaic_0001>
module attributes {stable_mosaic.version = 11 : i64} {
  func.func @_lstm_wavefront_kernel(%arg0: memref<8x2x128xf32, #tpu.memory_space<vmem>>, %arg1: memref<7x2x128xf32, #tpu.memory_space<vmem>>, %arg2: memref<3x96x256xf32, #tpu.memory_space<vmem>>, %arg3: memref<3x1x256xf32, #tpu.memory_space<vmem>>, %arg4: memref<7x2x32xf32, #tpu.memory_space<vmem>>) attributes {dimension_semantics = [], scalar_prefetch = 0 : i64, scratch_operands = 0 : i64, tpu.core_type = #tpu.core_type<tc>} {
    %cst = arith.constant 0.000000e+00 : f32
    %0 = vector.broadcast %cst : f32 to vector<2x32xf32>
    %1 = tpu.concatenate %0, %0, %0 in 1 : vector<2x32xf32>, vector<2x32xf32>, vector<2x32xf32> -> vector<2x96xf32>
    %c0 = arith.constant 0 : index
    %c0_0 = arith.constant 0 : index
    %c0_1 = arith.constant 0 : index
    %2 = vector.load %arg2[%c0, %c0_0, %c0_1] : memref<3x96x256xf32, #tpu.memory_space<vmem>>, vector<1x96x256xf32>
    %3 = vector.shape_cast %2 : vector<1x96x256xf32> to vector<96x256xf32>
    %cst_2 = arith.constant dense<0.000000e+00> : vector<2x256xf32>
    %4 = tpu.matmul %1, %3, %cst_2 {dimension_numbers = #tpu.dot_dimension_numbers<[1], [0], [0], [1], [0, 0, 1, 1], [], []>} : vector<2x96xf32>, vector<96x256xf32>, vector<2x256xf32> -> vector<2x256xf32>
    %c0_3 = arith.constant 0 : index
    %c0_4 = arith.constant 0 : index
    %c0_5 = arith.constant 0 : index
    %5 = vector.load %arg3[%c0_3, %c0_4, %c0_5] : memref<3x1x256xf32, #tpu.memory_space<vmem>>, vector<1x1x256xf32>
    %6 = vector.shape_cast %5 : vector<1x1x256xf32> to vector<1x256xf32>
    %7 = vector.broadcast %6 : vector<1x256xf32> to vector<2x256xf32>
    %8 = arith.addf %4, %7 : vector<2x256xf32>
    %9 = vector.extract_strided_slice %8 {offsets = [0, 0], sizes = [2, 128], strides = [1, 1]} : vector<2x256xf32> to vector<2x128xf32>
    %c0_6 = arith.constant 0 : index
    %c0_7 = arith.constant 0 : index
    %c0_8 = arith.constant 0 : index
    %10 = vector.load %arg0[%c0_6, %c0_7, %c0_8] : memref<8x2x128xf32, #tpu.memory_space<vmem>>, vector<1x2x128xf32>
    %11 = vector.shape_cast %10 : vector<1x2x128xf32> to vector<2x128xf32>
    %12 = arith.addf %9, %11 : vector<2x128xf32>
    %13 = arith.negf %12 : vector<2x128xf32>
    %14 = math.exp %13 : vector<2x128xf32>
    %cst_9 = arith.constant 1.000000e+00 : f32
    %15 = vector.broadcast %cst_9 : f32 to vector<2x128xf32>
    %16 = arith.addf %15, %14 : vector<2x128xf32>
    %17 = arith.divf %15, %16 : vector<2x128xf32>
    %18 = vector.extract_strided_slice %17 {offsets = [0, 0], sizes = [2, 32], strides = [1, 1]} : vector<2x128xf32> to vector<2x32xf32>
    %19 = vector.extract_strided_slice %17 {offsets = [0, 32], sizes = [2, 32], strides = [1, 1]} : vector<2x128xf32> to vector<2x32xf32>
    %20 = vector.extract_strided_slice %17 {offsets = [0, 64], sizes = [2, 32], strides = [1, 1]} : vector<2x128xf32> to vector<2x32xf32>
    %cst_10 = arith.constant 2.000000e+00 : f32
    %21 = vector.broadcast %cst_10 : f32 to vector<2x32xf32>
    %22 = arith.mulf %21, %20 : vector<2x32xf32>
    %cst_11 = arith.constant 1.000000e+00 : f32
    %23 = vector.broadcast %cst_11 : f32 to vector<2x32xf32>
    %24 = arith.subf %22, %23 : vector<2x32xf32>
    %25 = vector.extract_strided_slice %17 {offsets = [0, 96], sizes = [2, 32], strides = [1, 1]} : vector<2x128xf32> to vector<2x32xf32>
    %26 = arith.mulf %19, %0 : vector<2x32xf32>
    %27 = arith.mulf %18, %24 : vector<2x32xf32>
    %28 = arith.addf %26, %27 : vector<2x32xf32>
    %29 = math.tanh %28 : vector<2x32xf32>
    %30 = arith.mulf %25, %29 : vector<2x32xf32>
    %31 = tpu.concatenate %30, %30, %0 in 1 : vector<2x32xf32>, vector<2x32xf32>, vector<2x32xf32> -> vector<2x96xf32>
    %c0_12 = arith.constant 0 : index
    %c0_13 = arith.constant 0 : index
    %c0_14 = arith.constant 0 : index
    %32 = vector.load %arg2[%c0_12, %c0_13, %c0_14] : memref<3x96x256xf32, #tpu.memory_space<vmem>>, vector<1x96x256xf32>
    %33 = vector.shape_cast %32 : vector<1x96x256xf32> to vector<96x256xf32>
    %cst_15 = arith.constant dense<0.000000e+00> : vector<2x256xf32>
    %34 = tpu.matmul %31, %33, %cst_15 {dimension_numbers = #tpu.dot_dimension_numbers<[1], [0], [0], [1], [0, 0, 1, 1], [], []>} : vector<2x96xf32>, vector<96x256xf32>, vector<2x256xf32> -> vector<2x256xf32>
    %c0_16 = arith.constant 0 : index
    %c0_17 = arith.constant 0 : index
    %c0_18 = arith.constant 0 : index
    %35 = vector.load %arg3[%c0_16, %c0_17, %c0_18] : memref<3x1x256xf32, #tpu.memory_space<vmem>>, vector<1x1x256xf32>
    %36 = vector.shape_cast %35 : vector<1x1x256xf32> to vector<1x256xf32>
    %37 = vector.broadcast %36 : vector<1x256xf32> to vector<2x256xf32>
    %38 = arith.addf %34, %37 : vector<2x256xf32>
    %39 = vector.extract_strided_slice %38 {offsets = [0, 0], sizes = [2, 128], strides = [1, 1]} : vector<2x256xf32> to vector<2x128xf32>
    %c1 = arith.constant 1 : index
    %c0_19 = arith.constant 0 : index
    %c0_20 = arith.constant 0 : index
    %40 = vector.load %arg0[%c1, %c0_19, %c0_20] : memref<8x2x128xf32, #tpu.memory_space<vmem>>, vector<1x2x128xf32>
    %41 = vector.shape_cast %40 : vector<1x2x128xf32> to vector<2x128xf32>
    %42 = arith.addf %39, %41 : vector<2x128xf32>
    %43 = arith.negf %42 : vector<2x128xf32>
    %44 = math.exp %43 : vector<2x128xf32>
    %cst_21 = arith.constant 1.000000e+00 : f32
    %45 = vector.broadcast %cst_21 : f32 to vector<2x128xf32>
    %46 = arith.addf %45, %44 : vector<2x128xf32>
    %47 = arith.divf %45, %46 : vector<2x128xf32>
    %48 = vector.extract_strided_slice %47 {offsets = [0, 0], sizes = [2, 32], strides = [1, 1]} : vector<2x128xf32> to vector<2x32xf32>
    %49 = vector.extract_strided_slice %47 {offsets = [0, 32], sizes = [2, 32], strides = [1, 1]} : vector<2x128xf32> to vector<2x32xf32>
    %50 = vector.extract_strided_slice %47 {offsets = [0, 64], sizes = [2, 32], strides = [1, 1]} : vector<2x128xf32> to vector<2x32xf32>
    %cst_22 = arith.constant 2.000000e+00 : f32
    %51 = vector.broadcast %cst_22 : f32 to vector<2x32xf32>
    %52 = arith.mulf %51, %50 : vector<2x32xf32>
    %cst_23 = arith.constant 1.000000e+00 : f32
    %53 = vector.broadcast %cst_23 : f32 to vector<2x32xf32>
    %54 = arith.subf %52, %53 : vector<2x32xf32>
    %55 = vector.extract_strided_slice %47 {offsets = [0, 96], sizes = [2, 32], strides = [1, 1]} : vector<2x128xf32> to vector<2x32xf32>
    %56 = arith.mulf %49, %28 : vector<2x32xf32>
    %57 = arith.mulf %48, %54 : vector<2x32xf32>
    %58 = arith.addf %56, %57 : vector<2x32xf32>
    %59 = math.tanh %58 : vector<2x32xf32>
    %60 = arith.mulf %55, %59 : vector<2x32xf32>
    %61 = vector.extract_strided_slice %38 {offsets = [0, 128], sizes = [2, 128], strides = [1, 1]} : vector<2x256xf32> to vector<2x128xf32>
    %62 = arith.negf %61 : vector<2x128xf32>
    %63 = math.exp %62 : vector<2x128xf32>
    %cst_24 = arith.constant 1.000000e+00 : f32
    %64 = vector.broadcast %cst_24 : f32 to vector<2x128xf32>
    %65 = arith.addf %64, %63 : vector<2x128xf32>
    %66 = arith.divf %64, %65 : vector<2x128xf32>
    %67 = vector.extract_strided_slice %66 {offsets = [0, 0], sizes = [2, 32], strides = [1, 1]} : vector<2x128xf32> to vector<2x32xf32>
    %68 = vector.extract_strided_slice %66 {offsets = [0, 32], sizes = [2, 32], strides = [1, 1]} : vector<2x128xf32> to vector<2x32xf32>
    %69 = vector.extract_strided_slice %66 {offsets = [0, 64], sizes = [2, 32], strides = [1, 1]} : vector<2x128xf32> to vector<2x32xf32>
    %cst_25 = arith.constant 2.000000e+00 : f32
    %70 = vector.broadcast %cst_25 : f32 to vector<2x32xf32>
    %71 = arith.mulf %70, %69 : vector<2x32xf32>
    %cst_26 = arith.constant 1.000000e+00 : f32
    %72 = vector.broadcast %cst_26 : f32 to vector<2x32xf32>
    %73 = arith.subf %71, %72 : vector<2x32xf32>
    %74 = vector.extract_strided_slice %66 {offsets = [0, 96], sizes = [2, 32], strides = [1, 1]} : vector<2x128xf32> to vector<2x32xf32>
    %75 = arith.mulf %68, %0 : vector<2x32xf32>
    %76 = arith.mulf %67, %73 : vector<2x32xf32>
    %77 = arith.addf %75, %76 : vector<2x32xf32>
    %78 = math.tanh %77 : vector<2x32xf32>
    %79 = arith.mulf %74, %78 : vector<2x32xf32>
    %80 = tpu.concatenate %60, %60, %79 in 1 : vector<2x32xf32>, vector<2x32xf32>, vector<2x32xf32> -> vector<2x96xf32>
    %c0_27 = arith.constant 0 : index
    %c0_28 = arith.constant 0 : index
    %c0_29 = arith.constant 0 : index
    %81 = vector.load %arg2[%c0_27, %c0_28, %c0_29] : memref<3x96x256xf32, #tpu.memory_space<vmem>>, vector<1x96x256xf32>
    %82 = vector.shape_cast %81 : vector<1x96x256xf32> to vector<96x256xf32>
    %cst_30 = arith.constant dense<0.000000e+00> : vector<2x256xf32>
    %83 = tpu.matmul %80, %82, %cst_30 {dimension_numbers = #tpu.dot_dimension_numbers<[1], [0], [0], [1], [0, 0, 1, 1], [], []>} : vector<2x96xf32>, vector<96x256xf32>, vector<2x256xf32> -> vector<2x256xf32>
    %c0_31 = arith.constant 0 : index
    %c0_32 = arith.constant 0 : index
    %c0_33 = arith.constant 0 : index
    %84 = vector.load %arg3[%c0_31, %c0_32, %c0_33] : memref<3x1x256xf32, #tpu.memory_space<vmem>>, vector<1x1x256xf32>
    %85 = vector.shape_cast %84 : vector<1x1x256xf32> to vector<1x256xf32>
    %86 = vector.broadcast %85 : vector<1x256xf32> to vector<2x256xf32>
    %87 = arith.addf %83, %86 : vector<2x256xf32>
    %88 = vector.extract_strided_slice %87 {offsets = [0, 0], sizes = [2, 128], strides = [1, 1]} : vector<2x256xf32> to vector<2x128xf32>
    %c2 = arith.constant 2 : index
    %c0_34 = arith.constant 0 : index
    %c0_35 = arith.constant 0 : index
    %89 = vector.load %arg0[%c2, %c0_34, %c0_35] : memref<8x2x128xf32, #tpu.memory_space<vmem>>, vector<1x2x128xf32>
    %90 = vector.shape_cast %89 : vector<1x2x128xf32> to vector<2x128xf32>
    %91 = arith.addf %88, %90 : vector<2x128xf32>
    %92 = arith.negf %91 : vector<2x128xf32>
    %93 = math.exp %92 : vector<2x128xf32>
    %cst_36 = arith.constant 1.000000e+00 : f32
    %94 = vector.broadcast %cst_36 : f32 to vector<2x128xf32>
    %95 = arith.addf %94, %93 : vector<2x128xf32>
    %96 = arith.divf %94, %95 : vector<2x128xf32>
    %97 = vector.extract_strided_slice %96 {offsets = [0, 0], sizes = [2, 32], strides = [1, 1]} : vector<2x128xf32> to vector<2x32xf32>
    %98 = vector.extract_strided_slice %96 {offsets = [0, 32], sizes = [2, 32], strides = [1, 1]} : vector<2x128xf32> to vector<2x32xf32>
    %99 = vector.extract_strided_slice %96 {offsets = [0, 64], sizes = [2, 32], strides = [1, 1]} : vector<2x128xf32> to vector<2x32xf32>
    %cst_37 = arith.constant 2.000000e+00 : f32
    %100 = vector.broadcast %cst_37 : f32 to vector<2x32xf32>
    %101 = arith.mulf %100, %99 : vector<2x32xf32>
    %cst_38 = arith.constant 1.000000e+00 : f32
    %102 = vector.broadcast %cst_38 : f32 to vector<2x32xf32>
    %103 = arith.subf %101, %102 : vector<2x32xf32>
    %104 = vector.extract_strided_slice %96 {offsets = [0, 96], sizes = [2, 32], strides = [1, 1]} : vector<2x128xf32> to vector<2x32xf32>
    %105 = arith.mulf %98, %58 : vector<2x32xf32>
    %106 = arith.mulf %97, %103 : vector<2x32xf32>
    %107 = arith.addf %105, %106 : vector<2x32xf32>
    %108 = math.tanh %107 : vector<2x32xf32>
    %109 = arith.mulf %104, %108 : vector<2x32xf32>
    %110 = vector.extract_strided_slice %87 {offsets = [0, 128], sizes = [2, 128], strides = [1, 1]} : vector<2x256xf32> to vector<2x128xf32>
    %111 = arith.negf %110 : vector<2x128xf32>
    %112 = math.exp %111 : vector<2x128xf32>
    %cst_39 = arith.constant 1.000000e+00 : f32
    %113 = vector.broadcast %cst_39 : f32 to vector<2x128xf32>
    %114 = arith.addf %113, %112 : vector<2x128xf32>
    %115 = arith.divf %113, %114 : vector<2x128xf32>
    %116 = vector.extract_strided_slice %115 {offsets = [0, 0], sizes = [2, 32], strides = [1, 1]} : vector<2x128xf32> to vector<2x32xf32>
    %117 = vector.extract_strided_slice %115 {offsets = [0, 32], sizes = [2, 32], strides = [1, 1]} : vector<2x128xf32> to vector<2x32xf32>
    %118 = vector.extract_strided_slice %115 {offsets = [0, 64], sizes = [2, 32], strides = [1, 1]} : vector<2x128xf32> to vector<2x32xf32>
    %cst_40 = arith.constant 2.000000e+00 : f32
    %119 = vector.broadcast %cst_40 : f32 to vector<2x32xf32>
    %120 = arith.mulf %119, %118 : vector<2x32xf32>
    %cst_41 = arith.constant 1.000000e+00 : f32
    %121 = vector.broadcast %cst_41 : f32 to vector<2x32xf32>
    %122 = arith.subf %120, %121 : vector<2x32xf32>
    %123 = vector.extract_strided_slice %115 {offsets = [0, 96], sizes = [2, 32], strides = [1, 1]} : vector<2x128xf32> to vector<2x32xf32>
    %124 = arith.mulf %117, %77 : vector<2x32xf32>
    %125 = arith.mulf %116, %122 : vector<2x32xf32>
    %126 = arith.addf %124, %125 : vector<2x32xf32>
    %127 = math.tanh %126 : vector<2x32xf32>
    %128 = arith.mulf %123, %127 : vector<2x32xf32>
    %129 = tpu.concatenate %109, %109, %128 in 1 : vector<2x32xf32>, vector<2x32xf32>, vector<2x32xf32> -> vector<2x96xf32>
    %c0_42 = arith.constant 0 : index
    %c0_43 = arith.constant 0 : index
    %c0_44 = arith.constant 0 : index
    %130 = vector.load %arg2[%c0_42, %c0_43, %c0_44] : memref<3x96x256xf32, #tpu.memory_space<vmem>>, vector<1x96x256xf32>
    %131 = vector.shape_cast %130 : vector<1x96x256xf32> to vector<96x256xf32>
    %cst_45 = arith.constant dense<0.000000e+00> : vector<2x256xf32>
    %132 = tpu.matmul %129, %131, %cst_45 {dimension_numbers = #tpu.dot_dimension_numbers<[1], [0], [0], [1], [0, 0, 1, 1], [], []>} : vector<2x96xf32>, vector<96x256xf32>, vector<2x256xf32> -> vector<2x256xf32>
    %c0_46 = arith.constant 0 : index
    %c0_47 = arith.constant 0 : index
    %c0_48 = arith.constant 0 : index
    %133 = vector.load %arg3[%c0_46, %c0_47, %c0_48] : memref<3x1x256xf32, #tpu.memory_space<vmem>>, vector<1x1x256xf32>
    %134 = vector.shape_cast %133 : vector<1x1x256xf32> to vector<1x256xf32>
    %135 = vector.broadcast %134 : vector<1x256xf32> to vector<2x256xf32>
    %136 = arith.addf %132, %135 : vector<2x256xf32>
    %137 = vector.extract_strided_slice %136 {offsets = [0, 0], sizes = [2, 128], strides = [1, 1]} : vector<2x256xf32> to vector<2x128xf32>
    %c3 = arith.constant 3 : index
    %c0_49 = arith.constant 0 : index
    %c0_50 = arith.constant 0 : index
    %138 = vector.load %arg0[%c3, %c0_49, %c0_50] : memref<8x2x128xf32, #tpu.memory_space<vmem>>, vector<1x2x128xf32>
    %139 = vector.shape_cast %138 : vector<1x2x128xf32> to vector<2x128xf32>
    %140 = arith.addf %137, %139 : vector<2x128xf32>
    %141 = arith.negf %140 : vector<2x128xf32>
    %142 = math.exp %141 : vector<2x128xf32>
    %cst_51 = arith.constant 1.000000e+00 : f32
    %143 = vector.broadcast %cst_51 : f32 to vector<2x128xf32>
    %144 = arith.addf %143, %142 : vector<2x128xf32>
    %145 = arith.divf %143, %144 : vector<2x128xf32>
    %146 = vector.extract_strided_slice %145 {offsets = [0, 0], sizes = [2, 32], strides = [1, 1]} : vector<2x128xf32> to vector<2x32xf32>
    %147 = vector.extract_strided_slice %145 {offsets = [0, 32], sizes = [2, 32], strides = [1, 1]} : vector<2x128xf32> to vector<2x32xf32>
    %148 = vector.extract_strided_slice %145 {offsets = [0, 64], sizes = [2, 32], strides = [1, 1]} : vector<2x128xf32> to vector<2x32xf32>
    %cst_52 = arith.constant 2.000000e+00 : f32
    %149 = vector.broadcast %cst_52 : f32 to vector<2x32xf32>
    %150 = arith.mulf %149, %148 : vector<2x32xf32>
    %cst_53 = arith.constant 1.000000e+00 : f32
    %151 = vector.broadcast %cst_53 : f32 to vector<2x32xf32>
    %152 = arith.subf %150, %151 : vector<2x32xf32>
    %153 = vector.extract_strided_slice %145 {offsets = [0, 96], sizes = [2, 32], strides = [1, 1]} : vector<2x128xf32> to vector<2x32xf32>
    %154 = arith.mulf %147, %107 : vector<2x32xf32>
    %155 = arith.mulf %146, %152 : vector<2x32xf32>
    %156 = arith.addf %154, %155 : vector<2x32xf32>
    %157 = math.tanh %156 : vector<2x32xf32>
    %158 = arith.mulf %153, %157 : vector<2x32xf32>
    %159 = vector.extract_strided_slice %136 {offsets = [0, 128], sizes = [2, 128], strides = [1, 1]} : vector<2x256xf32> to vector<2x128xf32>
    %160 = arith.negf %159 : vector<2x128xf32>
    %161 = math.exp %160 : vector<2x128xf32>
    %cst_54 = arith.constant 1.000000e+00 : f32
    %162 = vector.broadcast %cst_54 : f32 to vector<2x128xf32>
    %163 = arith.addf %162, %161 : vector<2x128xf32>
    %164 = arith.divf %162, %163 : vector<2x128xf32>
    %165 = vector.extract_strided_slice %164 {offsets = [0, 0], sizes = [2, 32], strides = [1, 1]} : vector<2x128xf32> to vector<2x32xf32>
    %166 = vector.extract_strided_slice %164 {offsets = [0, 32], sizes = [2, 32], strides = [1, 1]} : vector<2x128xf32> to vector<2x32xf32>
    %167 = vector.extract_strided_slice %164 {offsets = [0, 64], sizes = [2, 32], strides = [1, 1]} : vector<2x128xf32> to vector<2x32xf32>
    %cst_55 = arith.constant 2.000000e+00 : f32
    %168 = vector.broadcast %cst_55 : f32 to vector<2x32xf32>
    %169 = arith.mulf %168, %167 : vector<2x32xf32>
    %cst_56 = arith.constant 1.000000e+00 : f32
    %170 = vector.broadcast %cst_56 : f32 to vector<2x32xf32>
    %171 = arith.subf %169, %170 : vector<2x32xf32>
    %172 = vector.extract_strided_slice %164 {offsets = [0, 96], sizes = [2, 32], strides = [1, 1]} : vector<2x128xf32> to vector<2x32xf32>
    %173 = arith.mulf %166, %126 : vector<2x32xf32>
    %174 = arith.mulf %165, %171 : vector<2x32xf32>
    %175 = arith.addf %173, %174 : vector<2x32xf32>
    %176 = math.tanh %175 : vector<2x32xf32>
    %177 = arith.mulf %172, %176 : vector<2x32xf32>
    %178 = tpu.concatenate %158, %158, %177 in 1 : vector<2x32xf32>, vector<2x32xf32>, vector<2x32xf32> -> vector<2x96xf32>
    %c0_57 = arith.constant 0 : index
    %c0_58 = arith.constant 0 : index
    %c0_59 = arith.constant 0 : index
    %179 = vector.load %arg2[%c0_57, %c0_58, %c0_59] : memref<3x96x256xf32, #tpu.memory_space<vmem>>, vector<1x96x256xf32>
    %180 = vector.shape_cast %179 : vector<1x96x256xf32> to vector<96x256xf32>
    %cst_60 = arith.constant dense<0.000000e+00> : vector<2x256xf32>
    %181 = tpu.matmul %178, %180, %cst_60 {dimension_numbers = #tpu.dot_dimension_numbers<[1], [0], [0], [1], [0, 0, 1, 1], [], []>} : vector<2x96xf32>, vector<96x256xf32>, vector<2x256xf32> -> vector<2x256xf32>
    %c0_61 = arith.constant 0 : index
    %c0_62 = arith.constant 0 : index
    %c0_63 = arith.constant 0 : index
    %182 = vector.load %arg3[%c0_61, %c0_62, %c0_63] : memref<3x1x256xf32, #tpu.memory_space<vmem>>, vector<1x1x256xf32>
    %183 = vector.shape_cast %182 : vector<1x1x256xf32> to vector<1x256xf32>
    %184 = vector.broadcast %183 : vector<1x256xf32> to vector<2x256xf32>
    %185 = arith.addf %181, %184 : vector<2x256xf32>
    %186 = vector.extract_strided_slice %185 {offsets = [0, 0], sizes = [2, 128], strides = [1, 1]} : vector<2x256xf32> to vector<2x128xf32>
    %c4 = arith.constant 4 : index
    %c0_64 = arith.constant 0 : index
    %c0_65 = arith.constant 0 : index
    %187 = vector.load %arg0[%c4, %c0_64, %c0_65] : memref<8x2x128xf32, #tpu.memory_space<vmem>>, vector<1x2x128xf32>
    %188 = vector.shape_cast %187 : vector<1x2x128xf32> to vector<2x128xf32>
    %189 = arith.addf %186, %188 : vector<2x128xf32>
    %190 = arith.negf %189 : vector<2x128xf32>
    %191 = math.exp %190 : vector<2x128xf32>
    %cst_66 = arith.constant 1.000000e+00 : f32
    %192 = vector.broadcast %cst_66 : f32 to vector<2x128xf32>
    %193 = arith.addf %192, %191 : vector<2x128xf32>
    %194 = arith.divf %192, %193 : vector<2x128xf32>
    %195 = vector.extract_strided_slice %194 {offsets = [0, 0], sizes = [2, 32], strides = [1, 1]} : vector<2x128xf32> to vector<2x32xf32>
    %196 = vector.extract_strided_slice %194 {offsets = [0, 32], sizes = [2, 32], strides = [1, 1]} : vector<2x128xf32> to vector<2x32xf32>
    %197 = vector.extract_strided_slice %194 {offsets = [0, 64], sizes = [2, 32], strides = [1, 1]} : vector<2x128xf32> to vector<2x32xf32>
    %cst_67 = arith.constant 2.000000e+00 : f32
    %198 = vector.broadcast %cst_67 : f32 to vector<2x32xf32>
    %199 = arith.mulf %198, %197 : vector<2x32xf32>
    %cst_68 = arith.constant 1.000000e+00 : f32
    %200 = vector.broadcast %cst_68 : f32 to vector<2x32xf32>
    %201 = arith.subf %199, %200 : vector<2x32xf32>
    %202 = vector.extract_strided_slice %194 {offsets = [0, 96], sizes = [2, 32], strides = [1, 1]} : vector<2x128xf32> to vector<2x32xf32>
    %203 = arith.mulf %196, %156 : vector<2x32xf32>
    %204 = arith.mulf %195, %201 : vector<2x32xf32>
    %205 = arith.addf %203, %204 : vector<2x32xf32>
    %206 = math.tanh %205 : vector<2x32xf32>
    %207 = arith.mulf %202, %206 : vector<2x32xf32>
    %208 = vector.extract_strided_slice %185 {offsets = [0, 128], sizes = [2, 128], strides = [1, 1]} : vector<2x256xf32> to vector<2x128xf32>
    %209 = arith.negf %208 : vector<2x128xf32>
    %210 = math.exp %209 : vector<2x128xf32>
    %cst_69 = arith.constant 1.000000e+00 : f32
    %211 = vector.broadcast %cst_69 : f32 to vector<2x128xf32>
    %212 = arith.addf %211, %210 : vector<2x128xf32>
    %213 = arith.divf %211, %212 : vector<2x128xf32>
    %214 = vector.extract_strided_slice %213 {offsets = [0, 0], sizes = [2, 32], strides = [1, 1]} : vector<2x128xf32> to vector<2x32xf32>
    %215 = vector.extract_strided_slice %213 {offsets = [0, 32], sizes = [2, 32], strides = [1, 1]} : vector<2x128xf32> to vector<2x32xf32>
    %216 = vector.extract_strided_slice %213 {offsets = [0, 64], sizes = [2, 32], strides = [1, 1]} : vector<2x128xf32> to vector<2x32xf32>
    %cst_70 = arith.constant 2.000000e+00 : f32
    %217 = vector.broadcast %cst_70 : f32 to vector<2x32xf32>
    %218 = arith.mulf %217, %216 : vector<2x32xf32>
    %cst_71 = arith.constant 1.000000e+00 : f32
    %219 = vector.broadcast %cst_71 : f32 to vector<2x32xf32>
    %220 = arith.subf %218, %219 : vector<2x32xf32>
    %221 = vector.extract_strided_slice %213 {offsets = [0, 96], sizes = [2, 32], strides = [1, 1]} : vector<2x128xf32> to vector<2x32xf32>
    %222 = arith.mulf %215, %175 : vector<2x32xf32>
    %223 = arith.mulf %214, %220 : vector<2x32xf32>
    %224 = arith.addf %222, %223 : vector<2x32xf32>
    %225 = math.tanh %224 : vector<2x32xf32>
    %226 = arith.mulf %221, %225 : vector<2x32xf32>
    %227 = tpu.concatenate %207, %207, %226 in 1 : vector<2x32xf32>, vector<2x32xf32>, vector<2x32xf32> -> vector<2x96xf32>
    %c0_72 = arith.constant 0 : index
    %c0_73 = arith.constant 0 : index
    %c0_74 = arith.constant 0 : index
    %228 = vector.load %arg2[%c0_72, %c0_73, %c0_74] : memref<3x96x256xf32, #tpu.memory_space<vmem>>, vector<1x96x256xf32>
    %229 = vector.shape_cast %228 : vector<1x96x256xf32> to vector<96x256xf32>
    %cst_75 = arith.constant dense<0.000000e+00> : vector<2x256xf32>
    %230 = tpu.matmul %227, %229, %cst_75 {dimension_numbers = #tpu.dot_dimension_numbers<[1], [0], [0], [1], [0, 0, 1, 1], [], []>} : vector<2x96xf32>, vector<96x256xf32>, vector<2x256xf32> -> vector<2x256xf32>
    %c0_76 = arith.constant 0 : index
    %c0_77 = arith.constant 0 : index
    %c0_78 = arith.constant 0 : index
    %231 = vector.load %arg3[%c0_76, %c0_77, %c0_78] : memref<3x1x256xf32, #tpu.memory_space<vmem>>, vector<1x1x256xf32>
    %232 = vector.shape_cast %231 : vector<1x1x256xf32> to vector<1x256xf32>
    %233 = vector.broadcast %232 : vector<1x256xf32> to vector<2x256xf32>
    %234 = arith.addf %230, %233 : vector<2x256xf32>
    %235 = vector.extract_strided_slice %234 {offsets = [0, 0], sizes = [2, 128], strides = [1, 1]} : vector<2x256xf32> to vector<2x128xf32>
    %c5 = arith.constant 5 : index
    %c0_79 = arith.constant 0 : index
    %c0_80 = arith.constant 0 : index
    %236 = vector.load %arg0[%c5, %c0_79, %c0_80] : memref<8x2x128xf32, #tpu.memory_space<vmem>>, vector<1x2x128xf32>
    %237 = vector.shape_cast %236 : vector<1x2x128xf32> to vector<2x128xf32>
    %238 = arith.addf %235, %237 : vector<2x128xf32>
    %239 = arith.negf %238 : vector<2x128xf32>
    %240 = math.exp %239 : vector<2x128xf32>
    %cst_81 = arith.constant 1.000000e+00 : f32
    %241 = vector.broadcast %cst_81 : f32 to vector<2x128xf32>
    %242 = arith.addf %241, %240 : vector<2x128xf32>
    %243 = arith.divf %241, %242 : vector<2x128xf32>
    %244 = vector.extract_strided_slice %243 {offsets = [0, 0], sizes = [2, 32], strides = [1, 1]} : vector<2x128xf32> to vector<2x32xf32>
    %245 = vector.extract_strided_slice %243 {offsets = [0, 32], sizes = [2, 32], strides = [1, 1]} : vector<2x128xf32> to vector<2x32xf32>
    %246 = vector.extract_strided_slice %243 {offsets = [0, 64], sizes = [2, 32], strides = [1, 1]} : vector<2x128xf32> to vector<2x32xf32>
    %cst_82 = arith.constant 2.000000e+00 : f32
    %247 = vector.broadcast %cst_82 : f32 to vector<2x32xf32>
    %248 = arith.mulf %247, %246 : vector<2x32xf32>
    %cst_83 = arith.constant 1.000000e+00 : f32
    %249 = vector.broadcast %cst_83 : f32 to vector<2x32xf32>
    %250 = arith.subf %248, %249 : vector<2x32xf32>
    %251 = vector.extract_strided_slice %243 {offsets = [0, 96], sizes = [2, 32], strides = [1, 1]} : vector<2x128xf32> to vector<2x32xf32>
    %252 = arith.mulf %245, %205 : vector<2x32xf32>
    %253 = arith.mulf %244, %250 : vector<2x32xf32>
    %254 = arith.addf %252, %253 : vector<2x32xf32>
    %255 = math.tanh %254 : vector<2x32xf32>
    %256 = arith.mulf %251, %255 : vector<2x32xf32>
    %257 = vector.extract_strided_slice %234 {offsets = [0, 128], sizes = [2, 128], strides = [1, 1]} : vector<2x256xf32> to vector<2x128xf32>
    %258 = arith.negf %257 : vector<2x128xf32>
    %259 = math.exp %258 : vector<2x128xf32>
    %cst_84 = arith.constant 1.000000e+00 : f32
    %260 = vector.broadcast %cst_84 : f32 to vector<2x128xf32>
    %261 = arith.addf %260, %259 : vector<2x128xf32>
    %262 = arith.divf %260, %261 : vector<2x128xf32>
    %263 = vector.extract_strided_slice %262 {offsets = [0, 0], sizes = [2, 32], strides = [1, 1]} : vector<2x128xf32> to vector<2x32xf32>
    %264 = vector.extract_strided_slice %262 {offsets = [0, 32], sizes = [2, 32], strides = [1, 1]} : vector<2x128xf32> to vector<2x32xf32>
    %265 = vector.extract_strided_slice %262 {offsets = [0, 64], sizes = [2, 32], strides = [1, 1]} : vector<2x128xf32> to vector<2x32xf32>
    %cst_85 = arith.constant 2.000000e+00 : f32
    %266 = vector.broadcast %cst_85 : f32 to vector<2x32xf32>
    %267 = arith.mulf %266, %265 : vector<2x32xf32>
    %cst_86 = arith.constant 1.000000e+00 : f32
    %268 = vector.broadcast %cst_86 : f32 to vector<2x32xf32>
    %269 = arith.subf %267, %268 : vector<2x32xf32>
    %270 = vector.extract_strided_slice %262 {offsets = [0, 96], sizes = [2, 32], strides = [1, 1]} : vector<2x128xf32> to vector<2x32xf32>
    %271 = arith.mulf %264, %224 : vector<2x32xf32>
    %272 = arith.mulf %263, %269 : vector<2x32xf32>
    %273 = arith.addf %271, %272 : vector<2x32xf32>
    %274 = math.tanh %273 : vector<2x32xf32>
    %275 = arith.mulf %270, %274 : vector<2x32xf32>
    %276 = tpu.concatenate %256, %256, %275 in 1 : vector<2x32xf32>, vector<2x32xf32>, vector<2x32xf32> -> vector<2x96xf32>
    %c0_87 = arith.constant 0 : index
    %c0_88 = arith.constant 0 : index
    %c0_89 = arith.constant 0 : index
    %277 = vector.load %arg2[%c0_87, %c0_88, %c0_89] : memref<3x96x256xf32, #tpu.memory_space<vmem>>, vector<1x96x256xf32>
    %278 = vector.shape_cast %277 : vector<1x96x256xf32> to vector<96x256xf32>
    %cst_90 = arith.constant dense<0.000000e+00> : vector<2x256xf32>
    %279 = tpu.matmul %276, %278, %cst_90 {dimension_numbers = #tpu.dot_dimension_numbers<[1], [0], [0], [1], [0, 0, 1, 1], [], []>} : vector<2x96xf32>, vector<96x256xf32>, vector<2x256xf32> -> vector<2x256xf32>
    %c0_91 = arith.constant 0 : index
    %c0_92 = arith.constant 0 : index
    %c0_93 = arith.constant 0 : index
    %280 = vector.load %arg3[%c0_91, %c0_92, %c0_93] : memref<3x1x256xf32, #tpu.memory_space<vmem>>, vector<1x1x256xf32>
    %281 = vector.shape_cast %280 : vector<1x1x256xf32> to vector<1x256xf32>
    %282 = vector.broadcast %281 : vector<1x256xf32> to vector<2x256xf32>
    %283 = arith.addf %279, %282 : vector<2x256xf32>
    %284 = vector.extract_strided_slice %283 {offsets = [0, 0], sizes = [2, 128], strides = [1, 1]} : vector<2x256xf32> to vector<2x128xf32>
    %c6 = arith.constant 6 : index
    %c0_94 = arith.constant 0 : index
    %c0_95 = arith.constant 0 : index
    %285 = vector.load %arg0[%c6, %c0_94, %c0_95] : memref<8x2x128xf32, #tpu.memory_space<vmem>>, vector<1x2x128xf32>
    %286 = vector.shape_cast %285 : vector<1x2x128xf32> to vector<2x128xf32>
    %287 = arith.addf %284, %286 : vector<2x128xf32>
    %288 = arith.negf %287 : vector<2x128xf32>
    %289 = math.exp %288 : vector<2x128xf32>
    %cst_96 = arith.constant 1.000000e+00 : f32
    %290 = vector.broadcast %cst_96 : f32 to vector<2x128xf32>
    %291 = arith.addf %290, %289 : vector<2x128xf32>
    %292 = arith.divf %290, %291 : vector<2x128xf32>
    %293 = vector.extract_strided_slice %292 {offsets = [0, 0], sizes = [2, 32], strides = [1, 1]} : vector<2x128xf32> to vector<2x32xf32>
    %294 = vector.extract_strided_slice %292 {offsets = [0, 32], sizes = [2, 32], strides = [1, 1]} : vector<2x128xf32> to vector<2x32xf32>
    %295 = vector.extract_strided_slice %292 {offsets = [0, 64], sizes = [2, 32], strides = [1, 1]} : vector<2x128xf32> to vector<2x32xf32>
    %cst_97 = arith.constant 2.000000e+00 : f32
    %296 = vector.broadcast %cst_97 : f32 to vector<2x32xf32>
    %297 = arith.mulf %296, %295 : vector<2x32xf32>
    %cst_98 = arith.constant 1.000000e+00 : f32
    %298 = vector.broadcast %cst_98 : f32 to vector<2x32xf32>
    %299 = arith.subf %297, %298 : vector<2x32xf32>
    %300 = vector.extract_strided_slice %292 {offsets = [0, 96], sizes = [2, 32], strides = [1, 1]} : vector<2x128xf32> to vector<2x32xf32>
    %301 = arith.mulf %294, %254 : vector<2x32xf32>
    %302 = arith.mulf %293, %299 : vector<2x32xf32>
    %303 = arith.addf %301, %302 : vector<2x32xf32>
    %304 = math.tanh %303 : vector<2x32xf32>
    %305 = arith.mulf %300, %304 : vector<2x32xf32>
    %306 = vector.extract_strided_slice %283 {offsets = [0, 128], sizes = [2, 128], strides = [1, 1]} : vector<2x256xf32> to vector<2x128xf32>
    %307 = arith.negf %306 : vector<2x128xf32>
    %308 = math.exp %307 : vector<2x128xf32>
    %cst_99 = arith.constant 1.000000e+00 : f32
    %309 = vector.broadcast %cst_99 : f32 to vector<2x128xf32>
    %310 = arith.addf %309, %308 : vector<2x128xf32>
    %311 = arith.divf %309, %310 : vector<2x128xf32>
    %312 = vector.extract_strided_slice %311 {offsets = [0, 0], sizes = [2, 32], strides = [1, 1]} : vector<2x128xf32> to vector<2x32xf32>
    %313 = vector.extract_strided_slice %311 {offsets = [0, 32], sizes = [2, 32], strides = [1, 1]} : vector<2x128xf32> to vector<2x32xf32>
    %314 = vector.extract_strided_slice %311 {offsets = [0, 64], sizes = [2, 32], strides = [1, 1]} : vector<2x128xf32> to vector<2x32xf32>
    %cst_100 = arith.constant 2.000000e+00 : f32
    %315 = vector.broadcast %cst_100 : f32 to vector<2x32xf32>
    %316 = arith.mulf %315, %314 : vector<2x32xf32>
    %cst_101 = arith.constant 1.000000e+00 : f32
    %317 = vector.broadcast %cst_101 : f32 to vector<2x32xf32>
    %318 = arith.subf %316, %317 : vector<2x32xf32>
    %319 = vector.extract_strided_slice %311 {offsets = [0, 96], sizes = [2, 32], strides = [1, 1]} : vector<2x128xf32> to vector<2x32xf32>
    %320 = arith.mulf %313, %273 : vector<2x32xf32>
    %321 = arith.mulf %312, %318 : vector<2x32xf32>
    %322 = arith.addf %320, %321 : vector<2x32xf32>
    %323 = math.tanh %322 : vector<2x32xf32>
    %324 = arith.mulf %319, %323 : vector<2x32xf32>
    %325 = tpu.concatenate %305, %305, %324 in 1 : vector<2x32xf32>, vector<2x32xf32>, vector<2x32xf32> -> vector<2x96xf32>
    %c0_102 = arith.constant 0 : index
    %c0_103 = arith.constant 0 : index
    %c0_104 = arith.constant 0 : index
    %326 = vector.load %arg2[%c0_102, %c0_103, %c0_104] : memref<3x96x256xf32, #tpu.memory_space<vmem>>, vector<1x96x256xf32>
    %327 = vector.shape_cast %326 : vector<1x96x256xf32> to vector<96x256xf32>
    %cst_105 = arith.constant dense<0.000000e+00> : vector<2x256xf32>
    %328 = tpu.matmul %325, %327, %cst_105 {dimension_numbers = #tpu.dot_dimension_numbers<[1], [0], [0], [1], [0, 0, 1, 1], [], []>} : vector<2x96xf32>, vector<96x256xf32>, vector<2x256xf32> -> vector<2x256xf32>
    %c0_106 = arith.constant 0 : index
    %c0_107 = arith.constant 0 : index
    %c0_108 = arith.constant 0 : index
    %329 = vector.load %arg3[%c0_106, %c0_107, %c0_108] : memref<3x1x256xf32, #tpu.memory_space<vmem>>, vector<1x1x256xf32>
    %330 = vector.shape_cast %329 : vector<1x1x256xf32> to vector<1x256xf32>
    %331 = vector.broadcast %330 : vector<1x256xf32> to vector<2x256xf32>
    %332 = arith.addf %328, %331 : vector<2x256xf32>
    %333 = vector.extract_strided_slice %332 {offsets = [0, 0], sizes = [2, 128], strides = [1, 1]} : vector<2x256xf32> to vector<2x128xf32>
    %c7 = arith.constant 7 : index
    %c0_109 = arith.constant 0 : index
    %c0_110 = arith.constant 0 : index
    %334 = vector.load %arg0[%c7, %c0_109, %c0_110] : memref<8x2x128xf32, #tpu.memory_space<vmem>>, vector<1x2x128xf32>
    %335 = vector.shape_cast %334 : vector<1x2x128xf32> to vector<2x128xf32>
    %336 = arith.addf %333, %335 : vector<2x128xf32>
    %337 = arith.negf %336 : vector<2x128xf32>
    %338 = math.exp %337 : vector<2x128xf32>
    %cst_111 = arith.constant 1.000000e+00 : f32
    %339 = vector.broadcast %cst_111 : f32 to vector<2x128xf32>
    %340 = arith.addf %339, %338 : vector<2x128xf32>
    %341 = arith.divf %339, %340 : vector<2x128xf32>
    %342 = vector.extract_strided_slice %341 {offsets = [0, 0], sizes = [2, 32], strides = [1, 1]} : vector<2x128xf32> to vector<2x32xf32>
    %343 = vector.extract_strided_slice %341 {offsets = [0, 32], sizes = [2, 32], strides = [1, 1]} : vector<2x128xf32> to vector<2x32xf32>
    %344 = vector.extract_strided_slice %341 {offsets = [0, 64], sizes = [2, 32], strides = [1, 1]} : vector<2x128xf32> to vector<2x32xf32>
    %cst_112 = arith.constant 2.000000e+00 : f32
    %345 = vector.broadcast %cst_112 : f32 to vector<2x32xf32>
    %346 = arith.mulf %345, %344 : vector<2x32xf32>
    %cst_113 = arith.constant 1.000000e+00 : f32
    %347 = vector.broadcast %cst_113 : f32 to vector<2x32xf32>
    %348 = arith.subf %346, %347 : vector<2x32xf32>
    %349 = vector.extract_strided_slice %341 {offsets = [0, 96], sizes = [2, 32], strides = [1, 1]} : vector<2x128xf32> to vector<2x32xf32>
    %350 = arith.mulf %343, %303 : vector<2x32xf32>
    %351 = arith.mulf %342, %348 : vector<2x32xf32>
    %352 = arith.addf %350, %351 : vector<2x32xf32>
    %353 = math.tanh %352 : vector<2x32xf32>
    %354 = arith.mulf %349, %353 : vector<2x32xf32>
    %355 = vector.extract_strided_slice %332 {offsets = [0, 128], sizes = [2, 128], strides = [1, 1]} : vector<2x256xf32> to vector<2x128xf32>
    %356 = arith.negf %355 : vector<2x128xf32>
    %357 = math.exp %356 : vector<2x128xf32>
    %cst_114 = arith.constant 1.000000e+00 : f32
    %358 = vector.broadcast %cst_114 : f32 to vector<2x128xf32>
    %359 = arith.addf %358, %357 : vector<2x128xf32>
    %360 = arith.divf %358, %359 : vector<2x128xf32>
    %361 = vector.extract_strided_slice %360 {offsets = [0, 0], sizes = [2, 32], strides = [1, 1]} : vector<2x128xf32> to vector<2x32xf32>
    %362 = vector.extract_strided_slice %360 {offsets = [0, 32], sizes = [2, 32], strides = [1, 1]} : vector<2x128xf32> to vector<2x32xf32>
    %363 = vector.extract_strided_slice %360 {offsets = [0, 64], sizes = [2, 32], strides = [1, 1]} : vector<2x128xf32> to vector<2x32xf32>
    %cst_115 = arith.constant 2.000000e+00 : f32
    %364 = vector.broadcast %cst_115 : f32 to vector<2x32xf32>
    %365 = arith.mulf %364, %363 : vector<2x32xf32>
    %cst_116 = arith.constant 1.000000e+00 : f32
    %366 = vector.broadcast %cst_116 : f32 to vector<2x32xf32>
    %367 = arith.subf %365, %366 : vector<2x32xf32>
    %368 = vector.extract_strided_slice %360 {offsets = [0, 96], sizes = [2, 32], strides = [1, 1]} : vector<2x128xf32> to vector<2x32xf32>
    %369 = arith.mulf %362, %322 : vector<2x32xf32>
    %370 = arith.mulf %361, %367 : vector<2x32xf32>
    %371 = arith.addf %369, %370 : vector<2x32xf32>
    %372 = math.tanh %371 : vector<2x32xf32>
    %373 = arith.mulf %368, %372 : vector<2x32xf32>
    %374 = tpu.concatenate %354, %354, %373 in 1 : vector<2x32xf32>, vector<2x32xf32>, vector<2x32xf32> -> vector<2x96xf32>
    %c1_117 = arith.constant 1 : index
    %c0_118 = arith.constant 0 : index
    %c0_119 = arith.constant 0 : index
    %375 = vector.load %arg2[%c1_117, %c0_118, %c0_119] : memref<3x96x256xf32, #tpu.memory_space<vmem>>, vector<1x96x256xf32>
    %376 = vector.shape_cast %375 : vector<1x96x256xf32> to vector<96x256xf32>
    %cst_120 = arith.constant dense<0.000000e+00> : vector<2x256xf32>
    %377 = tpu.matmul %374, %376, %cst_120 {dimension_numbers = #tpu.dot_dimension_numbers<[1], [0], [0], [1], [0, 0, 1, 1], [], []>} : vector<2x96xf32>, vector<96x256xf32>, vector<2x256xf32> -> vector<2x256xf32>
    %c1_121 = arith.constant 1 : index
    %c0_122 = arith.constant 0 : index
    %c0_123 = arith.constant 0 : index
    %378 = vector.load %arg3[%c1_121, %c0_122, %c0_123] : memref<3x1x256xf32, #tpu.memory_space<vmem>>, vector<1x1x256xf32>
    %379 = vector.shape_cast %378 : vector<1x1x256xf32> to vector<1x256xf32>
    %380 = vector.broadcast %379 : vector<1x256xf32> to vector<2x256xf32>
    %381 = arith.addf %377, %380 : vector<2x256xf32>
    %382 = vector.extract_strided_slice %381 {offsets = [0, 0], sizes = [2, 128], strides = [1, 1]} : vector<2x256xf32> to vector<2x128xf32>
    %c0_124 = arith.constant 0 : index
    %c0_125 = arith.constant 0 : index
    %c0_126 = arith.constant 0 : index
    %383 = vector.load %arg1[%c0_124, %c0_125, %c0_126] : memref<7x2x128xf32, #tpu.memory_space<vmem>>, vector<1x2x128xf32>
    %384 = vector.shape_cast %383 : vector<1x2x128xf32> to vector<2x128xf32>
    %385 = arith.addf %382, %384 : vector<2x128xf32>
    %386 = arith.negf %385 : vector<2x128xf32>
    %387 = math.exp %386 : vector<2x128xf32>
    %cst_127 = arith.constant 1.000000e+00 : f32
    %388 = vector.broadcast %cst_127 : f32 to vector<2x128xf32>
    %389 = arith.addf %388, %387 : vector<2x128xf32>
    %390 = arith.divf %388, %389 : vector<2x128xf32>
    %391 = vector.extract_strided_slice %390 {offsets = [0, 0], sizes = [2, 32], strides = [1, 1]} : vector<2x128xf32> to vector<2x32xf32>
    %392 = vector.extract_strided_slice %390 {offsets = [0, 32], sizes = [2, 32], strides = [1, 1]} : vector<2x128xf32> to vector<2x32xf32>
    %393 = vector.extract_strided_slice %390 {offsets = [0, 64], sizes = [2, 32], strides = [1, 1]} : vector<2x128xf32> to vector<2x32xf32>
    %cst_128 = arith.constant 2.000000e+00 : f32
    %394 = vector.broadcast %cst_128 : f32 to vector<2x32xf32>
    %395 = arith.mulf %394, %393 : vector<2x32xf32>
    %cst_129 = arith.constant 1.000000e+00 : f32
    %396 = vector.broadcast %cst_129 : f32 to vector<2x32xf32>
    %397 = arith.subf %395, %396 : vector<2x32xf32>
    %398 = vector.extract_strided_slice %390 {offsets = [0, 96], sizes = [2, 32], strides = [1, 1]} : vector<2x128xf32> to vector<2x32xf32>
    %399 = arith.mulf %392, %352 : vector<2x32xf32>
    %400 = arith.mulf %391, %397 : vector<2x32xf32>
    %401 = arith.addf %399, %400 : vector<2x32xf32>
    %402 = math.tanh %401 : vector<2x32xf32>
    %403 = arith.mulf %398, %402 : vector<2x32xf32>
    %404 = vector.extract_strided_slice %381 {offsets = [0, 128], sizes = [2, 128], strides = [1, 1]} : vector<2x256xf32> to vector<2x128xf32>
    %405 = arith.negf %404 : vector<2x128xf32>
    %406 = math.exp %405 : vector<2x128xf32>
    %cst_130 = arith.constant 1.000000e+00 : f32
    %407 = vector.broadcast %cst_130 : f32 to vector<2x128xf32>
    %408 = arith.addf %407, %406 : vector<2x128xf32>
    %409 = arith.divf %407, %408 : vector<2x128xf32>
    %410 = vector.extract_strided_slice %409 {offsets = [0, 0], sizes = [2, 32], strides = [1, 1]} : vector<2x128xf32> to vector<2x32xf32>
    %411 = vector.extract_strided_slice %409 {offsets = [0, 32], sizes = [2, 32], strides = [1, 1]} : vector<2x128xf32> to vector<2x32xf32>
    %412 = vector.extract_strided_slice %409 {offsets = [0, 64], sizes = [2, 32], strides = [1, 1]} : vector<2x128xf32> to vector<2x32xf32>
    %cst_131 = arith.constant 2.000000e+00 : f32
    %413 = vector.broadcast %cst_131 : f32 to vector<2x32xf32>
    %414 = arith.mulf %413, %412 : vector<2x32xf32>
    %cst_132 = arith.constant 1.000000e+00 : f32
    %415 = vector.broadcast %cst_132 : f32 to vector<2x32xf32>
    %416 = arith.subf %414, %415 : vector<2x32xf32>
    %417 = vector.extract_strided_slice %409 {offsets = [0, 96], sizes = [2, 32], strides = [1, 1]} : vector<2x128xf32> to vector<2x32xf32>
    %418 = arith.mulf %411, %371 : vector<2x32xf32>
    %419 = arith.mulf %410, %416 : vector<2x32xf32>
    %420 = arith.addf %418, %419 : vector<2x32xf32>
    %421 = math.tanh %420 : vector<2x32xf32>
    %422 = arith.mulf %417, %421 : vector<2x32xf32>
    %423 = tpu.concatenate %403, %403, %422 in 1 : vector<2x32xf32>, vector<2x32xf32>, vector<2x32xf32> -> vector<2x96xf32>
    %c2_133 = arith.constant 2 : index
    %c0_134 = arith.constant 0 : index
    %c0_135 = arith.constant 0 : index
    %424 = vector.load %arg2[%c2_133, %c0_134, %c0_135] : memref<3x96x256xf32, #tpu.memory_space<vmem>>, vector<1x96x256xf32>
    %425 = vector.shape_cast %424 : vector<1x96x256xf32> to vector<96x256xf32>
    %cst_136 = arith.constant dense<0.000000e+00> : vector<2x256xf32>
    %426 = tpu.matmul %423, %425, %cst_136 {dimension_numbers = #tpu.dot_dimension_numbers<[1], [0], [0], [1], [0, 0, 1, 1], [], []>} : vector<2x96xf32>, vector<96x256xf32>, vector<2x256xf32> -> vector<2x256xf32>
    %c2_137 = arith.constant 2 : index
    %c0_138 = arith.constant 0 : index
    %c0_139 = arith.constant 0 : index
    %427 = vector.load %arg3[%c2_137, %c0_138, %c0_139] : memref<3x1x256xf32, #tpu.memory_space<vmem>>, vector<1x1x256xf32>
    %428 = vector.shape_cast %427 : vector<1x1x256xf32> to vector<1x256xf32>
    %429 = vector.broadcast %428 : vector<1x256xf32> to vector<2x256xf32>
    %430 = arith.addf %426, %429 : vector<2x256xf32>
    %431 = vector.extract_strided_slice %430 {offsets = [0, 0], sizes = [2, 128], strides = [1, 1]} : vector<2x256xf32> to vector<2x128xf32>
    %c1_140 = arith.constant 1 : index
    %c0_141 = arith.constant 0 : index
    %c0_142 = arith.constant 0 : index
    %432 = vector.load %arg1[%c1_140, %c0_141, %c0_142] : memref<7x2x128xf32, #tpu.memory_space<vmem>>, vector<1x2x128xf32>
    %433 = vector.shape_cast %432 : vector<1x2x128xf32> to vector<2x128xf32>
    %434 = arith.addf %431, %433 : vector<2x128xf32>
    %435 = arith.negf %434 : vector<2x128xf32>
    %436 = math.exp %435 : vector<2x128xf32>
    %cst_143 = arith.constant 1.000000e+00 : f32
    %437 = vector.broadcast %cst_143 : f32 to vector<2x128xf32>
    %438 = arith.addf %437, %436 : vector<2x128xf32>
    %439 = arith.divf %437, %438 : vector<2x128xf32>
    %440 = vector.extract_strided_slice %439 {offsets = [0, 0], sizes = [2, 32], strides = [1, 1]} : vector<2x128xf32> to vector<2x32xf32>
    %441 = vector.extract_strided_slice %439 {offsets = [0, 32], sizes = [2, 32], strides = [1, 1]} : vector<2x128xf32> to vector<2x32xf32>
    %442 = vector.extract_strided_slice %439 {offsets = [0, 64], sizes = [2, 32], strides = [1, 1]} : vector<2x128xf32> to vector<2x32xf32>
    %cst_144 = arith.constant 2.000000e+00 : f32
    %443 = vector.broadcast %cst_144 : f32 to vector<2x32xf32>
    %444 = arith.mulf %443, %442 : vector<2x32xf32>
    %cst_145 = arith.constant 1.000000e+00 : f32
    %445 = vector.broadcast %cst_145 : f32 to vector<2x32xf32>
    %446 = arith.subf %444, %445 : vector<2x32xf32>
    %447 = vector.extract_strided_slice %439 {offsets = [0, 96], sizes = [2, 32], strides = [1, 1]} : vector<2x128xf32> to vector<2x32xf32>
    %448 = arith.mulf %441, %401 : vector<2x32xf32>
    %449 = arith.mulf %440, %446 : vector<2x32xf32>
    %450 = arith.addf %448, %449 : vector<2x32xf32>
    %451 = math.tanh %450 : vector<2x32xf32>
    %452 = arith.mulf %447, %451 : vector<2x32xf32>
    %453 = vector.extract_strided_slice %430 {offsets = [0, 128], sizes = [2, 128], strides = [1, 1]} : vector<2x256xf32> to vector<2x128xf32>
    %454 = arith.negf %453 : vector<2x128xf32>
    %455 = math.exp %454 : vector<2x128xf32>
    %cst_146 = arith.constant 1.000000e+00 : f32
    %456 = vector.broadcast %cst_146 : f32 to vector<2x128xf32>
    %457 = arith.addf %456, %455 : vector<2x128xf32>
    %458 = arith.divf %456, %457 : vector<2x128xf32>
    %459 = vector.extract_strided_slice %458 {offsets = [0, 0], sizes = [2, 32], strides = [1, 1]} : vector<2x128xf32> to vector<2x32xf32>
    %460 = vector.extract_strided_slice %458 {offsets = [0, 32], sizes = [2, 32], strides = [1, 1]} : vector<2x128xf32> to vector<2x32xf32>
    %461 = vector.extract_strided_slice %458 {offsets = [0, 64], sizes = [2, 32], strides = [1, 1]} : vector<2x128xf32> to vector<2x32xf32>
    %cst_147 = arith.constant 2.000000e+00 : f32
    %462 = vector.broadcast %cst_147 : f32 to vector<2x32xf32>
    %463 = arith.mulf %462, %461 : vector<2x32xf32>
    %cst_148 = arith.constant 1.000000e+00 : f32
    %464 = vector.broadcast %cst_148 : f32 to vector<2x32xf32>
    %465 = arith.subf %463, %464 : vector<2x32xf32>
    %466 = vector.extract_strided_slice %458 {offsets = [0, 96], sizes = [2, 32], strides = [1, 1]} : vector<2x128xf32> to vector<2x32xf32>
    %467 = arith.mulf %460, %420 : vector<2x32xf32>
    %468 = arith.mulf %459, %465 : vector<2x32xf32>
    %469 = arith.addf %467, %468 : vector<2x32xf32>
    %470 = math.tanh %469 : vector<2x32xf32>
    %471 = arith.mulf %466, %470 : vector<2x32xf32>
    %472 = tpu.concatenate %452, %452, %471 in 1 : vector<2x32xf32>, vector<2x32xf32>, vector<2x32xf32> -> vector<2x96xf32>
    %c2_149 = arith.constant 2 : index
    %c0_150 = arith.constant 0 : index
    %c0_151 = arith.constant 0 : index
    %473 = vector.load %arg2[%c2_149, %c0_150, %c0_151] : memref<3x96x256xf32, #tpu.memory_space<vmem>>, vector<1x96x256xf32>
    %474 = vector.shape_cast %473 : vector<1x96x256xf32> to vector<96x256xf32>
    %cst_152 = arith.constant dense<0.000000e+00> : vector<2x256xf32>
    %475 = tpu.matmul %472, %474, %cst_152 {dimension_numbers = #tpu.dot_dimension_numbers<[1], [0], [0], [1], [0, 0, 1, 1], [], []>} : vector<2x96xf32>, vector<96x256xf32>, vector<2x256xf32> -> vector<2x256xf32>
    %c2_153 = arith.constant 2 : index
    %c0_154 = arith.constant 0 : index
    %c0_155 = arith.constant 0 : index
    %476 = vector.load %arg3[%c2_153, %c0_154, %c0_155] : memref<3x1x256xf32, #tpu.memory_space<vmem>>, vector<1x1x256xf32>
    %477 = vector.shape_cast %476 : vector<1x1x256xf32> to vector<1x256xf32>
    %478 = vector.broadcast %477 : vector<1x256xf32> to vector<2x256xf32>
    %479 = arith.addf %475, %478 : vector<2x256xf32>
    %480 = vector.extract_strided_slice %479 {offsets = [0, 0], sizes = [2, 128], strides = [1, 1]} : vector<2x256xf32> to vector<2x128xf32>
    %c2_156 = arith.constant 2 : index
    %c0_157 = arith.constant 0 : index
    %c0_158 = arith.constant 0 : index
    %481 = vector.load %arg1[%c2_156, %c0_157, %c0_158] : memref<7x2x128xf32, #tpu.memory_space<vmem>>, vector<1x2x128xf32>
    %482 = vector.shape_cast %481 : vector<1x2x128xf32> to vector<2x128xf32>
    %483 = arith.addf %480, %482 : vector<2x128xf32>
    %484 = arith.negf %483 : vector<2x128xf32>
    %485 = math.exp %484 : vector<2x128xf32>
    %cst_159 = arith.constant 1.000000e+00 : f32
    %486 = vector.broadcast %cst_159 : f32 to vector<2x128xf32>
    %487 = arith.addf %486, %485 : vector<2x128xf32>
    %488 = arith.divf %486, %487 : vector<2x128xf32>
    %489 = vector.extract_strided_slice %488 {offsets = [0, 0], sizes = [2, 32], strides = [1, 1]} : vector<2x128xf32> to vector<2x32xf32>
    %490 = vector.extract_strided_slice %488 {offsets = [0, 32], sizes = [2, 32], strides = [1, 1]} : vector<2x128xf32> to vector<2x32xf32>
    %491 = vector.extract_strided_slice %488 {offsets = [0, 64], sizes = [2, 32], strides = [1, 1]} : vector<2x128xf32> to vector<2x32xf32>
    %cst_160 = arith.constant 2.000000e+00 : f32
    %492 = vector.broadcast %cst_160 : f32 to vector<2x32xf32>
    %493 = arith.mulf %492, %491 : vector<2x32xf32>
    %cst_161 = arith.constant 1.000000e+00 : f32
    %494 = vector.broadcast %cst_161 : f32 to vector<2x32xf32>
    %495 = arith.subf %493, %494 : vector<2x32xf32>
    %496 = vector.extract_strided_slice %488 {offsets = [0, 96], sizes = [2, 32], strides = [1, 1]} : vector<2x128xf32> to vector<2x32xf32>
    %497 = arith.mulf %490, %450 : vector<2x32xf32>
    %498 = arith.mulf %489, %495 : vector<2x32xf32>
    %499 = arith.addf %497, %498 : vector<2x32xf32>
    %500 = math.tanh %499 : vector<2x32xf32>
    %501 = arith.mulf %496, %500 : vector<2x32xf32>
    %502 = vector.extract_strided_slice %479 {offsets = [0, 128], sizes = [2, 128], strides = [1, 1]} : vector<2x256xf32> to vector<2x128xf32>
    %503 = arith.negf %502 : vector<2x128xf32>
    %504 = math.exp %503 : vector<2x128xf32>
    %cst_162 = arith.constant 1.000000e+00 : f32
    %505 = vector.broadcast %cst_162 : f32 to vector<2x128xf32>
    %506 = arith.addf %505, %504 : vector<2x128xf32>
    %507 = arith.divf %505, %506 : vector<2x128xf32>
    %508 = vector.extract_strided_slice %507 {offsets = [0, 0], sizes = [2, 32], strides = [1, 1]} : vector<2x128xf32> to vector<2x32xf32>
    %509 = vector.extract_strided_slice %507 {offsets = [0, 32], sizes = [2, 32], strides = [1, 1]} : vector<2x128xf32> to vector<2x32xf32>
    %510 = vector.extract_strided_slice %507 {offsets = [0, 64], sizes = [2, 32], strides = [1, 1]} : vector<2x128xf32> to vector<2x32xf32>
    %cst_163 = arith.constant 2.000000e+00 : f32
    %511 = vector.broadcast %cst_163 : f32 to vector<2x32xf32>
    %512 = arith.mulf %511, %510 : vector<2x32xf32>
    %cst_164 = arith.constant 1.000000e+00 : f32
    %513 = vector.broadcast %cst_164 : f32 to vector<2x32xf32>
    %514 = arith.subf %512, %513 : vector<2x32xf32>
    %515 = vector.extract_strided_slice %507 {offsets = [0, 96], sizes = [2, 32], strides = [1, 1]} : vector<2x128xf32> to vector<2x32xf32>
    %516 = arith.mulf %509, %469 : vector<2x32xf32>
    %517 = arith.mulf %508, %514 : vector<2x32xf32>
    %518 = arith.addf %516, %517 : vector<2x32xf32>
    %519 = math.tanh %518 : vector<2x32xf32>
    %520 = arith.mulf %515, %519 : vector<2x32xf32>
    %521 = tpu.concatenate %501, %501, %520 in 1 : vector<2x32xf32>, vector<2x32xf32>, vector<2x32xf32> -> vector<2x96xf32>
    %c2_165 = arith.constant 2 : index
    %c0_166 = arith.constant 0 : index
    %c0_167 = arith.constant 0 : index
    %522 = vector.load %arg2[%c2_165, %c0_166, %c0_167] : memref<3x96x256xf32, #tpu.memory_space<vmem>>, vector<1x96x256xf32>
    %523 = vector.shape_cast %522 : vector<1x96x256xf32> to vector<96x256xf32>
    %cst_168 = arith.constant dense<0.000000e+00> : vector<2x256xf32>
    %524 = tpu.matmul %521, %523, %cst_168 {dimension_numbers = #tpu.dot_dimension_numbers<[1], [0], [0], [1], [0, 0, 1, 1], [], []>} : vector<2x96xf32>, vector<96x256xf32>, vector<2x256xf32> -> vector<2x256xf32>
    %c2_169 = arith.constant 2 : index
    %c0_170 = arith.constant 0 : index
    %c0_171 = arith.constant 0 : index
    %525 = vector.load %arg3[%c2_169, %c0_170, %c0_171] : memref<3x1x256xf32, #tpu.memory_space<vmem>>, vector<1x1x256xf32>
    %526 = vector.shape_cast %525 : vector<1x1x256xf32> to vector<1x256xf32>
    %527 = vector.broadcast %526 : vector<1x256xf32> to vector<2x256xf32>
    %528 = arith.addf %524, %527 : vector<2x256xf32>
    %529 = vector.extract_strided_slice %528 {offsets = [0, 0], sizes = [2, 128], strides = [1, 1]} : vector<2x256xf32> to vector<2x128xf32>
    %c3_172 = arith.constant 3 : index
    %c0_173 = arith.constant 0 : index
    %c0_174 = arith.constant 0 : index
    %530 = vector.load %arg1[%c3_172, %c0_173, %c0_174] : memref<7x2x128xf32, #tpu.memory_space<vmem>>, vector<1x2x128xf32>
    %531 = vector.shape_cast %530 : vector<1x2x128xf32> to vector<2x128xf32>
    %532 = arith.addf %529, %531 : vector<2x128xf32>
    %533 = arith.negf %532 : vector<2x128xf32>
    %534 = math.exp %533 : vector<2x128xf32>
    %cst_175 = arith.constant 1.000000e+00 : f32
    %535 = vector.broadcast %cst_175 : f32 to vector<2x128xf32>
    %536 = arith.addf %535, %534 : vector<2x128xf32>
    %537 = arith.divf %535, %536 : vector<2x128xf32>
    %538 = vector.extract_strided_slice %537 {offsets = [0, 0], sizes = [2, 32], strides = [1, 1]} : vector<2x128xf32> to vector<2x32xf32>
    %539 = vector.extract_strided_slice %537 {offsets = [0, 32], sizes = [2, 32], strides = [1, 1]} : vector<2x128xf32> to vector<2x32xf32>
    %540 = vector.extract_strided_slice %537 {offsets = [0, 64], sizes = [2, 32], strides = [1, 1]} : vector<2x128xf32> to vector<2x32xf32>
    %cst_176 = arith.constant 2.000000e+00 : f32
    %541 = vector.broadcast %cst_176 : f32 to vector<2x32xf32>
    %542 = arith.mulf %541, %540 : vector<2x32xf32>
    %cst_177 = arith.constant 1.000000e+00 : f32
    %543 = vector.broadcast %cst_177 : f32 to vector<2x32xf32>
    %544 = arith.subf %542, %543 : vector<2x32xf32>
    %545 = vector.extract_strided_slice %537 {offsets = [0, 96], sizes = [2, 32], strides = [1, 1]} : vector<2x128xf32> to vector<2x32xf32>
    %546 = arith.mulf %539, %499 : vector<2x32xf32>
    %547 = arith.mulf %538, %544 : vector<2x32xf32>
    %548 = arith.addf %546, %547 : vector<2x32xf32>
    %549 = math.tanh %548 : vector<2x32xf32>
    %550 = arith.mulf %545, %549 : vector<2x32xf32>
    %551 = vector.extract_strided_slice %528 {offsets = [0, 128], sizes = [2, 128], strides = [1, 1]} : vector<2x256xf32> to vector<2x128xf32>
    %552 = arith.negf %551 : vector<2x128xf32>
    %553 = math.exp %552 : vector<2x128xf32>
    %cst_178 = arith.constant 1.000000e+00 : f32
    %554 = vector.broadcast %cst_178 : f32 to vector<2x128xf32>
    %555 = arith.addf %554, %553 : vector<2x128xf32>
    %556 = arith.divf %554, %555 : vector<2x128xf32>
    %557 = vector.extract_strided_slice %556 {offsets = [0, 0], sizes = [2, 32], strides = [1, 1]} : vector<2x128xf32> to vector<2x32xf32>
    %558 = vector.extract_strided_slice %556 {offsets = [0, 32], sizes = [2, 32], strides = [1, 1]} : vector<2x128xf32> to vector<2x32xf32>
    %559 = vector.extract_strided_slice %556 {offsets = [0, 64], sizes = [2, 32], strides = [1, 1]} : vector<2x128xf32> to vector<2x32xf32>
    %cst_179 = arith.constant 2.000000e+00 : f32
    %560 = vector.broadcast %cst_179 : f32 to vector<2x32xf32>
    %561 = arith.mulf %560, %559 : vector<2x32xf32>
    %cst_180 = arith.constant 1.000000e+00 : f32
    %562 = vector.broadcast %cst_180 : f32 to vector<2x32xf32>
    %563 = arith.subf %561, %562 : vector<2x32xf32>
    %564 = vector.extract_strided_slice %556 {offsets = [0, 96], sizes = [2, 32], strides = [1, 1]} : vector<2x128xf32> to vector<2x32xf32>
    %565 = arith.mulf %558, %518 : vector<2x32xf32>
    %566 = arith.mulf %557, %563 : vector<2x32xf32>
    %567 = arith.addf %565, %566 : vector<2x32xf32>
    %568 = math.tanh %567 : vector<2x32xf32>
    %569 = arith.mulf %564, %568 : vector<2x32xf32>
    %570 = tpu.concatenate %550, %550, %569 in 1 : vector<2x32xf32>, vector<2x32xf32>, vector<2x32xf32> -> vector<2x96xf32>
    %c2_181 = arith.constant 2 : index
    %c0_182 = arith.constant 0 : index
    %c0_183 = arith.constant 0 : index
    %571 = vector.load %arg2[%c2_181, %c0_182, %c0_183] : memref<3x96x256xf32, #tpu.memory_space<vmem>>, vector<1x96x256xf32>
    %572 = vector.shape_cast %571 : vector<1x96x256xf32> to vector<96x256xf32>
    %cst_184 = arith.constant dense<0.000000e+00> : vector<2x256xf32>
    %573 = tpu.matmul %570, %572, %cst_184 {dimension_numbers = #tpu.dot_dimension_numbers<[1], [0], [0], [1], [0, 0, 1, 1], [], []>} : vector<2x96xf32>, vector<96x256xf32>, vector<2x256xf32> -> vector<2x256xf32>
    %c2_185 = arith.constant 2 : index
    %c0_186 = arith.constant 0 : index
    %c0_187 = arith.constant 0 : index
    %574 = vector.load %arg3[%c2_185, %c0_186, %c0_187] : memref<3x1x256xf32, #tpu.memory_space<vmem>>, vector<1x1x256xf32>
    %575 = vector.shape_cast %574 : vector<1x1x256xf32> to vector<1x256xf32>
    %576 = vector.broadcast %575 : vector<1x256xf32> to vector<2x256xf32>
    %577 = arith.addf %573, %576 : vector<2x256xf32>
    %578 = vector.extract_strided_slice %577 {offsets = [0, 0], sizes = [2, 128], strides = [1, 1]} : vector<2x256xf32> to vector<2x128xf32>
    %c4_188 = arith.constant 4 : index
    %c0_189 = arith.constant 0 : index
    %c0_190 = arith.constant 0 : index
    %579 = vector.load %arg1[%c4_188, %c0_189, %c0_190] : memref<7x2x128xf32, #tpu.memory_space<vmem>>, vector<1x2x128xf32>
    %580 = vector.shape_cast %579 : vector<1x2x128xf32> to vector<2x128xf32>
    %581 = arith.addf %578, %580 : vector<2x128xf32>
    %582 = arith.negf %581 : vector<2x128xf32>
    %583 = math.exp %582 : vector<2x128xf32>
    %cst_191 = arith.constant 1.000000e+00 : f32
    %584 = vector.broadcast %cst_191 : f32 to vector<2x128xf32>
    %585 = arith.addf %584, %583 : vector<2x128xf32>
    %586 = arith.divf %584, %585 : vector<2x128xf32>
    %587 = vector.extract_strided_slice %586 {offsets = [0, 0], sizes = [2, 32], strides = [1, 1]} : vector<2x128xf32> to vector<2x32xf32>
    %588 = vector.extract_strided_slice %586 {offsets = [0, 32], sizes = [2, 32], strides = [1, 1]} : vector<2x128xf32> to vector<2x32xf32>
    %589 = vector.extract_strided_slice %586 {offsets = [0, 64], sizes = [2, 32], strides = [1, 1]} : vector<2x128xf32> to vector<2x32xf32>
    %cst_192 = arith.constant 2.000000e+00 : f32
    %590 = vector.broadcast %cst_192 : f32 to vector<2x32xf32>
    %591 = arith.mulf %590, %589 : vector<2x32xf32>
    %cst_193 = arith.constant 1.000000e+00 : f32
    %592 = vector.broadcast %cst_193 : f32 to vector<2x32xf32>
    %593 = arith.subf %591, %592 : vector<2x32xf32>
    %594 = vector.extract_strided_slice %586 {offsets = [0, 96], sizes = [2, 32], strides = [1, 1]} : vector<2x128xf32> to vector<2x32xf32>
    %595 = arith.mulf %588, %548 : vector<2x32xf32>
    %596 = arith.mulf %587, %593 : vector<2x32xf32>
    %597 = arith.addf %595, %596 : vector<2x32xf32>
    %598 = math.tanh %597 : vector<2x32xf32>
    %599 = arith.mulf %594, %598 : vector<2x32xf32>
    %600 = vector.extract_strided_slice %577 {offsets = [0, 128], sizes = [2, 128], strides = [1, 1]} : vector<2x256xf32> to vector<2x128xf32>
    %601 = arith.negf %600 : vector<2x128xf32>
    %602 = math.exp %601 : vector<2x128xf32>
    %cst_194 = arith.constant 1.000000e+00 : f32
    %603 = vector.broadcast %cst_194 : f32 to vector<2x128xf32>
    %604 = arith.addf %603, %602 : vector<2x128xf32>
    %605 = arith.divf %603, %604 : vector<2x128xf32>
    %606 = vector.extract_strided_slice %605 {offsets = [0, 0], sizes = [2, 32], strides = [1, 1]} : vector<2x128xf32> to vector<2x32xf32>
    %607 = vector.extract_strided_slice %605 {offsets = [0, 32], sizes = [2, 32], strides = [1, 1]} : vector<2x128xf32> to vector<2x32xf32>
    %608 = vector.extract_strided_slice %605 {offsets = [0, 64], sizes = [2, 32], strides = [1, 1]} : vector<2x128xf32> to vector<2x32xf32>
    %cst_195 = arith.constant 2.000000e+00 : f32
    %609 = vector.broadcast %cst_195 : f32 to vector<2x32xf32>
    %610 = arith.mulf %609, %608 : vector<2x32xf32>
    %cst_196 = arith.constant 1.000000e+00 : f32
    %611 = vector.broadcast %cst_196 : f32 to vector<2x32xf32>
    %612 = arith.subf %610, %611 : vector<2x32xf32>
    %613 = vector.extract_strided_slice %605 {offsets = [0, 96], sizes = [2, 32], strides = [1, 1]} : vector<2x128xf32> to vector<2x32xf32>
    %614 = arith.mulf %607, %567 : vector<2x32xf32>
    %615 = arith.mulf %606, %612 : vector<2x32xf32>
    %616 = arith.addf %614, %615 : vector<2x32xf32>
    %617 = math.tanh %616 : vector<2x32xf32>
    %618 = arith.mulf %613, %617 : vector<2x32xf32>
    %619 = tpu.concatenate %599, %599, %618 in 1 : vector<2x32xf32>, vector<2x32xf32>, vector<2x32xf32> -> vector<2x96xf32>
    %c2_197 = arith.constant 2 : index
    %c0_198 = arith.constant 0 : index
    %c0_199 = arith.constant 0 : index
    %620 = vector.load %arg2[%c2_197, %c0_198, %c0_199] : memref<3x96x256xf32, #tpu.memory_space<vmem>>, vector<1x96x256xf32>
    %621 = vector.shape_cast %620 : vector<1x96x256xf32> to vector<96x256xf32>
    %cst_200 = arith.constant dense<0.000000e+00> : vector<2x256xf32>
    %622 = tpu.matmul %619, %621, %cst_200 {dimension_numbers = #tpu.dot_dimension_numbers<[1], [0], [0], [1], [0, 0, 1, 1], [], []>} : vector<2x96xf32>, vector<96x256xf32>, vector<2x256xf32> -> vector<2x256xf32>
    %c2_201 = arith.constant 2 : index
    %c0_202 = arith.constant 0 : index
    %c0_203 = arith.constant 0 : index
    %623 = vector.load %arg3[%c2_201, %c0_202, %c0_203] : memref<3x1x256xf32, #tpu.memory_space<vmem>>, vector<1x1x256xf32>
    %624 = vector.shape_cast %623 : vector<1x1x256xf32> to vector<1x256xf32>
    %625 = vector.broadcast %624 : vector<1x256xf32> to vector<2x256xf32>
    %626 = arith.addf %622, %625 : vector<2x256xf32>
    %627 = vector.extract_strided_slice %626 {offsets = [0, 0], sizes = [2, 128], strides = [1, 1]} : vector<2x256xf32> to vector<2x128xf32>
    %c5_204 = arith.constant 5 : index
    %c0_205 = arith.constant 0 : index
    %c0_206 = arith.constant 0 : index
    %628 = vector.load %arg1[%c5_204, %c0_205, %c0_206] : memref<7x2x128xf32, #tpu.memory_space<vmem>>, vector<1x2x128xf32>
    %629 = vector.shape_cast %628 : vector<1x2x128xf32> to vector<2x128xf32>
    %630 = arith.addf %627, %629 : vector<2x128xf32>
    %631 = arith.negf %630 : vector<2x128xf32>
    %632 = math.exp %631 : vector<2x128xf32>
    %cst_207 = arith.constant 1.000000e+00 : f32
    %633 = vector.broadcast %cst_207 : f32 to vector<2x128xf32>
    %634 = arith.addf %633, %632 : vector<2x128xf32>
    %635 = arith.divf %633, %634 : vector<2x128xf32>
    %636 = vector.extract_strided_slice %635 {offsets = [0, 0], sizes = [2, 32], strides = [1, 1]} : vector<2x128xf32> to vector<2x32xf32>
    %637 = vector.extract_strided_slice %635 {offsets = [0, 32], sizes = [2, 32], strides = [1, 1]} : vector<2x128xf32> to vector<2x32xf32>
    %638 = vector.extract_strided_slice %635 {offsets = [0, 64], sizes = [2, 32], strides = [1, 1]} : vector<2x128xf32> to vector<2x32xf32>
    %cst_208 = arith.constant 2.000000e+00 : f32
    %639 = vector.broadcast %cst_208 : f32 to vector<2x32xf32>
    %640 = arith.mulf %639, %638 : vector<2x32xf32>
    %cst_209 = arith.constant 1.000000e+00 : f32
    %641 = vector.broadcast %cst_209 : f32 to vector<2x32xf32>
    %642 = arith.subf %640, %641 : vector<2x32xf32>
    %643 = vector.extract_strided_slice %635 {offsets = [0, 96], sizes = [2, 32], strides = [1, 1]} : vector<2x128xf32> to vector<2x32xf32>
    %644 = arith.mulf %637, %597 : vector<2x32xf32>
    %645 = arith.mulf %636, %642 : vector<2x32xf32>
    %646 = arith.addf %644, %645 : vector<2x32xf32>
    %647 = math.tanh %646 : vector<2x32xf32>
    %648 = arith.mulf %643, %647 : vector<2x32xf32>
    %649 = vector.extract_strided_slice %626 {offsets = [0, 128], sizes = [2, 128], strides = [1, 1]} : vector<2x256xf32> to vector<2x128xf32>
    %650 = arith.negf %649 : vector<2x128xf32>
    %651 = math.exp %650 : vector<2x128xf32>
    %cst_210 = arith.constant 1.000000e+00 : f32
    %652 = vector.broadcast %cst_210 : f32 to vector<2x128xf32>
    %653 = arith.addf %652, %651 : vector<2x128xf32>
    %654 = arith.divf %652, %653 : vector<2x128xf32>
    %655 = vector.extract_strided_slice %654 {offsets = [0, 0], sizes = [2, 32], strides = [1, 1]} : vector<2x128xf32> to vector<2x32xf32>
    %656 = vector.extract_strided_slice %654 {offsets = [0, 32], sizes = [2, 32], strides = [1, 1]} : vector<2x128xf32> to vector<2x32xf32>
    %657 = vector.extract_strided_slice %654 {offsets = [0, 64], sizes = [2, 32], strides = [1, 1]} : vector<2x128xf32> to vector<2x32xf32>
    %cst_211 = arith.constant 2.000000e+00 : f32
    %658 = vector.broadcast %cst_211 : f32 to vector<2x32xf32>
    %659 = arith.mulf %658, %657 : vector<2x32xf32>
    %cst_212 = arith.constant 1.000000e+00 : f32
    %660 = vector.broadcast %cst_212 : f32 to vector<2x32xf32>
    %661 = arith.subf %659, %660 : vector<2x32xf32>
    %662 = vector.extract_strided_slice %654 {offsets = [0, 96], sizes = [2, 32], strides = [1, 1]} : vector<2x128xf32> to vector<2x32xf32>
    %663 = arith.mulf %656, %616 : vector<2x32xf32>
    %664 = arith.mulf %655, %661 : vector<2x32xf32>
    %665 = arith.addf %663, %664 : vector<2x32xf32>
    %666 = math.tanh %665 : vector<2x32xf32>
    %667 = arith.mulf %662, %666 : vector<2x32xf32>
    %668 = tpu.concatenate %648, %648, %667 in 1 : vector<2x32xf32>, vector<2x32xf32>, vector<2x32xf32> -> vector<2x96xf32>
    %c2_213 = arith.constant 2 : index
    %c0_214 = arith.constant 0 : index
    %c0_215 = arith.constant 0 : index
    %669 = vector.load %arg2[%c2_213, %c0_214, %c0_215] : memref<3x96x256xf32, #tpu.memory_space<vmem>>, vector<1x96x256xf32>
    %670 = vector.shape_cast %669 : vector<1x96x256xf32> to vector<96x256xf32>
    %cst_216 = arith.constant dense<0.000000e+00> : vector<2x256xf32>
    %671 = tpu.matmul %668, %670, %cst_216 {dimension_numbers = #tpu.dot_dimension_numbers<[1], [0], [0], [1], [0, 0, 1, 1], [], []>} : vector<2x96xf32>, vector<96x256xf32>, vector<2x256xf32> -> vector<2x256xf32>
    %c2_217 = arith.constant 2 : index
    %c0_218 = arith.constant 0 : index
    %c0_219 = arith.constant 0 : index
    %672 = vector.load %arg3[%c2_217, %c0_218, %c0_219] : memref<3x1x256xf32, #tpu.memory_space<vmem>>, vector<1x1x256xf32>
    %673 = vector.shape_cast %672 : vector<1x1x256xf32> to vector<1x256xf32>
    %674 = vector.broadcast %673 : vector<1x256xf32> to vector<2x256xf32>
    %675 = arith.addf %671, %674 : vector<2x256xf32>
    %676 = vector.extract_strided_slice %675 {offsets = [0, 0], sizes = [2, 128], strides = [1, 1]} : vector<2x256xf32> to vector<2x128xf32>
    %c6_220 = arith.constant 6 : index
    %c0_221 = arith.constant 0 : index
    %c0_222 = arith.constant 0 : index
    %677 = vector.load %arg1[%c6_220, %c0_221, %c0_222] : memref<7x2x128xf32, #tpu.memory_space<vmem>>, vector<1x2x128xf32>
    %678 = vector.shape_cast %677 : vector<1x2x128xf32> to vector<2x128xf32>
    %679 = arith.addf %676, %678 : vector<2x128xf32>
    %680 = arith.negf %679 : vector<2x128xf32>
    %681 = math.exp %680 : vector<2x128xf32>
    %cst_223 = arith.constant 1.000000e+00 : f32
    %682 = vector.broadcast %cst_223 : f32 to vector<2x128xf32>
    %683 = arith.addf %682, %681 : vector<2x128xf32>
    %684 = arith.divf %682, %683 : vector<2x128xf32>
    %685 = vector.extract_strided_slice %684 {offsets = [0, 0], sizes = [2, 32], strides = [1, 1]} : vector<2x128xf32> to vector<2x32xf32>
    %686 = vector.extract_strided_slice %684 {offsets = [0, 32], sizes = [2, 32], strides = [1, 1]} : vector<2x128xf32> to vector<2x32xf32>
    %687 = vector.extract_strided_slice %684 {offsets = [0, 64], sizes = [2, 32], strides = [1, 1]} : vector<2x128xf32> to vector<2x32xf32>
    %cst_224 = arith.constant 2.000000e+00 : f32
    %688 = vector.broadcast %cst_224 : f32 to vector<2x32xf32>
    %689 = arith.mulf %688, %687 : vector<2x32xf32>
    %cst_225 = arith.constant 1.000000e+00 : f32
    %690 = vector.broadcast %cst_225 : f32 to vector<2x32xf32>
    %691 = arith.subf %689, %690 : vector<2x32xf32>
    %692 = vector.extract_strided_slice %684 {offsets = [0, 96], sizes = [2, 32], strides = [1, 1]} : vector<2x128xf32> to vector<2x32xf32>
    %693 = arith.mulf %686, %646 : vector<2x32xf32>
    %694 = arith.mulf %685, %691 : vector<2x32xf32>
    %695 = arith.addf %693, %694 : vector<2x32xf32>
    %696 = math.tanh %695 : vector<2x32xf32>
    %697 = arith.mulf %692, %696 : vector<2x32xf32>
    %698 = vector.extract_strided_slice %675 {offsets = [0, 128], sizes = [2, 128], strides = [1, 1]} : vector<2x256xf32> to vector<2x128xf32>
    %699 = arith.negf %698 : vector<2x128xf32>
    %700 = math.exp %699 : vector<2x128xf32>
    %cst_226 = arith.constant 1.000000e+00 : f32
    %701 = vector.broadcast %cst_226 : f32 to vector<2x128xf32>
    %702 = arith.addf %701, %700 : vector<2x128xf32>
    %703 = arith.divf %701, %702 : vector<2x128xf32>
    %704 = vector.extract_strided_slice %703 {offsets = [0, 0], sizes = [2, 32], strides = [1, 1]} : vector<2x128xf32> to vector<2x32xf32>
    %705 = vector.extract_strided_slice %703 {offsets = [0, 32], sizes = [2, 32], strides = [1, 1]} : vector<2x128xf32> to vector<2x32xf32>
    %706 = vector.extract_strided_slice %703 {offsets = [0, 64], sizes = [2, 32], strides = [1, 1]} : vector<2x128xf32> to vector<2x32xf32>
    %cst_227 = arith.constant 2.000000e+00 : f32
    %707 = vector.broadcast %cst_227 : f32 to vector<2x32xf32>
    %708 = arith.mulf %707, %706 : vector<2x32xf32>
    %cst_228 = arith.constant 1.000000e+00 : f32
    %709 = vector.broadcast %cst_228 : f32 to vector<2x32xf32>
    %710 = arith.subf %708, %709 : vector<2x32xf32>
    %711 = vector.extract_strided_slice %703 {offsets = [0, 96], sizes = [2, 32], strides = [1, 1]} : vector<2x128xf32> to vector<2x32xf32>
    %712 = arith.mulf %705, %665 : vector<2x32xf32>
    %713 = arith.mulf %704, %710 : vector<2x32xf32>
    %714 = arith.addf %712, %713 : vector<2x32xf32>
    %715 = math.tanh %714 : vector<2x32xf32>
    %716 = arith.mulf %711, %715 : vector<2x32xf32>
    %717 = tpu.concatenate %697, %697, %716 in 1 : vector<2x32xf32>, vector<2x32xf32>, vector<2x32xf32> -> vector<2x96xf32>
    %c2_229 = arith.constant 2 : index
    %c0_230 = arith.constant 0 : index
    %c0_231 = arith.constant 0 : index
    %718 = vector.load %arg2[%c2_229, %c0_230, %c0_231] : memref<3x96x256xf32, #tpu.memory_space<vmem>>, vector<1x96x256xf32>
    %719 = vector.shape_cast %718 : vector<1x96x256xf32> to vector<96x256xf32>
    %cst_232 = arith.constant dense<0.000000e+00> : vector<2x256xf32>
    %720 = tpu.matmul %717, %719, %cst_232 {dimension_numbers = #tpu.dot_dimension_numbers<[1], [0], [0], [1], [0, 0, 1, 1], [], []>} : vector<2x96xf32>, vector<96x256xf32>, vector<2x256xf32> -> vector<2x256xf32>
    %c2_233 = arith.constant 2 : index
    %c0_234 = arith.constant 0 : index
    %c0_235 = arith.constant 0 : index
    %721 = vector.load %arg3[%c2_233, %c0_234, %c0_235] : memref<3x1x256xf32, #tpu.memory_space<vmem>>, vector<1x1x256xf32>
    %722 = vector.shape_cast %721 : vector<1x1x256xf32> to vector<1x256xf32>
    %723 = vector.broadcast %722 : vector<1x256xf32> to vector<2x256xf32>
    %724 = arith.addf %720, %723 : vector<2x256xf32>
    %725 = vector.extract_strided_slice %724 {offsets = [0, 128], sizes = [2, 128], strides = [1, 1]} : vector<2x256xf32> to vector<2x128xf32>
    %726 = arith.negf %725 : vector<2x128xf32>
    %727 = math.exp %726 : vector<2x128xf32>
    %cst_236 = arith.constant 1.000000e+00 : f32
    %728 = vector.broadcast %cst_236 : f32 to vector<2x128xf32>
    %729 = arith.addf %728, %727 : vector<2x128xf32>
    %730 = arith.divf %728, %729 : vector<2x128xf32>
    %731 = vector.extract_strided_slice %730 {offsets = [0, 0], sizes = [2, 32], strides = [1, 1]} : vector<2x128xf32> to vector<2x32xf32>
    %732 = vector.extract_strided_slice %730 {offsets = [0, 32], sizes = [2, 32], strides = [1, 1]} : vector<2x128xf32> to vector<2x32xf32>
    %733 = vector.extract_strided_slice %730 {offsets = [0, 64], sizes = [2, 32], strides = [1, 1]} : vector<2x128xf32> to vector<2x32xf32>
    %cst_237 = arith.constant 2.000000e+00 : f32
    %734 = vector.broadcast %cst_237 : f32 to vector<2x32xf32>
    %735 = arith.mulf %734, %733 : vector<2x32xf32>
    %cst_238 = arith.constant 1.000000e+00 : f32
    %736 = vector.broadcast %cst_238 : f32 to vector<2x32xf32>
    %737 = arith.subf %735, %736 : vector<2x32xf32>
    %738 = vector.extract_strided_slice %730 {offsets = [0, 96], sizes = [2, 32], strides = [1, 1]} : vector<2x128xf32> to vector<2x32xf32>
    %739 = arith.mulf %732, %714 : vector<2x32xf32>
    %740 = arith.mulf %731, %737 : vector<2x32xf32>
    %741 = arith.addf %739, %740 : vector<2x32xf32>
    %742 = math.tanh %741 : vector<2x32xf32>
    %743 = arith.mulf %738, %742 : vector<2x32xf32>
    %744 = vector.shape_cast %471 : vector<2x32xf32> to vector<1x2x32xf32>
    %745 = vector.shape_cast %520 : vector<2x32xf32> to vector<1x2x32xf32>
    %746 = vector.shape_cast %569 : vector<2x32xf32> to vector<1x2x32xf32>
    %747 = vector.shape_cast %618 : vector<2x32xf32> to vector<1x2x32xf32>
    %748 = vector.shape_cast %667 : vector<2x32xf32> to vector<1x2x32xf32>
    %749 = vector.shape_cast %716 : vector<2x32xf32> to vector<1x2x32xf32>
    %750 = vector.shape_cast %743 : vector<2x32xf32> to vector<1x2x32xf32>
    %751 = tpu.concatenate %744, %745, %746, %747, %748, %749, %750 in 0 : vector<1x2x32xf32>, vector<1x2x32xf32>, vector<1x2x32xf32>, vector<1x2x32xf32>, vector<1x2x32xf32>, vector<1x2x32xf32>, vector<1x2x32xf32> -> vector<7x2x32xf32>
    %c0_239 = arith.constant 0 : index
    %c0_240 = arith.constant 0 : index
    %c0_241 = arith.constant 0 : index
    %752 = vector.load %arg4[%c0_239, %c0_240, %c0_241] : memref<7x2x32xf32, #tpu.memory_space<vmem>>, vector<7x2x32xf32>
    tpu.vector_store %arg4[%c0_239, %c0_240, %c0_241], %751 {strides = array<i32>} : memref<7x2x32xf32, #tpu.memory_space<vmem>>, vector<7x2x32xf32>,
    return
  }
}

</mosaic_0001>

<bundles_post_ra>
// kernel: lstm_seq2seq_forward.1
= control target key start
LH: loop header
LB: loop body
LE: loop exit
PB: predicated region body
PF: predicated region fallthrough
CT: control target
= control target key end

     0   :  { %v3038_v3 = vmov 0.0   ;;  %v43_v37 = vlaneseq  ;;  %s3039_s15 = smov 64   ;;  %s3040_s16 = smov 32   ;;  %vm161_vm0 = vcmask 261120   ;;  %vm163_vm1 = vcmask 523264   ;;  %s3970_s2 = inlined_call_operand.vmem [shape: f32[3,96,256], index: 2, kind: input, shape index: {}]   ;;  %s3971_s3 = inlined_call_operand.vmem [shape: f32[3,1,256], index: 3, kind: input, shape index: {}]   ;;  %s3972_s0 = inlined_call_operand.vmem [shape: f32[8,2,128], index: 0, kind: input, shape index: {}]   ;;  %s3973_s1 = inlined_call_operand.vmem [shape: f32[7,2,128], index: 1, kind: input, shape index: {}]   ;;  %s3974_s4 = inlined_call_operand.vmem [shape: f32[7,2,32], index: 4, kind: output, shape index: {}]  }
   0x1   :  { %v18_v0 = vld [vmem:[%s3970_s2 + $0x8] sm:$0xff]  ;;  %v20_v1 = vld [vmem:[%s3970_s2 + $0x18] sm:$0xff]  ;;  %v17_v2 = vld [vmem:[%s3970_s2] sm:$0xff]  ;;  %121 = vmatprep.mubr.f32.mxu0 %v3038_v3  ;;  %232 = vmatprep.mubr.f32.mxu1 %v3038_v3  ;;  %vm53_vm2 = vcmask 785408   ;;  %s3041_s19 = smov 96   ;;  %vm2320_vm3 = vcmask 254976  }
   0x2   :  { %v3078_v4 = vpack.c.bf16 %v20_v1, %v18_v0  ;;  %v19_v5 = vld [vmem:[%s3970_s2 + $0x10] sm:$0xff]  ;;  %v22_v6 = vld [vmem:[%s3970_s2 + $0x28] sm:$0xff]  ;;  %v24_v7 = vld [vmem:[%s3970_s2 + $0x38] sm:$0xff]  ;;  %v44_v38 = vshrl.u32 %v43_v37, 7 }
   0x3   :  { %v3089_v8 = vpack.c.bf16 %v19_v5, %v17_v2  ;;  %v3091_v9 = vpack.c.bf16 %v24_v7, %v22_v6  ;;  %v21_v10 = vld [vmem:[%s3970_s2 + $0x20] sm:$0xff]  ;;  %v23_v11 = vld [vmem:[%s3970_s2 + $0x30] sm:$0xff]  ;;  %v26_v12 = vld [vmem:[%s3970_s2 + $0x48] sm:$0xff] }
   0x4   :  { %2471 = vmatprep.subr.bf16.mxu0 %v3078_v4  ;;  %v28_v13 = vld [vmem:[%s3970_s2 + $0x58] sm:$0xff]  ;;  %2495 = vmatprep.subr.bf16.mxu1 %v3078_v4  ;;  %v3108_v14 = vpack.c.bf16 %v23_v11, %v21_v10  ;;  %v25_v16 = vld [vmem:[%s3970_s2 + $0x40] sm:$0xff]  ;;  %v27_v17 = vld [vmem:[%s3970_s2 + $0x50] sm:$0xff]  ;;  %v3205_v39 = vsub.s32 0, %v44_v38  ;;  %v3241_v1 = vsub.s32 1, %v44_v38 }
   0x5   :  { %2473 = vmatpush1.bf16.msra.mxu0 %v3089_v8  ;;  %2497 = vmatpush1.bf16.msra.mxu1 %v3089_v8  ;;  %v3112_v15 = vpack.c.bf16 %v28_v13, %v26_v12  ;;  %v30_v18 = vld [vmem:[%s3970_s2 + $0x68] sm:$0xff]  ;;  %v32_v19 = vld [vmem:[%s3970_s2 + $0x78] sm:$0xff]  ;;  %v3128_v20 = vpack.c.bf16 %v27_v17, %v25_v16  ;;  %v29_v22 = vld [vmem:[%s3970_s2 + $0x60] sm:$0xff] }
   0x6   :  { %2475 = vmatprep.subr.bf16.mxu0 %v3091_v9  ;;  %2499 = vmatprep.subr.bf16.mxu1 %v3091_v9  ;;  %v3132_v21 = vpack.c.bf16 %v32_v19, %v30_v18  ;;  %v31_v23 = vld [vmem:[%s3970_s2 + $0x70] sm:$0xff]  ;;  %v34_v24 = vld [vmem:[%s3970_s2 + $0x88] sm:$0xff]  ;;  %v36_v25 = vld [vmem:[%s3970_s2 + $0x98] sm:$0xff] }
   0x7   :  { %v3148_v26 = vpack.c.bf16 %v31_v23, %v29_v22  ;;  %v3152_v27 = vpack.c.bf16 %v36_v25, %v34_v24  ;;  %v33_v28 = vld [vmem:[%s3970_s2 + $0x80] sm:$0xff]  ;;  %v35_v29 = vld [vmem:[%s3970_s2 + $0x90] sm:$0xff]  ;;  %v38_v30 = vld [vmem:[%s3970_s2 + $0xa8] sm:$0xff] }
   0x8   :  { %v40_v31 = vld [vmem:[%s3970_s2 + $0xb8] sm:$0xff]  ;;  %v3168_v32 = vpack.c.bf16 %v35_v29, %v33_v28  ;;  %v37_v34 = vld [vmem:[%s3970_s2 + $0xa0] sm:$0xff]  ;;  %v39_v35 = vld [vmem:[%s3970_s2 + $0xb0] sm:$0xff] }
   0x9   :  { %2477 = vmatpush1.bf16.msra.mxu0 %v3108_v14  ;;  %2501 = vmatpush1.bf16.msra.mxu1 %v3108_v14  ;;  %v3172_v33 = vpack.c.bf16 %v40_v31, %v38_v30  ;;  %v3182_v36 = vpack.c.bf16 %v39_v35, %v37_v34  ;;  %v41_v40 = vld [vmem:[%s3971_s3] sm:$0x3]  ;;  %v2335_v6 = vld [vmem:[%s3972_s0 + $0x2] sm:$0x3] }
   0xa   :  { %2479 = vmatprep.subr.bf16.mxu0 %v3112_v15  ;;  %2503 = vmatprep.subr.bf16.mxu1 %v3112_v15  ;;  %v3211_v41 = vrot.slane %v41_v40, %v3205_v39  ;;  %v127_v43 = vld [vmem:[%s3972_s0] sm:$0x3]  ;;  %v3244_v2 = vrot.slane %v41_v40, %v3241_v1 }
   0xd   :  { %2481 = vmatpush1.bf16.msra.mxu0 %v3128_v20  ;;  %2505 = vmatpush1.bf16.msra.mxu1 %v3128_v20 }
   0xe   :  { %2483 = vmatprep.subr.bf16.mxu0 %v3132_v21  ;;  %2507 = vmatprep.subr.bf16.mxu1 %v3132_v21 }
  0x11   :  { %2485 = vmatpush1.bf16.msra.mxu0 %v3148_v26  ;;  %2509 = vmatpush1.bf16.msra.mxu1 %v3148_v26 }
  0x12   :  { %2487 = vmatprep.subr.bf16.mxu0 %v3152_v27  ;;  %2511 = vmatprep.subr.bf16.mxu1 %v3152_v27 }
  0x15   :  { %2489 = vmatpush1.bf16.msra.mxu0 %v3168_v32  ;;  %2513 = vmatpush1.bf16.msra.mxu1 %v3168_v32 }
  0x16   :  { %2491 = vmatprep.subr.bf16.mxu0 %v3172_v33  ;;  %2515 = vmatprep.subr.bf16.mxu1 %v3172_v33 }
  0x19   :  { %2493 = vmatpush1.bf16.msra.mxu0 %v3182_v36  ;;  %2517 = vmatpush1.bf16.msra.mxu1 %v3182_v36 }
  0x1a   :  { %2519 = vmatprep.subr.bf16.mxu0 %v3078_v4  ;;  %2543 = vmatprep.subr.bf16.mxu1 %v3078_v4 }
  0x1c   :  { %122 = vmatmul.mubr.f32.vlgmr.msra.gmra.mrb[0].mxu0 %v3038_v3 }
  0x1d   :  { %2521 = vmatpush1.bf16.msra.mxu0 %v3089_v8  ;;  %372 = vmatprep.mubr.f32.mxu0 %v3038_v3 }
  0x1e   :  { %2523 = vmatprep.subr.bf16.mxu0 %v3091_v9 }
  0x21   :  { %2525 = vmatpush1.bf16.msra.mxu0 %v3108_v14 }
  0x22   :  { %2527 = vmatprep.subr.bf16.mxu0 %v3112_v15 }
  0x25   :  { %2529 = vmatpush1.bf16.msra.mxu0 %v3128_v20 }
  0x26   :  { %2531 = vmatprep.subr.bf16.mxu0 %v3132_v21 }
  0x29   :  { %2533 = vmatpush1.bf16.msra.mxu0 %v3148_v26 }
  0x2a   :  { %2535 = vmatprep.subr.bf16.mxu0 %v3152_v27 }
  0x2d   :  { %2537 = vmatpush1.bf16.msra.mxu0 %v3168_v32 }
  0x2e   :  { %2539 = vmatprep.subr.bf16.mxu0 %v3172_v33 }
  0x31   :  { %2541 = vmatpush1.bf16.msra.mxu0 %v3182_v36 }
  0x32   :  { %2567 = vmatprep.subr.bf16.mxu0 %v3078_v4 }
  0xef   :  { %v123_v42 = vpop.f32.mrb[0].mxu0 }
  0xf0   :  { %v124_v44 = vadd.f32 %v123_v42, %v3211_v41  ;;  %v125_v45 = vpop.f32.mrb[1].mxu0 }
  0xf2   :  { %v128_v46 = vadd.f32 %v127_v43, %v124_v44 }
  0xf4   :  { %v2332_v47 = vmul.f32 -1.442695, %v128_v46 }
  0xf6   :  { %2858 = vpow2.f32 %v2332_v47 }
 0x100   :  { %v2859_v48 = vpop.eup %2858 }
 0x101   :  { %v132_v49 = vadd.f32 1.0, %v2859_v48 }
 0x103   :  { %2860 = vrcp.f32 %v132_v49 }
 0x10d   :  { %v2861_v50 = vpop.eup %2860 }
 0x10e   :  { %v135_v51 = vmul.f32 2.0, %v2861_v50  ;;  %v137_v55 = vmul.f32 0.0, %v2861_v50 }
 0x110   :  { %v2333_v52 = vadd.f32 -1.0, %v135_v51 }
 0x112   :  { %139 = vrot.lane.b32.xlu0 %v2333_v52, %s3039_s15 }
 0x184   :  { %v140_v53 = vpop.permute.xlu0 %139 }
 0x185   :  { %v142_v54 = vmul.f32 %v2861_v50, %v140_v53 }
 0x187   :  { %144 = vrot.lane.b32.xlu0 %v142_v54, %s3040_s16 }
 0x1f9   :  { %v145_v56 = vpop.permute.xlu0 %144 }
 0x1fa   :  { %v3219_v57 = vadd.f32 %v145_v56, %v137_v55 }
 0x1fc   :  { %2862 = vtanh.f32 %v3219_v57 }
 0x206   :  { %v2863_v58 = vpop.eup %2862 }
 0x207   :  { %150 = vrot.lane.b32.xlu1 %v2863_v58, %s3039_s15  ;;  %v2341_v58 = vld [vmem:[%s3972_s0 + $0x4] sm:$0x3] }
 0x279   :  { %v151_v59 = vpop.permute.xlu1 %150 }
 0x27a   :  { %v153_v60 = vmul.f32 %v2861_v50, %v151_v59 }
 0x27c   :  { %158 = vrot.lane.b32.xlu0 %v153_v60, %s3039_s15  ;;  %155 = vrot.lane.b32.xlu1 %v153_v60, %s3040_s16 }
 0x2ee   :  { %v159_v61 = vpop.permute.xlu0 %158  ;;  %v156_v62 = vpop.permute.xlu1 %155 }
 0x2ef   :  { %v162_v63 = vsel %vm161_vm0, %v156_v62, %v159_v61 }
 0x2f0   :  { %v164_v0 = vsel %vm163_vm1, %v162_v63, 0.0 }
 0x2f1   :  { %2334 = vmatmul.mubr.msk.f32.vlgmr.msra.gmra.mrb[0].mxu1 %vm53_vm2, %v164_v0 }
 0x2f2   :  { %2545 = vmatpush1.bf16.msra.mxu1 %v3089_v8  ;;  %512 = vmatprep.mubr.f32.mxu1 %v3038_v3 }
 0x2f3   :  { %2547 = vmatprep.subr.bf16.mxu1 %v3091_v9 }
 0x2f6   :  { %2549 = vmatpush1.bf16.msra.mxu1 %v3108_v14 }
 0x2f7   :  { %2551 = vmatprep.subr.bf16.mxu1 %v3112_v15 }
 0x2fa   :  { %2553 = vmatpush1.bf16.msra.mxu1 %v3128_v20 }
 0x2fb   :  { %2555 = vmatprep.subr.bf16.mxu1 %v3132_v21 }
 0x2fe   :  { %2557 = vmatpush1.bf16.msra.mxu1 %v3148_v26 }
 0x2ff   :  { %2559 = vmatprep.subr.bf16.mxu1 %v3152_v27 }
 0x302   :  { %2561 = vmatpush1.bf16.msra.mxu1 %v3168_v32 }
 0x303   :  { %2563 = vmatprep.subr.bf16.mxu1 %v3172_v33 }
 0x306   :  { %2565 = vmatpush1.bf16.msra.mxu1 %v3182_v36 }
 0x307   :  { %2591 = vmatprep.subr.bf16.mxu1 %v3078_v4 }
 0x3c4   :  { %v234_v5 = vpop.f32.mrb[0].mxu1 }
 0x3c5   :  { %v235_v7 = vadd.f32 %v234_v5, %v3211_v41  ;;  %v236_v10 = vpop.f32.mrb[1].mxu1 }
 0x3c6   :  { %v237_v11 = vadd.f32 %v236_v10, %v3244_v2 }
 0x3c7   :  { %v241_v12 = vadd.f32 %v2335_v6, %v235_v7 }
 0x3c8   :  { %v2338_v13 = vmul.f32 -1.442695, %v237_v11 }
 0x3c9   :  { %v2336_v16 = vmul.f32 -1.442695, %v241_v12 }
 0x3ca   :  { %2864 = vpow2.f32 %v2338_v13 }
 0x3cb   :  { %2866 = vpow2.f32 %v2336_v16 }
 0x3d4   :  { %v2865_v17 = vpop.eup %2864 }
 0x3d5   :  { %v2867_v18 = vpop.eup %2866  ;;  %v270_v19 = vadd.f32 1.0, %v2865_v17 }
 0x3d6   :  { %v245_v22 = vadd.f32 1.0, %v2867_v18 }
 0x3d7   :  { %2868 = vrcp.f32 %v270_v19 }
 0x3d8   :  { %2870 = vrcp.f32 %v245_v22 }
 0x3e1   :  { %v2869_v23 = vpop.eup %2868 }
 0x3e2   :  { %v2871_v24 = vpop.eup %2870  ;;  %v273_v25 = vmul.f32 2.0, %v2869_v23  ;;  %v275_v38 = vmul.f32 0.0, %v2869_v23 }
 0x3e3   :  { %v248_v28 = vmul.f32 2.0, %v2871_v24  ;;  %v250_v42 = vmul.f32 %v2871_v24, %v3219_v57 }
 0x3e4   :  { %v2339_v29 = vadd.f32 -1.0, %v273_v25 }
 0x3e5   :  { %v2337_v30 = vadd.f32 -1.0, %v248_v28 }
 0x3e6   :  { %277 = vrot.lane.b32.xlu0 %v2339_v29, %s3039_s15 }
 0x3e7   :  { %252 = vrot.lane.b32.xlu1 %v2337_v30, %s3039_s15 }
 0x458   :  { %v278_v31 = vpop.permute.xlu0 %277 }
 0x459   :  { %v280_v34 = vmul.f32 %v2869_v23, %v278_v31  ;;  %v253_v35 = vpop.permute.xlu1 %252 }
 0x45a   :  { %v255_v37 = vmul.f32 %v2871_v24, %v253_v35 }
 0x45b   :  { %282 = vrot.lane.b32.xlu0 %v280_v34, %s3040_s16 }
 0x45c   :  { %257 = vrot.lane.b32.xlu1 %v255_v37, %s3040_s16 }
 0x4cd   :  { %v283_v40 = vpop.permute.xlu0 %282 }
 0x4ce   :  { %v3256_v43 = vadd.f32 %v283_v40, %v275_v38  ;;  %v258_v44 = vpop.permute.xlu1 %257 }
 0x4cf   :  { %v3258_v45 = vadd.f32 %v258_v44, %v250_v42 }
 0x4d0   :  { %2872 = vtanh.f32 %v3256_v43 }
 0x4d1   :  { %2874 = vtanh.f32 %v3258_v45 }
 0x4da   :  { %v2873_v46 = vpop.eup %2872 }
 0x4db   :  { %v2875_v47 = vpop.eup %2874  ;;  %288 = vrot.lane.b32.xlu0 %v2873_v46, %s3039_s15 }
 0x4dc   :  { %263 = vrot.lane.b32.xlu1 %v2875_v47, %s3039_s15 }
 0x54d   :  { %v289_v50 = vpop.permute.xlu0 %288 }
 0x54e   :  { %v264_v48 = vpop.permute.xlu1 %263  ;;  %v291_v51 = vmul.f32 %v2869_v23, %v289_v50  ;;  %v2347_v50 = vld [vmem:[%s3972_s0 + $0x6] sm:$0x3] }
 0x54f   :  { %v266_v49 = vmul.f32 %v2871_v24, %v264_v48 }
 0x551   :  { %296 = vrot.lane.b32.xlu0 %v266_v49, %s3039_s15  ;;  %293 = vrot.lane.b32.xlu1 %v266_v49, %s3040_s16 }
 0x555   :  { %300 = vrot.lane.b32.xlu1 %v291_v51, %s3041_s19 }
 0x5c3   :  { %v294_v52 = vpop.permute.xlu1 %293  ;;  %v297_v53 = vpop.permute.xlu0 %296 }
 0x5c4   :  { %v303_v54 = vsel %vm161_vm0, %v294_v52, %v297_v53 }
 0x5c7   :  { %v301_v55 = vpop.permute.xlu1 %300 }
 0x5c8   :  { %v304_v56 = vsel %vm163_vm1, %v303_v54, %v301_v55 }
 0x5c9   :  { %2340 = vmatmul.mubr.msk.f32.vlgmr.msra.gmra.mrb[2].mxu0 %vm53_vm2, %v304_v56 }
 0x5ca   :  { %2569 = vmatpush1.bf16.msra.mxu0 %v3089_v8  ;;  %652 = vmatprep.mubr.f32.mxu0 %v3038_v3 }
 0x5cb   :  { %2571 = vmatprep.subr.bf16.mxu0 %v3091_v9 }
 0x5ce   :  { %2573 = vmatpush1.bf16.msra.mxu0 %v3108_v14 }
 0x5cf   :  { %2575 = vmatprep.subr.bf16.mxu0 %v3112_v15 }
 0x5d2   :  { %2577 = vmatpush1.bf16.msra.mxu0 %v3128_v20 }
 0x5d3   :  { %2579 = vmatprep.subr.bf16.mxu0 %v3132_v21 }
 0x5d6   :  { %2581 = vmatpush1.bf16.msra.mxu0 %v3148_v26 }
 0x5d7   :  { %2583 = vmatprep.subr.bf16.mxu0 %v3152_v27 }
 0x5da   :  { %2585 = vmatpush1.bf16.msra.mxu0 %v3168_v32 }
 0x5db   :  { %2587 = vmatprep.subr.bf16.mxu0 %v3172_v33 }
 0x5de   :  { %2589 = vmatpush1.bf16.msra.mxu0 %v3182_v36 }
 0x5df   :  { %2615 = vmatprep.subr.bf16.mxu0 %v3078_v4 }
 0x69c   :  { %v374_v57 = vpop.f32.mrb[2].mxu0 }
 0x69d   :  { %v375_v59 = vadd.f32 %v374_v57, %v3211_v41  ;;  %v376_v60 = vpop.f32.mrb[3].mxu0 }
 0x69e   :  { %v377_v61 = vadd.f32 %v376_v60, %v3244_v2 }
 0x69f   :  { %v381_v62 = vadd.f32 %v2341_v58, %v375_v59 }
 0x6a0   :  { %v2344_v63 = vmul.f32 -1.442695, %v377_v61 }
 0x6a1   :  { %v2342_v0 = vmul.f32 -1.442695, %v381_v62 }
 0x6a2   :  { %2876 = vpow2.f32 %v2344_v63 }
 0x6a3   :  { %2878 = vpow2.f32 %v2342_v0 }
 0x6ac   :  { %v2877_v5 = vpop.eup %2876 }
 0x6ad   :  { %v2879_v6 = vpop.eup %2878  ;;  %v410_v7 = vadd.f32 1.0, %v2877_v5 }
 0x6ae   :  { %v385_v10 = vadd.f32 1.0, %v2879_v6 }
 0x6af   :  { %2880 = vrcp.f32 %v410_v7 }
 0x6b0   :  { %2882 = vrcp.f32 %v385_v10 }
 0x6b9   :  { %v2881_v11 = vpop.eup %2880 }
 0x6ba   :  { %v2883_v12 = vpop.eup %2882  ;;  %v413_v13 = vmul.f32 2.0, %v2881_v11  ;;  %v415_v25 = vmul.f32 %v2881_v11, %v3256_v43 }
 0x6bb   :  { %v388_v16 = vmul.f32 2.0, %v2883_v12  ;;  %v390_v29 = vmul.f32 %v2883_v12, %v3258_v45 }
 0x6bc   :  { %v2345_v17 = vadd.f32 -1.0, %v413_v13 }
 0x6bd   :  { %v2343_v18 = vadd.f32 -1.0, %v388_v16 }
 0x6be   :  { %417 = vrot.lane.b32.xlu1 %v2345_v17, %s3039_s15 }
 0x6bf   :  { %392 = vrot.lane.b32.xlu0 %v2343_v18, %s3039_s15 }
 0x730   :  { %v418_v19 = vpop.permute.xlu1 %417 }
 0x731   :  { %v420_v22 = vmul.f32 %v2881_v11, %v418_v19  ;;  %v393_v23 = vpop.permute.xlu0 %392 }
 0x732   :  { %v395_v24 = vmul.f32 %v2883_v12, %v393_v23 }
 0x733   :  { %422 = vrot.lane.b32.xlu1 %v420_v22, %s3040_s16 }
 0x734   :  { %397 = vrot.lane.b32.xlu0 %v395_v24, %s3040_s16 }
 0x7a5   :  { %v423_v28 = vpop.permute.xlu1 %422 }
 0x7a6   :  { %v3294_v30 = vadd.f32 %v423_v28, %v415_v25  ;;  %v398_v31 = vpop.permute.xlu0 %397 }
 0x7a7   :  { %v3296_v34 = vadd.f32 %v398_v31, %v390_v29 }
 0x7a8   :  { %2884 = vtanh.f32 %v3294_v30 }
 0x7a9   :  { %2886 = vtanh.f32 %v3296_v34 }
 0x7b2   :  { %v2885_v35 = vpop.eup %2884 }
 0x7b3   :  { %v2887_v37 = vpop.eup %2886  ;;  %428 = vrot.lane.b32.xlu1 %v2885_v35, %s3039_s15 }
 0x7b4   :  { %403 = vrot.lane.b32.xlu0 %v2887_v37, %s3039_s15 }
 0x825   :  { %v429_v42 = vpop.permute.xlu1 %428 }
 0x826   :  { %v404_v38 = vpop.permute.xlu0 %403  ;;  %v431_v43 = vmul.f32 %v2881_v11, %v429_v42 }
 0x827   :  { %v406_v40 = vmul.f32 %v2883_v12, %v404_v38 }
 0x829   :  { %436 = vrot.lane.b32.xlu1 %v406_v40, %s3039_s15  ;;  %433 = vrot.lane.b32.xlu0 %v406_v40, %s3040_s16  ;;  %v2353_v40 = vld [vmem:[%s3972_s0 + $0x8] sm:$0x3] }
 0x82d   :  { %440 = vrot.lane.b32.xlu0 %v431_v43, %s3041_s19 }
 0x89b   :  { %v434_v44 = vpop.permute.xlu0 %433  ;;  %v437_v45 = vpop.permute.xlu1 %436 }
 0x89c   :  { %v443_v46 = vsel %vm161_vm0, %v434_v44, %v437_v45 }
 0x89f   :  { %v441_v47 = vpop.permute.xlu0 %440 }
 0x8a0   :  { %v444_v48 = vsel %vm163_vm1, %v443_v46, %v441_v47 }
 0x8a1   :  { %2346 = vmatmul.mubr.msk.f32.vlgmr.msra.gmra.mrb[2].mxu1 %vm53_vm2, %v444_v48 }
 0x8a2   :  { %2593 = vmatpush1.bf16.msra.mxu1 %v3089_v8  ;;  %792 = vmatprep.mubr.f32.mxu1 %v3038_v3 }
 0x8a3   :  { %2595 = vmatprep.subr.bf16.mxu1 %v3091_v9 }
 0x8a6   :  { %2597 = vmatpush1.bf16.msra.mxu1 %v3108_v14 }
 0x8a7   :  { %2599 = vmatprep.subr.bf16.mxu1 %v3112_v15 }
 0x8aa   :  { %2601 = vmatpush1.bf16.msra.mxu1 %v3128_v20 }
 0x8ab   :  { %2603 = vmatprep.subr.bf16.mxu1 %v3132_v21 }
 0x8ae   :  { %2605 = vmatpush1.bf16.msra.mxu1 %v3148_v26 }
 0x8af   :  { %2607 = vmatprep.subr.bf16.mxu1 %v3152_v27 }
 0x8b2   :  { %2609 = vmatpush1.bf16.msra.mxu1 %v3168_v32 }
 0x8b3   :  { %2611 = vmatprep.subr.bf16.mxu1 %v3172_v33 }
 0x8b6   :  { %2613 = vmatpush1.bf16.msra.mxu1 %v3182_v36 }
 0x8b7   :  { %2639 = vmatprep.subr.bf16.mxu1 %v3078_v4 }
 0x974   :  { %v514_v49 = vpop.f32.mrb[2].mxu1 }
 0x975   :  { %v515_v51 = vadd.f32 %v514_v49, %v3211_v41  ;;  %v516_v52 = vpop.f32.mrb[3].mxu1 }
 0x976   :  { %v517_v53 = vadd.f32 %v516_v52, %v3244_v2 }
 0x977   :  { %v521_v54 = vadd.f32 %v2347_v50, %v515_v51 }
 0x978   :  { %v2350_v55 = vmul.f32 -1.442695, %v517_v53 }
 0x979   :  { %v2348_v56 = vmul.f32 -1.442695, %v521_v54 }
 0x97a   :  { %2888 = vpow2.f32 %v2350_v55 }
 0x97b   :  { %2890 = vpow2.f32 %v2348_v56 }
 0x984   :  { %v2889_v57 = vpop.eup %2888 }
 0x985   :  { %v2891_v58 = vpop.eup %2890  ;;  %v550_v59 = vadd.f32 1.0, %v2889_v57 }
 0x986   :  { %v525_v60 = vadd.f32 1.0, %v2891_v58 }
 0x987   :  { %2892 = vrcp.f32 %v550_v59 }
 0x988   :  { %2894 = vrcp.f32 %v525_v60 }
 0x991   :  { %v2893_v4 = vpop.eup %2892 }
 0x992   :  { %v2895_v61 = vpop.eup %2894  ;;  %v553_v62 = vmul.f32 2.0, %v2893_v4  ;;  %v555_v12 = vmul.f32 %v2893_v4, %v3294_v30 }
 0x993   :  { %v528_v63 = vmul.f32 2.0, %v2895_v61  ;;  %v530_v16 = vmul.f32 %v2895_v61, %v3296_v34 }
 0x994   :  { %v2351_v0 = vadd.f32 -1.0, %v553_v62 }
 0x995   :  { %v2349_v5 = vadd.f32 -1.0, %v528_v63 }
 0x996   :  { %557 = vrot.lane.b32.xlu0 %v2351_v0, %s3039_s15 }
 0x997   :  { %532 = vrot.lane.b32.xlu1 %v2349_v5, %s3039_s15 }
 0xa08   :  { %v558_v6 = vpop.permute.xlu0 %557 }
 0xa09   :  { %v560_v7 = vmul.f32 %v2893_v4, %v558_v6  ;;  %v533_v10 = vpop.permute.xlu1 %532 }
 0xa0a   :  { %v535_v11 = vmul.f32 %v2895_v61, %v533_v10 }
 0xa0b   :  { %562 = vrot.lane.b32.xlu0 %v560_v7, %s3040_s16 }
 0xa0c   :  { %537 = vrot.lane.b32.xlu1 %v535_v11, %s3040_s16 }
 0xa7d   :  { %v563_v13 = vpop.permute.xlu0 %562 }
 0xa7e   :  { %v3332_v17 = vadd.f32 %v563_v13, %v555_v12  ;;  %v538_v18 = vpop.permute.xlu1 %537 }
 0xa7f   :  { %v3334_v19 = vadd.f32 %v538_v18, %v530_v16 }
 0xa80   :  { %2896 = vtanh.f32 %v3332_v17 }
 0xa81   :  { %2898 = vtanh.f32 %v3334_v19 }
 0xa8a   :  { %v2897_v22 = vpop.eup %2896 }
 0xa8b   :  { %v2899_v23 = vpop.eup %2898  ;;  %568 = vrot.lane.b32.xlu0 %v2897_v22, %s3039_s15 }
 0xa8c   :  { %543 = vrot.lane.b32.xlu1 %v2899_v23, %s3039_s15 }
 0xafd   :  { %v569_v28 = vpop.permute.xlu0 %568 }
 0xafe   :  { %v544_v24 = vpop.permute.xlu1 %543  ;;  %v571_v29 = vmul.f32 %v2893_v4, %v569_v28 }
 0xaff   :  { %v546_v25 = vmul.f32 %v2895_v61, %v544_v24 }
 0xb01   :  { %576 = vrot.lane.b32.xlu0 %v546_v25, %s3039_s15  ;;  %573 = vrot.lane.b32.xlu1 %v546_v25, %s3040_s16 }
 0xb05   :  { %580 = vrot.lane.b32.xlu1 %v571_v29, %s3041_s19 }
 0xb73   :  { %v574_v30 = vpop.permute.xlu1 %573  ;;  %v577_v31 = vpop.permute.xlu0 %576 }
 0xb74   :  { %v583_v34 = vsel %vm161_vm0, %v574_v30, %v577_v31 }
 0xb77   :  { %v581_v35 = vpop.permute.xlu1 %580 }
 0xb78   :  { %v584_v37 = vsel %vm163_vm1, %v583_v34, %v581_v35 }
 0xb79   :  { %2352 = vmatmul.mubr.msk.f32.vlgmr.msra.gmra.mrb[4].mxu0 %vm53_vm2, %v584_v37 }
 0xb7a   :  { %2617 = vmatpush1.bf16.msra.mxu0 %v3089_v8  ;;  %932 = vmatprep.mubr.f32.mxu0 %v3038_v3 }
 0xb7b   :  { %2619 = vmatprep.subr.bf16.mxu0 %v3091_v9 }
 0xb7e   :  { %2621 = vmatpush1.bf16.msra.mxu0 %v3108_v14 }
 0xb7f   :  { %2623 = vmatprep.subr.bf16.mxu0 %v3112_v15 }
 0xb82   :  { %2625 = vmatpush1.bf16.msra.mxu0 %v3128_v20 }
 0xb83   :  { %2627 = vmatprep.subr.bf16.mxu0 %v3132_v21 }
 0xb86   :  { %2629 = vmatpush1.bf16.msra.mxu0 %v3148_v26 }
 0xb87   :  { %2631 = vmatprep.subr.bf16.mxu0 %v3152_v27 }
 0xb8a   :  { %2633 = vmatpush1.bf16.msra.mxu0 %v3168_v32 }
 0xb8b   :  { %2635 = vmatprep.subr.bf16.mxu0 %v3172_v33 }
 0xb8e   :  { %2637 = vmatpush1.bf16.msra.mxu0 %v3182_v36 }
 0xc4c   :  { %v654_v38 = vpop.f32.mrb[4].mxu0 }
 0xc4d   :  { %v655_v42 = vadd.f32 %v654_v38, %v3211_v41  ;;  %v656_v43 = vpop.f32.mrb[5].mxu0 }
 0xc4e   :  { %v657_v44 = vadd.f32 %v656_v43, %v3244_v2 }
 0xc4f   :  { %v661_v45 = vadd.f32 %v2353_v40, %v655_v42 }
 0xc50   :  { %v2356_v46 = vmul.f32 -1.442695, %v657_v44 }
 0xc51   :  { %v2354_v47 = vmul.f32 -1.442695, %v661_v45 }
 0xc52   :  { %2900 = vpow2.f32 %v2356_v46 }
 0xc53   :  { %2902 = vpow2.f32 %v2354_v47 }
 0xc5c   :  { %v2901_v48 = vpop.eup %2900 }
 0xc5d   :  { %v2903_v49 = vpop.eup %2902  ;;  %v690_v50 = vadd.f32 1.0, %v2901_v48 }
 0xc5e   :  { %v665_v51 = vadd.f32 1.0, %v2903_v49 }
 0xc5f   :  { %2904 = vrcp.f32 %v690_v50 }
 0xc60   :  { %2906 = vrcp.f32 %v665_v51 }
 0xc69   :  { %v2905_v52 = vpop.eup %2904 }
 0xc6a   :  { %v2907_v53 = vpop.eup %2906  ;;  %v693_v54 = vmul.f32 2.0, %v2905_v52  ;;  %v695_v61 = vmul.f32 %v2905_v52, %v3332_v17 }
 0xc6b   :  { %v668_v55 = vmul.f32 2.0, %v2907_v53  ;;  %v670_v63 = vmul.f32 %v2907_v53, %v3334_v19 }
 0xc6c   :  { %v2357_v56 = vadd.f32 -1.0, %v693_v54 }
 0xc6d   :  { %v2355_v57 = vadd.f32 -1.0, %v668_v55 }
 0xc6e   :  { %697 = vrot.lane.b32.xlu1 %v2357_v56, %s3039_s15 }
 0xc6f   :  { %672 = vrot.lane.b32.xlu0 %v2355_v57, %s3039_s15 }
 0xce0   :  { %v698_v58 = vpop.permute.xlu1 %697 }
 0xce1   :  { %v700_v59 = vmul.f32 %v2905_v52, %v698_v58  ;;  %v673_v60 = vpop.permute.xlu0 %672 }
 0xce2   :  { %v675_v4 = vmul.f32 %v2907_v53, %v673_v60  ;;  %v2365_v60 = vld [vmem:[%s3972_s0 + $0xc] sm:$0x3] }
 0xce3   :  { %702 = vrot.lane.b32.xlu1 %v700_v59, %s3040_s16 }
 0xce4   :  { %677 = vrot.lane.b32.xlu0 %v675_v4, %s3040_s16 }
 0xd55   :  { %v703_v62 = vpop.permute.xlu1 %702 }
 0xd56   :  { %v3369_v0 = vadd.f32 %v703_v62, %v695_v61  ;;  %v678_v5 = vpop.permute.xlu0 %677 }
 0xd57   :  { %v3371_v6 = vadd.f32 %v678_v5, %v670_v63 }
 0xd58   :  { %2908 = vtanh.f32 %v3369_v0 }
 0xd59   :  { %2910 = vtanh.f32 %v3371_v6 }
 0xd62   :  { %v2909_v7 = vpop.eup %2908 }
 0xd63   :  { %v2911_v10 = vpop.eup %2910  ;;  %708 = vrot.lane.b32.xlu1 %v2909_v7, %s3039_s15 }
 0xd64   :  { %683 = vrot.lane.b32.xlu0 %v2911_v10, %s3039_s15 }
 0xdd5   :  { %v709_v13 = vpop.permute.xlu1 %708 }
 0xdd6   :  { %v684_v11 = vpop.permute.xlu0 %683  ;;  %v711_v16 = vmul.f32 %v2905_v52, %v709_v13 }
 0xdd7   :  { %v686_v12 = vmul.f32 %v2907_v53, %v684_v11 }
 0xdd9   :  { %716 = vrot.lane.b32.xlu1 %v686_v12, %s3039_s15  ;;  %713 = vrot.lane.b32.xlu0 %v686_v12, %s3040_s16 }
 0xddd   :  { %720 = vrot.lane.b32.xlu0 %v711_v16, %s3041_s19 }
 0xe4b   :  { %v714_v17 = vpop.permute.xlu0 %713  ;;  %v717_v18 = vpop.permute.xlu1 %716 }
 0xe4c   :  { %v723_v19 = vsel %vm161_vm0, %v714_v17, %v717_v18 }
 0xe4f   :  { %v721_v22 = vpop.permute.xlu0 %720 }
 0xe50   :  { %v724_v23 = vsel %vm163_vm1, %v723_v19, %v721_v22 }
 0xe51   :  { %2358 = vmatmul.mubr.msk.f32.vlgmr.msra.gmra.mrb[4].mxu1 %vm53_vm2, %v724_v23 }
 0xe52   :  { %2641 = vmatpush1.bf16.msra.mxu1 %v3089_v8  ;;  %1072 = vmatprep.mubr.f32.mxu1 %v3038_v3 }
 0xe53   :  { %2643 = vmatprep.subr.bf16.mxu1 %v3091_v9  ;;  %v2359_v9 = vld [vmem:[%s3972_s0 + $0xa] sm:$0x3] }
 0xe56   :  { %2645 = vmatpush1.bf16.msra.mxu1 %v3108_v14 }
 0xe57   :  { %2647 = vmatprep.subr.bf16.mxu1 %v3112_v15 }
 0xe5a   :  { %2649 = vmatpush1.bf16.msra.mxu1 %v3128_v20 }
 0xe5b   :  { %2651 = vmatprep.subr.bf16.mxu1 %v3132_v21 }
 0xe5e   :  { %2653 = vmatpush1.bf16.msra.mxu1 %v3148_v26 }
 0xe5f   :  { %2655 = vmatprep.subr.bf16.mxu1 %v3152_v27 }
 0xe62   :  { %2657 = vmatpush1.bf16.msra.mxu1 %v3168_v32 }
 0xe63   :  { %2659 = vmatprep.subr.bf16.mxu1 %v3172_v33 }
 0xe66   :  { %2661 = vmatpush1.bf16.msra.mxu1 %v3182_v36 }
 0xf24   :  { %v794_v8 = vpop.f32.mrb[4].mxu1 }
 0xf25   :  { %v795_v14 = vadd.f32 %v794_v8, %v3211_v41  ;;  %v796_v15 = vpop.f32.mrb[5].mxu1 }
 0xf26   :  { %v797_v20 = vadd.f32 %v796_v15, %v3244_v2 }
 0xf27   :  { %v801_v21 = vadd.f32 %v2359_v9, %v795_v14 }
 0xf28   :  { %v2362_v26 = vmul.f32 -1.442695, %v797_v20 }
 0xf29   :  { %v2360_v24 = vmul.f32 -1.442695, %v801_v21 }
 0xf2a   :  { %2912 = vpow2.f32 %v2362_v26 }
 0xf2b   :  { %2914 = vpow2.f32 %v2360_v24 }
 0xf34   :  { %v2913_v27 = vpop.eup %2912 }
 0xf35   :  { %v2915_v32 = vpop.eup %2914  ;;  %v830_v33 = vadd.f32 1.0, %v2913_v27 }
 0xf36   :  { %v805_v25 = vadd.f32 1.0, %v2915_v32 }
 0xf37   :  { %2916 = vrcp.f32 %v830_v33 }
 0xf38   :  { %2918 = vrcp.f32 %v805_v25 }
 0xf41   :  { %v2917_v36 = vpop.eup %2916 }
 0xf42   :  { %v2919_v28 = vpop.eup %2918  ;;  %v833_v29 = vmul.f32 2.0, %v2917_v36  ;;  %v835_v42 = vmul.f32 %v2917_v36, %v3369_v0 }
 0xf43   :  { %v808_v30 = vmul.f32 2.0, %v2919_v28  ;;  %v810_v44 = vmul.f32 %v2919_v28, %v3371_v6 }
 0xf44   :  { %v2363_v31 = vadd.f32 -1.0, %v833_v29 }
 0xf45   :  { %v2361_v34 = vadd.f32 -1.0, %v808_v30 }
 0xf46   :  { %837 = vrot.lane.b32.xlu0 %v2363_v31, %s3039_s15 }
 0xf47   :  { %812 = vrot.lane.b32.xlu1 %v2361_v34, %s3039_s15 }
 0xfb8   :  { %v838_v35 = vpop.permute.xlu0 %837 }
 0xfb9   :  { %v840_v37 = vmul.f32 %v2917_v36, %v838_v35  ;;  %v813_v38 = vpop.permute.xlu1 %812 }
 0xfba   :  { %v815_v40 = vmul.f32 %v2919_v28, %v813_v38  ;;  %v2371_v38 = vld [vmem:[%s3972_s0 + $0xe] sm:$0x3] }
 0xfbb   :  { %842 = vrot.lane.b32.xlu0 %v840_v37, %s3040_s16 }
 0xfbc   :  { %817 = vrot.lane.b32.xlu1 %v815_v40, %s3040_s16 }
0x102d   :  { %v843_v43 = vpop.permute.xlu0 %842 }
0x102e   :  { %v845_v45 = vadd.f32 %v843_v43, %v835_v42  ;;  %v818_v46 = vpop.permute.xlu1 %817 }
0x102f   :  { %v820_v47 = vadd.f32 %v818_v46, %v810_v44 }
0x1030   :  { %2920 = vtanh.f32 %v845_v45 }
0x1031   :  { %2922 = vtanh.f32 %v820_v47 }
0x103a   :  { %v2921_v48 = vpop.eup %2920 }
0x103b   :  { %v2923_v49 = vpop.eup %2922  ;;  %848 = vrot.lane.b32.xlu0 %v2921_v48, %s3039_s15 }
0x103c   :  { %823 = vrot.lane.b32.xlu1 %v2923_v49, %s3039_s15 }
0x10ad   :  { %v849_v52 = vpop.permute.xlu0 %848 }
0x10ae   :  { %v824_v50 = vpop.permute.xlu1 %823  ;;  %v851_v53 = vmul.f32 %v2917_v36, %v849_v52 }
0x10af   :  { %v826_v51 = vmul.f32 %v2919_v28, %v824_v50 }
0x10b1   :  { %856 = vrot.lane.b32.xlu0 %v826_v51, %s3039_s15  ;;  %853 = vrot.lane.b32.xlu1 %v826_v51, %s3040_s16 }
0x10b5   :  { %860 = vrot.lane.b32.xlu1 %v851_v53, %s3041_s19 }
0x1123   :  { %v854_v54 = vpop.permute.xlu1 %853  ;;  %v857_v55 = vpop.permute.xlu0 %856 }
0x1124   :  { %v863_v56 = vsel %vm161_vm0, %v854_v54, %v857_v55 }
0x1127   :  { %v861_v57 = vpop.permute.xlu1 %860 }
0x1128   :  { %v864_v58 = vsel %vm163_vm1, %v863_v56, %v861_v57 }
0x1129   :  { %2364 = vmatmul.mubr.msk.f32.vlgmr.msra.gmra.mrb[6].mxu0 %vm53_vm2, %v864_v58 }
0x112a   :  { %1250 = vmatprep.mubr.f32.mxu0 %v3038_v3 }
0x11fc   :  { %v934_v59 = vpop.f32.mrb[6].mxu0 }
0x11fd   :  { %v935_v4 = vadd.f32 %v934_v59, %v3211_v41  ;;  %v936_v61 = vpop.f32.mrb[7].mxu0 }
0x11fe   :  { %v937_v62 = vadd.f32 %v936_v61, %v3244_v2 }
0x11ff   :  { %v941_v63 = vadd.f32 %v2365_v60, %v935_v4 }
0x1200   :  { %v2368_v0 = vmul.f32 -1.442695, %v937_v62 }
0x1201   :  { %v2366_v5 = vmul.f32 -1.442695, %v941_v63 }
0x1202   :  { %2924 = vpow2.f32 %v2368_v0  ;;  %v2377_v0 = vld [vmem:[%s3970_s2 + $0xc8] sm:$0xff] }
0x1203   :  { %2926 = vpow2.f32 %v2366_v5  ;;  %v2379_v5 = vld [vmem:[%s3970_s2 + $0xd8] sm:$0xff] }
0x120c   :  { %v2925_v6 = vpop.eup %2924 }
0x120d   :  { %v2927_v7 = vpop.eup %2926  ;;  %v970_v10 = vadd.f32 1.0, %v2925_v6  ;;  %v2376_v6 = vld [vmem:[%s3970_s2 + $0xc0] sm:$0xff] }
0x120e   :  { %v945_v11 = vadd.f32 1.0, %v2927_v7  ;;  %v2662_v7 = vpack.c.bf16 %v2379_v5, %v2377_v0 }
0x120f   :  { %2928 = vrcp.f32 %v970_v10  ;;  %v2378_v10 = vld [vmem:[%s3970_s2 + $0xd0] sm:$0xff] }
0x1210   :  { %2930 = vrcp.f32 %v945_v11  ;;  %v2381_v11 = vld [vmem:[%s3970_s2 + $0xe8] sm:$0xff]  ;;  %2663 = vmatprep.subr.bf16.mxu0 %v2662_v7 }
0x1219   :  { %v2929_v12 = vpop.eup %2928 }
0x121a   :  { %v2931_v13 = vpop.eup %2930  ;;  %v973_v16 = vmul.f32 2.0, %v2929_v12  ;;  %v975_v14 = vmul.f32 %v2929_v12, %v845_v45 }
0x121b   :  { %v948_v17 = vmul.f32 2.0, %v2931_v13  ;;  %v950_v20 = vmul.f32 %v2931_v13, %v820_v47 }
0x121c   :  { %v2369_v18 = vadd.f32 -1.0, %v973_v16 }
0x121d   :  { %v2367_v19 = vadd.f32 -1.0, %v948_v17  ;;  %v2380_v17 = vld [vmem:[%s3970_s2 + $0xe0] sm:$0xff] }
0x121e   :  { %977 = vrot.lane.b32.xlu1 %v2369_v18, %s3039_s15  ;;  %v2382_v18 = vld [vmem:[%s3970_s2 + $0xf0] sm:$0xff] }
0x121f   :  { %952 = vrot.lane.b32.xlu0 %v2367_v19, %s3039_s15  ;;  %v2385_v19 = vld [vmem:[%s3970_s2 + $0x108] sm:$0xff] }
0x1290   :  { %v978_v22 = vpop.permute.xlu1 %977 }
0x1291   :  { %v980_v23 = vmul.f32 %v2929_v12, %v978_v22  ;;  %v953_v8 = vpop.permute.xlu0 %952  ;;  %v2387_v22 = vld [vmem:[%s3970_s2 + $0x118] sm:$0xff] }
0x1292   :  { %v955_v9 = vmul.f32 %v2931_v13, %v953_v8 }
0x1293   :  { %982 = vrot.lane.b32.xlu1 %v980_v23, %s3040_s16  ;;  %v2668_v23 = vpack.c.bf16 %v2382_v18, %v2380_v17 }
0x1294   :  { %957 = vrot.lane.b32.xlu0 %v955_v9, %s3040_s16  ;;  %v2670_v9 = vpack.c.bf16 %v2387_v22, %v2385_v19 }
0x1305   :  { %v983_v15 = vpop.permute.xlu1 %982 }
0x1306   :  { %v985_v21 = vadd.f32 %v983_v15, %v975_v14  ;;  %v958_v26 = vpop.permute.xlu0 %957  ;;  %v2384_v14 = vld [vmem:[%s3970_s2 + $0x100] sm:$0xff]  ;;  %v2386_v15 = vld [vmem:[%s3970_s2 + $0x110] sm:$0xff] }
0x1307   :  { %v960_v24 = vadd.f32 %v958_v26, %v950_v20  ;;  %v2391_v26 = vld [vmem:[%s3970_s2 + $0x138] sm:$0xff] }
0x1308   :  { %2932 = vtanh.f32 %v985_v21 }
0x1309   :  { %2934 = vtanh.f32 %v960_v24 }
0x1312   :  { %v2933_v27 = vpop.eup %2932 }
0x1313   :  { %v2935_v32 = vpop.eup %2934  ;;  %988 = vrot.lane.b32.xlu1 %v2933_v27, %s3039_s15 }
0x1314   :  { %963 = vrot.lane.b32.xlu0 %v2935_v32, %s3039_s15  ;;  %v2388_v32 = vld [vmem:[%s3970_s2 + $0x120] sm:$0xff] }
0x1385   :  { %v989_v36 = vpop.permute.xlu1 %988 }
0x1386   :  { %v964_v33 = vpop.permute.xlu0 %963  ;;  %v991_v28 = vmul.f32 %v2929_v12, %v989_v36  ;;  %v2383_v12 = vld [vmem:[%s3970_s2 + $0xf8] sm:$0xff] }
0x1387   :  { %v966_v25 = vmul.f32 %v2931_v13, %v964_v33  ;;  %v2664_v13 = vpack.c.bf16 %v2378_v10, %v2376_v6  ;;  %v2666_v16 = vpack.c.bf16 %v2383_v12, %v2381_v11  ;;  %v2390_v33 = vld [vmem:[%s3970_s2 + $0x130] sm:$0xff]  ;;  %v2395_v36 = vld [vmem:[%s3970_s2 + $0x158] sm:$0xff] }
0x1389   :  { %996 = vrot.lane.b32.xlu1 %v966_v25, %s3039_s15  ;;  %993 = vrot.lane.b32.xlu0 %v966_v25, %s3040_s16  ;;  %v2393_v25 = vld [vmem:[%s3970_s2 + $0x148] sm:$0xff] }
0x138a   :  { %2665 = vmatpush1.bf16.msra.mxu0 %v2664_v13 }
0x138b   :  { %2667 = vmatprep.subr.bf16.mxu0 %v2666_v16 }
0x138d   :  { %1000 = vrot.lane.b32.xlu0 %v991_v28, %s3041_s19  ;;  %v2676_v28 = vpack.c.bf16 %v2390_v33, %v2388_v32  ;;  %v2413_v32 = vld [vmem:[%s3970_s2 + $0x1b8] sm:$0xff] }
0x138e   :  { %2669 = vmatpush1.bf16.msra.mxu0 %v2668_v23 }
0x138f   :  { %2671 = vmatprep.subr.bf16.mxu0 %v2670_v9 }
0x13fb   :  { %v994_v29 = vpop.permute.xlu0 %993  ;;  %v997_v30 = vpop.permute.xlu1 %996 }
0x13fc   :  { %v1003_v31 = vsel %vm161_vm0, %v994_v29, %v997_v30  ;;  %v2678_v29 = vpack.c.bf16 %v2395_v36, %v2393_v25  ;;  %v2392_v30 = vld [vmem:[%s3970_s2 + $0x140] sm:$0xff] }
0x13fd   :  { %v2410_v36 = vld [vmem:[%s3970_s2 + $0x1a0] sm:$0xff] }
0x13ff   :  { %v1001_v34 = vpop.permute.xlu0 %1000 }
0x1400   :  { %v1004_v35 = vsel %vm163_vm1, %v1003_v31, %v1001_v34  ;;  %v2394_v31 = vld [vmem:[%s3970_s2 + $0x150] sm:$0xff] }
0x1401   :  { %2370 = vmatmul.mubr.msk.f32.vlgmr.msra.gmra.mrb[6].mxu1 %vm53_vm2, %v1004_v35  ;;  %v2680_v34 = vpack.c.bf16 %v2394_v31, %v2392_v30  ;;  %v2397_v35 = vld [vmem:[%s3970_s2 + $0x168] sm:$0xff]  ;;  %v2417_v30 = vld [vmem:[%s3970_s2 + $0x1d8] sm:$0xff] }
0x1402   :  { %1427 = vmatprep.mubr.f32.mxu1 %v3038_v3 }
0x14d4   :  { %v1074_v37 = vpop.f32.mrb[6].mxu1 }
0x14d5   :  { %v1075_v40 = vadd.f32 %v1074_v37, %v3211_v41  ;;  %v1076_v42 = vpop.f32.mrb[7].mxu1  ;;  %v2399_v37 = vld [vmem:[%s3970_s2 + $0x178] sm:$0xff] }
0x14d6   :  { %v1077_v43 = vadd.f32 %v1076_v42, %v3244_v2  ;;  %v2398_v42 = vld [vmem:[%s3970_s2 + $0x170] sm:$0xff] }
0x14d7   :  { %v1081_v44 = vadd.f32 %v2371_v38, %v1075_v40  ;;  %v2682_v38 = vpack.c.bf16 %v2399_v37, %v2397_v35  ;;  %v2396_v40 = vld [vmem:[%s3970_s2 + $0x160] sm:$0xff] }
0x14d8   :  { %v2374_v45 = vmul.f32 -1.442695, %v1077_v43  ;;  %v2684_v43 = vpack.c.bf16 %v2398_v42, %v2396_v40  ;;  %v2414_v37 = vld [vmem:[%s3970_s2 + $0x1c0] sm:$0xff]  ;;  %v2419_v42 = vld [vmem:[%s3970_s2 + $0x1e8] sm:$0xff] }
0x14d9   :  { %v2372_v46 = vmul.f32 -1.442695, %v1081_v44 }
0x14da   :  { %2936 = vpow2.f32 %v2374_v45 }
0x14db   :  { %2938 = vpow2.f32 %v2372_v46 }
0x14e4   :  { %v2937_v47 = vpop.eup %2936 }
0x14e5   :  { %v2939_v48 = vpop.eup %2938  ;;  %v1110_v49 = vadd.f32 1.0, %v2937_v47 }
0x14e6   :  { %v1085_v50 = vadd.f32 1.0, %v2939_v48 }
0x14e7   :  { %2940 = vrcp.f32 %v1110_v49 }
0x14e8   :  { %2942 = vrcp.f32 %v1085_v50 }
0x14f1   :  { %v3438_v51 = vpop.eup %2940 }
0x14f2   :  { %v3440_v52 = vpop.eup %2942  ;;  %v1113_v41 = vmul.f32 2.0, %v3438_v51  ;;  %v1115_v59 = vmul.f32 %v3438_v51, %v985_v21  ;;  %v2389_v21 = vld [vmem:[%s3970_s2 + $0x128] sm:$0xff] }
0x14f3   :  { %v1088_v53 = vmul.f32 2.0, %v3440_v52  ;;  %v1090_v4 = vmul.f32 %v3440_v52, %v960_v24  ;;  %v2672_v24 = vpack.c.bf16 %v2386_v15, %v2384_v14  ;;  %v2674_v27 = vpack.c.bf16 %v2391_v26, %v2389_v21  ;;  %v2407_v21 = vld [vmem:[%s3970_s2 + $0x188] sm:$0xff] }
0x14f4   :  { %v2375_v2 = vadd.f32 -1.0, %v1113_v41 }
0x14f5   :  { %v2373_v54 = vadd.f32 -1.0, %v1088_v53  ;;  %2673 = vmatpush1.bf16.msra.mxu0 %v2672_v24  ;;  %v2408_v24 = vld [vmem:[%s3970_s2 + $0x190] sm:$0xff] }
0x14f6   :  { %1117 = vrot.lane.b32.xlu0 %v2375_v2, %s3039_s15  ;;  %2675 = vmatprep.subr.bf16.mxu0 %v2674_v27  ;;  %v2411_v27 = vld [vmem:[%s3970_s2 + $0x1a8] sm:$0xff] }
0x14f7   :  { %1092 = vrot.lane.b32.xlu1 %v2373_v54, %s3039_s15  ;;  %v3593_v25 = vpack.c.bf16 %v2413_v32, %v2411_v27 }
0x14f9   :  { %2677 = vmatpush1.bf16.msra.mxu0 %v2676_v28  ;;  %v2412_v28 = vld [vmem:[%s3970_s2 + $0x1b0] sm:$0xff] }
0x14fa   :  { %2679 = vmatprep.subr.bf16.mxu0 %v2678_v29  ;;  %v2415_v29 = vld [vmem:[%s3970_s2 + $0x1c8] sm:$0xff]  ;;  %v3610_v31 = vpack.c.bf16 %v2412_v28, %v2410_v36 }
0x14fb   :  { %v3614_v35 = vpack.c.bf16 %v2417_v30, %v2415_v29 }
0x14fd   :  { %2681 = vmatpush1.bf16.msra.mxu0 %v2680_v34 }
0x14fe   :  { %2683 = vmatprep.subr.bf16.mxu0 %v2682_v38  ;;  %v2416_v38 = vld [vmem:[%s3970_s2 + $0x1d0] sm:$0xff] }
0x1501   :  { %2685 = vmatpush1.bf16.msra.mxu0 %v2684_v43  ;;  %v2421_v43 = vld [vmem:[%s3970_s2 + $0x1f8] sm:$0xff] }
0x1568   :  { %v1118_v55 = vpop.permute.xlu0 %1117 }
0x1569   :  { %v1120_v56 = vmul.f32 %v3438_v51, %v1118_v55  ;;  %v1093_v57 = vpop.permute.xlu1 %1092  ;;  %v1257_v55 = vld [vmem:[%s3973_s1] sm:$0x3] }
0x156a   :  { %v1095_v58 = vmul.f32 %v3440_v52, %v1093_v57 }
0x156b   :  { %1122 = vrot.lane.b32.xlu0 %v1120_v56, %s3040_s16 }
0x156c   :  { %1097 = vrot.lane.b32.xlu1 %v1095_v58, %s3040_s16 }
0x15dd   :  { %v1123_v60 = vpop.permute.xlu0 %1122 }
0x15de   :  { %v3452_v61 = vadd.f32 %v1123_v60, %v1115_v59  ;;  %v1098_v62 = vpop.permute.xlu1 %1097 }
0x15df   :  { %v3454_v63 = vadd.f32 %v1098_v62, %v1090_v4 }
0x15e0   :  { %2944 = vtanh.f32 %v3452_v61 }
0x15e1   :  { %2946 = vtanh.f32 %v3454_v63 }
0x15ea   :  { %v2945_v8 = vpop.eup %2944 }
0x15eb   :  { %v2947_v20 = vpop.eup %2946  ;;  %1128 = vrot.lane.b32.xlu0 %v2945_v8, %s3039_s15 }
0x15ec   :  { %1103 = vrot.lane.b32.xlu1 %v2947_v20, %s3039_s15 }
0x165d   :  { %v1129_v46 = vpop.permute.xlu0 %1128 }
0x165e   :  { %v1104_v44 = vpop.permute.xlu1 %1103  ;;  %v1131_v47 = vmul.f32 %v3438_v51, %v1129_v46  ;;  %v2418_v46 = vld [vmem:[%s3970_s2 + $0x1e0] sm:$0xff] }
0x165f   :  { %v1106_v45 = vmul.f32 %v3440_v52, %v1104_v44  ;;  %v2400_v52 = vld [vmem:[%s3971_s3 + $0x2] sm:$0x3]  ;;  %v3632_v44 = vpack.c.bf16 %v2416_v38, %v2414_v37 }
0x1660   :  { %v1176_v2 = vrot.slane %v2400_v52, %v3205_v39  ;;  %v1180_v51 = vrot.slane %v2400_v52, %v3241_v1  ;;  %v2424_v52 = vld [vmem:[%s3970_s2 + $0x210] sm:$0xff] }
0x1661   :  { %1136 = vrot.lane.b32.xlu0 %v1106_v45, %s3039_s15  ;;  %1133 = vrot.lane.b32.xlu1 %v1106_v45, %s3040_s16  ;;  %v3636_v45 = vpack.c.bf16 %v2421_v43, %v2419_v42 }
0x1665   :  { %1140 = vrot.lane.b32.xlu1 %v1131_v47, %s3041_s19  ;;  %v2420_v47 = vld [vmem:[%s3970_s2 + $0x1f0] sm:$0xff] }
0x16d3   :  { %v1134_v48 = vpop.permute.xlu1 %1133  ;;  %v1137_v49 = vpop.permute.xlu0 %1136 }
0x16d4   :  { %v1143_v50 = vsel %vm161_vm0, %v1134_v48, %v1137_v49  ;;  %v2423_v48 = vld [vmem:[%s3970_s2 + $0x208] sm:$0xff]  ;;  %v2425_v49 = vld [vmem:[%s3970_s2 + $0x218] sm:$0xff] }
0x16d7   :  { %v1141_v41 = vpop.permute.xlu1 %1140 }
0x16d8   :  { %v1144_v53 = vsel %vm163_vm1, %v1143_v50, %v1141_v41  ;;  %v3652_v50 = vpack.c.bf16 %v2420_v47, %v2418_v46  ;;  %v3656_v41 = vpack.c.bf16 %v2425_v49, %v2423_v48 }
0x16d9   :  { %2401 = vmatmul.mubr.msk.f32.vlgmr.msra.gmra.mrb[8].mxu0 %vm53_vm2, %v1144_v53  ;;  %v2422_v53 = vld [vmem:[%s3970_s2 + $0x200] sm:$0xff] }
0x16da   :  { %1567 = vmatprep.mubr.f32.mxu0 %v3038_v3 }
0x17ac   :  { %v1252_v54 = vpop.f32.mrb[8].mxu0 }
0x17ad   :  { %v1253_v56 = vadd.f32 %v1252_v54, %v1176_v2  ;;  %v1254_v57 = vpop.f32.mrb[9].mxu0  ;;  %v3666_v2 = vpack.c.bf16 %v2424_v52, %v2422_v53  ;;  %v2429_v54 = vld [vmem:[%s3970_s2 + $0x238] sm:$0xff] }
0x17ae   :  { %v1255_v58 = vadd.f32 %v1254_v57, %v1180_v51  ;;  %v2427_v51 = vld [vmem:[%s3970_s2 + $0x228] sm:$0xff]  ;;  %v2428_v57 = vld [vmem:[%s3970_s2 + $0x230] sm:$0xff] }
0x17af   :  { %v1258_v59 = vadd.f32 %v1257_v55, %v1253_v56  ;;  %v3679_v55 = vpack.c.bf16 %v2429_v54, %v2427_v51  ;;  %v2426_v56 = vld [vmem:[%s3970_s2 + $0x220] sm:$0xff] }
0x17b0   :  { %v2404_v60 = vmul.f32 -1.442695, %v1255_v58  ;;  %v3687_v58 = vpack.c.bf16 %v2428_v57, %v2426_v56 }
0x17b1   :  { %v2402_v4 = vmul.f32 -1.442695, %v1258_v59 }
0x17b2   :  { %2948 = vpow2.f32 %v2404_v60 }
0x17b3   :  { %2950 = vpow2.f32 %v2402_v4 }
0x17bc   :  { %v2949_v62 = vpop.eup %2948 }
0x17bd   :  { %v2951_v0 = vpop.eup %2950  ;;  %v1287_v5 = vadd.f32 1.0, %v2949_v62 }
0x17be   :  { %v1262_v6 = vadd.f32 1.0, %v2951_v0 }
0x17bf   :  { %2952 = vrcp.f32 %v1287_v5 }
0x17c0   :  { %2954 = vrcp.f32 %v1262_v6 }
0x17c9   :  { %v3549_v7 = vpop.eup %2952 }
0x17ca   :  { %v3551_v10 = vpop.eup %2954  ;;  %v1290_v11 = vmul.f32 2.0, %v3549_v7  ;;  %v1292_v23 = vmul.f32 %v3549_v7, %v3452_v61  ;;  %v2409_v61 = vld [vmem:[%s3970_s2 + $0x198] sm:$0xff] }
0x17cb   :  { %v1265_v12 = vmul.f32 2.0, %v3551_v10  ;;  %v1267_v9 = vmul.f32 %v3551_v10, %v3454_v63  ;;  %v2406_v63 = vld [vmem:[%s3970_s2 + $0x180] sm:$0xff]  ;;  %v3580_v26 = vpack.c.bf16 %v2409_v61, %v2407_v21 }
0x17cc   :  { %v2405_v13 = vadd.f32 -1.0, %v1290_v11  ;;  %v3591_v33 = vpack.c.bf16 %v2408_v24, %v2406_v63 }
0x17cd   :  { %v2403_v16 = vadd.f32 -1.0, %v1265_v12  ;;  %2687 = vmatprep.subr.bf16.mxu1 %v3580_v26  ;;  %2711 = vmatprep.subr.bf16.mxu0 %v3580_v26 }
0x17ce   :  { %1294 = vrot.lane.b32.xlu1 %v2405_v13, %s3039_s15  ;;  %2689 = vmatpush1.bf16.msra.mxu1 %v3591_v33 }
0x17cf   :  { %1269 = vrot.lane.b32.xlu0 %v2403_v16, %s3039_s15  ;;  %2713 = vmatpush1.bf16.msra.mxu0 %v3591_v33 }
0x17d0   :  { %2691 = vmatprep.subr.bf16.mxu1 %v3593_v25  ;;  %2715 = vmatprep.subr.bf16.mxu0 %v3593_v25 }
0x17d2   :  { %2693 = vmatpush1.bf16.msra.mxu1 %v3610_v31 }
0x17d3   :  { %2717 = vmatpush1.bf16.msra.mxu0 %v3610_v31  ;;  %2695 = vmatprep.subr.bf16.mxu1 %v3614_v35 }
0x17d4   :  { %2719 = vmatprep.subr.bf16.mxu0 %v3614_v35 }
0x17d6   :  { %2697 = vmatpush1.bf16.msra.mxu1 %v3632_v44 }
0x17d7   :  { %2721 = vmatpush1.bf16.msra.mxu0 %v3632_v44  ;;  %2699 = vmatprep.subr.bf16.mxu1 %v3636_v45 }
0x17d8   :  { %2723 = vmatprep.subr.bf16.mxu0 %v3636_v45 }
0x17da   :  { %2701 = vmatpush1.bf16.msra.mxu1 %v3652_v50 }
0x17db   :  { %2725 = vmatpush1.bf16.msra.mxu0 %v3652_v50  ;;  %2703 = vmatprep.subr.bf16.mxu1 %v3656_v41 }
0x17dc   :  { %2727 = vmatprep.subr.bf16.mxu0 %v3656_v41 }
0x17de   :  { %2705 = vmatpush1.bf16.msra.mxu1 %v3666_v2 }
0x17df   :  { %2729 = vmatpush1.bf16.msra.mxu0 %v3666_v2  ;;  %2707 = vmatprep.subr.bf16.mxu1 %v3679_v55 }
0x17e0   :  { %2731 = vmatprep.subr.bf16.mxu0 %v3679_v55 }
0x17e2   :  { %2709 = vmatpush1.bf16.msra.mxu1 %v3687_v58 }
0x17e3   :  { %2733 = vmatpush1.bf16.msra.mxu0 %v3687_v58  ;;  %2735 = vmatprep.subr.bf16.mxu1 %v3580_v26 }
0x17e4   :  { %2759 = vmatprep.subr.bf16.mxu0 %v3580_v26 }
0x1840   :  { %v1295_v17 = vpop.permute.xlu1 %1294 }
0x1841   :  { %v1297_v18 = vmul.f32 %v3549_v7, %v1295_v17  ;;  %v1270_v19 = vpop.permute.xlu0 %1269  ;;  %v2432_v17 = vld [vmem:[%s3973_s1 + $0x2] sm:$0x3] }
0x1842   :  { %v1272_v22 = vmul.f32 %v3551_v10, %v1270_v19 }
0x1843   :  { %1299 = vrot.lane.b32.xlu1 %v1297_v18, %s3040_s16 }
0x1844   :  { %1274 = vrot.lane.b32.xlu0 %v1272_v22, %s3040_s16 }
0x18b5   :  { %v1300_v8 = vpop.permute.xlu1 %1299 }
0x18b6   :  { %v3565_v14 = vadd.f32 %v1300_v8, %v1292_v23  ;;  %v1275_v15 = vpop.permute.xlu0 %1274 }
0x18b7   :  { %v3567_v20 = vadd.f32 %v1275_v15, %v1267_v9 }
0x18b8   :  { %2956 = vtanh.f32 %v3565_v14 }
0x18b9   :  { %2958 = vtanh.f32 %v3567_v20 }
0x18c2   :  { %v2957_v34 = vpop.eup %2956 }
0x18c3   :  { %v2959_v40 = vpop.eup %2958  ;;  %1305 = vrot.lane.b32.xlu1 %v2957_v34, %s3039_s15 }
0x18c4   :  { %1280 = vrot.lane.b32.xlu0 %v2959_v40, %s3039_s15 }
0x1935   :  { %v1306_v4 = vpop.permute.xlu1 %1305 }
0x1936   :  { %v1281_v59 = vpop.permute.xlu0 %1280  ;;  %v1308_v62 = vmul.f32 %v3549_v7, %v1306_v4  ;;  %v2430_v7 = vld [vmem:[%s3971_s3 + $0x4] sm:$0x3] }
0x1937   :  { %v1283_v60 = vmul.f32 %v3551_v10, %v1281_v59  ;;  %v3720_v10 = vrot.slane %v2430_v7, %v3205_v39  ;;  %v3723_v13 = vrot.slane %v2430_v7, %v3241_v1 }
0x1939   :  { %1313 = vrot.lane.b32.xlu1 %v1283_v60, %s3039_s15  ;;  %1310 = vrot.lane.b32.xlu0 %v1283_v60, %s3040_s16  ;;  %v2438_v60 = vld [vmem:[%s3973_s1 + $0x4] sm:$0x3] }
0x193d   :  { %1317 = vrot.lane.b32.xlu0 %v1308_v62, %s3041_s19 }
0x19ab   :  { %v1311_v0 = vpop.permute.xlu0 %1310  ;;  %v1314_v5 = vpop.permute.xlu1 %1313 }
0x19ac   :  { %v1320_v6 = vsel %vm161_vm0, %v1311_v0, %v1314_v5 }
0x19af   :  { %v1318_v11 = vpop.permute.xlu0 %1317 }
0x19b0   :  { %v1321_v12 = vsel %vm163_vm1, %v1320_v6, %v1318_v11 }
0x19b1   :  { %2431 = vmatmul.mubr.msk.f32.vlgmr.msra.gmra.mrb[8].mxu1 %vm53_vm2, %v1321_v12 }
0x19b2   :  { %2737 = vmatpush1.bf16.msra.mxu1 %v3591_v33  ;;  %1707 = vmatprep.mubr.f32.mxu1 %v3038_v3 }
0x19b3   :  { %2739 = vmatprep.subr.bf16.mxu1 %v3593_v25 }
0x19b6   :  { %2741 = vmatpush1.bf16.msra.mxu1 %v3610_v31 }
0x19b7   :  { %2743 = vmatprep.subr.bf16.mxu1 %v3614_v35 }
0x19ba   :  { %2745 = vmatpush1.bf16.msra.mxu1 %v3632_v44 }
0x19bb   :  { %2747 = vmatprep.subr.bf16.mxu1 %v3636_v45 }
0x19be   :  { %2749 = vmatpush1.bf16.msra.mxu1 %v3652_v50 }
0x19bf   :  { %2751 = vmatprep.subr.bf16.mxu1 %v3656_v41 }
0x19c2   :  { %2753 = vmatpush1.bf16.msra.mxu1 %v3666_v2 }
0x19c3   :  { %2755 = vmatprep.subr.bf16.mxu1 %v3679_v55 }
0x19c6   :  { %2757 = vmatpush1.bf16.msra.mxu1 %v3687_v58 }
0x19c7   :  { %2783 = vmatprep.subr.bf16.mxu1 %v3580_v26 }
0x1a84   :  { %v1429_v16 = vpop.f32.mrb[8].mxu1 }
0x1a85   :  { %v1430_v18 = vadd.f32 %v1429_v16, %v3720_v10  ;;  %v1431_v19 = vpop.f32.mrb[9].mxu1 }
0x1a86   :  { %v1432_v22 = vadd.f32 %v1431_v19, %v3723_v13 }
0x1a87   :  { %v1436_v23 = vadd.f32 %v2432_v17, %v1430_v18 }
0x1a88   :  { %v2435_v8 = vmul.f32 -1.442695, %v1432_v22 }
0x1a89   :  { %v2433_v9 = vmul.f32 -1.442695, %v1436_v23 }
0x1a8a   :  { %2960 = vpow2.f32 %v2435_v8 }
0x1a8b   :  { %2962 = vpow2.f32 %v2433_v9 }
0x1a94   :  { %v2961_v39 = vpop.eup %2960 }
0x1a95   :  { %v2963_v15 = vpop.eup %2962  ;;  %v1465_v21 = vadd.f32 1.0, %v2961_v39 }
0x1a96   :  { %v1440_v1 = vadd.f32 1.0, %v2963_v15 }
0x1a97   :  { %2964 = vrcp.f32 %v1465_v21 }
0x1a98   :  { %2966 = vrcp.f32 %v1440_v1 }
0x1aa1   :  { %v2965_v61 = vpop.eup %2964 }
0x1aa2   :  { %v2967_v63 = vpop.eup %2966  ;;  %v1468_v24 = vmul.f32 2.0, %v2965_v61  ;;  %v1470_v37 = vmul.f32 %v2965_v61, %v3565_v14 }
0x1aa3   :  { %v1443_v27 = vmul.f32 2.0, %v2967_v63  ;;  %v1445_v40 = vmul.f32 %v2967_v63, %v3567_v20 }
0x1aa4   :  { %v2436_v32 = vadd.f32 -1.0, %v1468_v24 }
0x1aa5   :  { %v2434_v36 = vadd.f32 -1.0, %v1443_v27 }
0x1aa6   :  { %1472 = vrot.lane.b32.xlu0 %v2436_v32, %s3039_s15 }
0x1aa7   :  { %1447 = vrot.lane.b32.xlu1 %v2434_v36, %s3039_s15 }
0x1b18   :  { %v1473_v28 = vpop.permute.xlu0 %1472 }
0x1b19   :  { %v1475_v29 = vmul.f32 %v2965_v61, %v1473_v28  ;;  %v1448_v30 = vpop.permute.xlu1 %1447 }
0x1b1a   :  { %v1450_v34 = vmul.f32 %v2967_v63, %v1448_v30 }
0x1b1b   :  { %1477 = vrot.lane.b32.xlu0 %v1475_v29, %s3040_s16 }
0x1b1c   :  { %1452 = vrot.lane.b32.xlu1 %v1450_v34, %s3040_s16 }
0x1b8d   :  { %v1478_v38 = vpop.permute.xlu0 %1477 }
0x1b8e   :  { %v3736_v42 = vadd.f32 %v1478_v38, %v1470_v37  ;;  %v1453_v43 = vpop.permute.xlu1 %1452 }
0x1b8f   :  { %v3738_v46 = vadd.f32 %v1453_v43, %v1445_v40 }
0x1b90   :  { %2968 = vtanh.f32 %v3736_v42 }
0x1b91   :  { %2970 = vtanh.f32 %v3738_v46 }
0x1b9a   :  { %v2969_v47 = vpop.eup %2968 }
0x1b9b   :  { %v2971_v48 = vpop.eup %2970  ;;  %1483 = vrot.lane.b32.xlu0 %v2969_v47, %s3039_s15 }
0x1b9c   :  { %1458 = vrot.lane.b32.xlu1 %v2971_v48, %s3039_s15 }
0x1c0d   :  { %v1484_v53 = vpop.permute.xlu0 %1483 }
0x1c0e   :  { %v1459_v49 = vpop.permute.xlu1 %1458  ;;  %v3746_v20 = vmul.f32 %v2965_v61, %v1484_v53 }
0x1c0f   :  { %v1461_v14 = vmul.f32 %v2967_v63, %v1459_v49  ;;  %v2444_v49 = vld [vmem:[%s3973_s1 + $0x6] sm:$0x3] }
0x1c11   :  { %1491 = vrot.lane.b32.xlu0 %v1461_v14, %s3039_s15  ;;  %1488 = vrot.lane.b32.xlu1 %v1461_v14, %s3040_s16 }
0x1c15   :  { %1495 = vrot.lane.b32.xlu1 %v3746_v20, %s3041_s19 }
0x1c83   :  { %v1489_v52 = vpop.permute.xlu1 %1488  ;;  %v1492_v51 = vpop.permute.xlu0 %1491 }
0x1c84   :  { %v1498_v54 = vsel %vm161_vm0, %v1489_v52, %v1492_v51 }
0x1c87   :  { %v1496_v56 = vpop.permute.xlu1 %1495 }
0x1c88   :  { %v1499_v57 = vsel %vm163_vm1, %v1498_v54, %v1496_v56 }
0x1c89   :  { %2437 = vmatmul.mubr.msk.f32.vlgmr.msra.gmra.mrb[10].mxu0 %vm53_vm2, %v1499_v57 }
0x1c8a   :  { %2761 = vmatpush1.bf16.msra.mxu0 %v3591_v33  ;;  %1847 = vmatprep.mubr.f32.mxu0 %v3038_v3 }
0x1c8b   :  { %2763 = vmatprep.subr.bf16.mxu0 %v3593_v25 }
0x1c8e   :  { %2765 = vmatpush1.bf16.msra.mxu0 %v3610_v31 }
0x1c8f   :  { %2767 = vmatprep.subr.bf16.mxu0 %v3614_v35 }
0x1c92   :  { %2769 = vmatpush1.bf16.msra.mxu0 %v3632_v44 }
0x1c93   :  { %2771 = vmatprep.subr.bf16.mxu0 %v3636_v45 }
0x1c96   :  { %2773 = vmatpush1.bf16.msra.mxu0 %v3652_v50 }
0x1c97   :  { %2775 = vmatprep.subr.bf16.mxu0 %v3656_v41 }
0x1c9a   :  { %2777 = vmatpush1.bf16.msra.mxu0 %v3666_v2 }
0x1c9b   :  { %2779 = vmatprep.subr.bf16.mxu0 %v3679_v55 }
0x1c9e   :  { %2781 = vmatpush1.bf16.msra.mxu0 %v3687_v58 }
0x1c9f   :  { %2807 = vmatprep.subr.bf16.mxu0 %v3580_v26 }
0x1d5c   :  { %v1569_v59 = vpop.f32.mrb[10].mxu0 }
0x1d5d   :  { %v1570_v4 = vadd.f32 %v1569_v59, %v3720_v10  ;;  %v1571_v62 = vpop.f32.mrb[11].mxu0 }
0x1d5e   :  { %v1572_v0 = vadd.f32 %v1571_v62, %v3723_v13 }
0x1d5f   :  { %v1576_v5 = vadd.f32 %v2438_v60, %v1570_v4 }
0x1d60   :  { %v2441_v6 = vmul.f32 -1.442695, %v1572_v0 }
0x1d61   :  { %v2439_v11 = vmul.f32 -1.442695, %v1576_v5 }
0x1d62   :  { %2972 = vpow2.f32 %v2441_v6 }
0x1d63   :  { %2974 = vpow2.f32 %v2439_v11 }
0x1d6c   :  { %v2973_v12 = vpop.eup %2972 }
0x1d6d   :  { %v2975_v7 = vpop.eup %2974  ;;  %v1605_v16 = vadd.f32 1.0, %v2973_v12 }
0x1d6e   :  { %v1580_v17 = vadd.f32 1.0, %v2975_v7 }
0x1d6f   :  { %2976 = vrcp.f32 %v1605_v16 }
0x1d70   :  { %2978 = vrcp.f32 %v1580_v17 }
0x1d79   :  { %v2977_v18 = vpop.eup %2976 }
0x1d7a   :  { %v2979_v19 = vpop.eup %2978  ;;  %v1608_v22 = vmul.f32 2.0, %v2977_v18  ;;  %v1610_v61 = vmul.f32 %v2977_v18, %v3736_v42 }
0x1d7b   :  { %v1583_v23 = vmul.f32 2.0, %v2979_v19  ;;  %v1585_v24 = vmul.f32 %v2979_v19, %v3738_v46 }
0x1d7c   :  { %v2442_v8 = vadd.f32 -1.0, %v1608_v22 }
0x1d7d   :  { %v2440_v9 = vadd.f32 -1.0, %v1583_v23 }
0x1d7e   :  { %1612 = vrot.lane.b32.xlu1 %v2442_v8, %s3039_s15 }
0x1d7f   :  { %1587 = vrot.lane.b32.xlu0 %v2440_v9, %s3039_s15 }
0x1df0   :  { %v1613_v39 = vpop.permute.xlu1 %1612 }
0x1df1   :  { %v1615_v15 = vmul.f32 %v2977_v18, %v1613_v39  ;;  %v1588_v21 = vpop.permute.xlu0 %1587 }
0x1df2   :  { %v1590_v1 = vmul.f32 %v2979_v19, %v1588_v21 }
0x1df3   :  { %1617 = vrot.lane.b32.xlu1 %v1615_v15, %s3040_s16 }
0x1df4   :  { %1592 = vrot.lane.b32.xlu0 %v1590_v1, %s3040_s16 }
0x1e65   :  { %v1618_v63 = vpop.permute.xlu1 %1617 }
0x1e66   :  { %v3777_v27 = vadd.f32 %v1618_v63, %v1610_v61  ;;  %v1593_v32 = vpop.permute.xlu0 %1592 }
0x1e67   :  { %v3779_v36 = vadd.f32 %v1593_v32, %v1585_v24 }
0x1e68   :  { %2980 = vtanh.f32 %v3777_v27 }
0x1e69   :  { %2982 = vtanh.f32 %v3779_v36 }
0x1e72   :  { %v2981_v28 = vpop.eup %2980 }
0x1e73   :  { %v2983_v29 = vpop.eup %2982  ;;  %1623 = vrot.lane.b32.xlu1 %v2981_v28, %s3039_s15 }
0x1e74   :  { %1598 = vrot.lane.b32.xlu0 %v2983_v29, %s3039_s15 }
0x1ee5   :  { %v1624_v37 = vpop.permute.xlu1 %1623 }
0x1ee6   :  { %v1599_v30 = vpop.permute.xlu0 %1598  ;;  %v3787_v38 = vmul.f32 %v2977_v18, %v1624_v37 }
0x1ee7   :  { %v1601_v34 = vmul.f32 %v2979_v19, %v1599_v30  ;;  %v2450_v30 = vld [vmem:[%s3973_s1 + $0x8] sm:$0x3] }
0x1ee9   :  { %1631 = vrot.lane.b32.xlu1 %v1601_v34, %s3039_s15  ;;  %1628 = vrot.lane.b32.xlu0 %v1601_v34, %s3040_s16 }
0x1eed   :  { %1635 = vrot.lane.b32.xlu0 %v3787_v38, %s3041_s19 }
0x1f5b   :  { %v1629_v40 = vpop.permute.xlu0 %1628  ;;  %v1632_v42 = vpop.permute.xlu1 %1631 }
0x1f5c   :  { %v1638_v43 = vsel %vm161_vm0, %v1629_v40, %v1632_v42 }
0x1f5f   :  { %v1636_v46 = vpop.permute.xlu0 %1635 }
0x1f60   :  { %v1639_v47 = vsel %vm163_vm1, %v1638_v43, %v1636_v46 }
0x1f61   :  { %2443 = vmatmul.mubr.msk.f32.vlgmr.msra.gmra.mrb[10].mxu1 %vm53_vm2, %v1639_v47 }
0x1f62   :  { %2785 = vmatpush1.bf16.msra.mxu1 %v3591_v33  ;;  %1987 = vmatprep.mubr.f32.mxu1 %v3038_v3 }
0x1f63   :  { %2787 = vmatprep.subr.bf16.mxu1 %v3593_v25 }
0x1f66   :  { %2789 = vmatpush1.bf16.msra.mxu1 %v3610_v31 }
0x1f67   :  { %2791 = vmatprep.subr.bf16.mxu1 %v3614_v35 }
0x1f6a   :  { %2793 = vmatpush1.bf16.msra.mxu1 %v3632_v44 }
0x1f6b   :  { %2795 = vmatprep.subr.bf16.mxu1 %v3636_v45 }
0x1f6e   :  { %2797 = vmatpush1.bf16.msra.mxu1 %v3652_v50 }
0x1f6f   :  { %2799 = vmatprep.subr.bf16.mxu1 %v3656_v41 }
0x1f72   :  { %2801 = vmatpush1.bf16.msra.mxu1 %v3666_v2 }
0x1f73   :  { %2803 = vmatprep.subr.bf16.mxu1 %v3679_v55 }
0x1f76   :  { %2805 = vmatpush1.bf16.msra.mxu1 %v3687_v58 }
0x1f77   :  { %2831 = vmatprep.subr.bf16.mxu1 %v3580_v26 }
0x2034   :  { %v1709_v48 = vpop.f32.mrb[10].mxu1 }
0x2035   :  { %v1710_v14 = vadd.f32 %v1709_v48, %v3720_v10  ;;  %v1711_v53 = vpop.f32.mrb[11].mxu1 }
0x2036   :  { %v1712_v52 = vadd.f32 %v1711_v53, %v3723_v13 }
0x2037   :  { %v1716_v51 = vadd.f32 %v2444_v49, %v1710_v14 }
0x2038   :  { %v2447_v54 = vmul.f32 -1.442695, %v1712_v52 }
0x2039   :  { %v2445_v56 = vmul.f32 -1.442695, %v1716_v51 }
0x203a   :  { %2984 = vpow2.f32 %v2447_v54 }
0x203b   :  { %2986 = vpow2.f32 %v2445_v56 }
0x2044   :  { %v2985_v57 = vpop.eup %2984 }
0x2045   :  { %v2987_v59 = vpop.eup %2986  ;;  %v1745_v60 = vadd.f32 1.0, %v2985_v57 }
0x2046   :  { %v1720_v4 = vadd.f32 1.0, %v2987_v59 }
0x2047   :  { %2988 = vrcp.f32 %v1745_v60 }
0x2048   :  { %2990 = vrcp.f32 %v1720_v4 }
0x2051   :  { %v2989_v26 = vpop.eup %2988 }
0x2052   :  { %v2991_v62 = vpop.eup %2990  ;;  %v1748_v0 = vmul.f32 2.0, %v2989_v26  ;;  %v1750_v18 = vmul.f32 %v2989_v26, %v3777_v27 }
0x2053   :  { %v1723_v5 = vmul.f32 2.0, %v2991_v62  ;;  %v1725_v22 = vmul.f32 %v2991_v62, %v3779_v36 }
0x2054   :  { %v2448_v6 = vadd.f32 -1.0, %v1748_v0 }
0x2055   :  { %v2446_v11 = vadd.f32 -1.0, %v1723_v5 }
0x2056   :  { %1752 = vrot.lane.b32.xlu0 %v2448_v6, %s3039_s15 }
0x2057   :  { %1727 = vrot.lane.b32.xlu1 %v2446_v11, %s3039_s15 }
0x20c8   :  { %v1753_v12 = vpop.permute.xlu0 %1752 }
0x20c9   :  { %v1755_v7 = vmul.f32 %v2989_v26, %v1753_v12  ;;  %v1728_v16 = vpop.permute.xlu1 %1727 }
0x20ca   :  { %v1730_v17 = vmul.f32 %v2991_v62, %v1728_v16 }
0x20cb   :  { %1757 = vrot.lane.b32.xlu0 %v1755_v7, %s3040_s16 }
0x20cc   :  { %1732 = vrot.lane.b32.xlu1 %v1730_v17, %s3040_s16 }
0x213d   :  { %v1758_v19 = vpop.permute.xlu0 %1757 }
0x213e   :  { %v3818_v23 = vadd.f32 %v1758_v19, %v1750_v18  ;;  %v1733_v8 = vpop.permute.xlu1 %1732 }
0x213f   :  { %v3820_v9 = vadd.f32 %v1733_v8, %v1725_v22 }
0x2140   :  { %2992 = vtanh.f32 %v3818_v23 }
0x2141   :  { %2994 = vtanh.f32 %v3820_v9 }
0x214a   :  { %v2993_v39 = vpop.eup %2992 }
0x214b   :  { %v2995_v15 = vpop.eup %2994  ;;  %1763 = vrot.lane.b32.xlu0 %v2993_v39, %s3039_s15 }
0x214c   :  { %1738 = vrot.lane.b32.xlu1 %v2995_v15, %s3039_s15 }
0x21bd   :  { %v1764_v61 = vpop.permute.xlu0 %1763 }
0x21be   :  { %v1739_v21 = vpop.permute.xlu1 %1738  ;;  %v3828_v63 = vmul.f32 %v2989_v26, %v1764_v61 }
0x21bf   :  { %v1741_v1 = vmul.f32 %v2991_v62, %v1739_v21 }
0x21c1   :  { %1771 = vrot.lane.b32.xlu0 %v1741_v1, %s3039_s15  ;;  %1768 = vrot.lane.b32.xlu1 %v1741_v1, %s3040_s16 }
0x21c5   :  { %1775 = vrot.lane.b32.xlu1 %v3828_v63, %s3041_s19 }
0x2233   :  { %v1769_v24 = vpop.permute.xlu1 %1768  ;;  %v1772_v27 = vpop.permute.xlu0 %1771 }
0x2234   :  { %v1778_v32 = vsel %vm161_vm0, %v1769_v24, %v1772_v27 }
0x2237   :  { %v1776_v36 = vpop.permute.xlu1 %1775 }
0x2238   :  { %v1779_v28 = vsel %vm163_vm1, %v1778_v32, %v1776_v36 }
0x2239   :  { %2449 = vmatmul.mubr.msk.f32.vlgmr.msra.gmra.mrb[12].mxu0 %vm53_vm2, %v1779_v28 }
0x223a   :  { %2809 = vmatpush1.bf16.msra.mxu0 %v3591_v33  ;;  %2127 = vmatprep.mubr.f32.mxu0 %v3038_v3 }
0x223b   :  { %2811 = vmatprep.subr.bf16.mxu0 %v3593_v25 }
0x223e   :  { %2813 = vmatpush1.bf16.msra.mxu0 %v3610_v31 }
0x223f   :  { %2815 = vmatprep.subr.bf16.mxu0 %v3614_v35 }
0x2242   :  { %2817 = vmatpush1.bf16.msra.mxu0 %v3632_v44 }
0x2243   :  { %2819 = vmatprep.subr.bf16.mxu0 %v3636_v45 }
0x2246   :  { %2821 = vmatpush1.bf16.msra.mxu0 %v3652_v50 }
0x2247   :  { %2823 = vmatprep.subr.bf16.mxu0 %v3656_v41 }
0x224a   :  { %2825 = vmatpush1.bf16.msra.mxu0 %v3666_v2 }
0x224b   :  { %2827 = vmatprep.subr.bf16.mxu0 %v3679_v55 }
0x224e   :  { %2829 = vmatpush1.bf16.msra.mxu0 %v3687_v58 }
0x230c   :  { %v1849_v29 = vpop.f32.mrb[12].mxu0 }
0x230d   :  { %v1850_v34 = vadd.f32 %v1849_v29, %v3720_v10  ;;  %v1851_v37 = vpop.f32.mrb[13].mxu0 }
0x230e   :  { %v1852_v40 = vadd.f32 %v1851_v37, %v3723_v13 }
0x230f   :  { %v1856_v42 = vadd.f32 %v2450_v30, %v1850_v34 }
0x2310   :  { %v2453_v43 = vmul.f32 -1.442695, %v1852_v40 }
0x2311   :  { %v2451_v46 = vmul.f32 -1.442695, %v1856_v42 }
0x2312   :  { %2996 = vpow2.f32 %v2453_v43 }
0x2313   :  { %2998 = vpow2.f32 %v2451_v46 }
0x231c   :  { %v2997_v47 = vpop.eup %2996 }
0x231d   :  { %v2999_v48 = vpop.eup %2998  ;;  %v1885_v49 = vadd.f32 1.0, %v2997_v47 }
0x231e   :  { %v1860_v14 = vadd.f32 1.0, %v2999_v48 }
0x231f   :  { %3000 = vrcp.f32 %v1885_v49 }
0x2320   :  { %3002 = vrcp.f32 %v1860_v14 }
0x2329   :  { %v3001_v53 = vpop.eup %3000 }
0x232a   :  { %v3003_v52 = vpop.eup %3002  ;;  %v1888_v51 = vmul.f32 2.0, %v3001_v53  ;;  %v1890_v62 = vmul.f32 %v3001_v53, %v3818_v23 }
0x232b   :  { %v1863_v54 = vmul.f32 2.0, %v3003_v52  ;;  %v1865_v5 = vmul.f32 %v3003_v52, %v3820_v9 }
0x232c   :  { %v2454_v56 = vadd.f32 -1.0, %v1888_v51 }
0x232d   :  { %v2452_v57 = vadd.f32 -1.0, %v1863_v54 }
0x232e   :  { %1892 = vrot.lane.b32.xlu1 %v2454_v56, %s3039_s15 }
0x232f   :  { %1867 = vrot.lane.b32.xlu0 %v2452_v57, %s3039_s15 }
0x23a0   :  { %v1893_v59 = vpop.permute.xlu1 %1892 }
0x23a1   :  { %v1895_v60 = vmul.f32 %v3001_v53, %v1893_v59  ;;  %v1868_v4 = vpop.permute.xlu0 %1867 }
0x23a2   :  { %v1870_v26 = vmul.f32 %v3003_v52, %v1868_v4  ;;  %v2462_v4 = vld [vmem:[%s3973_s1 + $0xc] sm:$0x3] }
0x23a3   :  { %1897 = vrot.lane.b32.xlu1 %v1895_v60, %s3040_s16 }
0x23a4   :  { %1872 = vrot.lane.b32.xlu0 %v1870_v26, %s3040_s16 }
0x2415   :  { %v1898_v0 = vpop.permute.xlu1 %1897 }
0x2416   :  { %v3858_v6 = vadd.f32 %v1898_v0, %v1890_v62  ;;  %v1873_v11 = vpop.permute.xlu0 %1872 }
0x2417   :  { %v3860_v12 = vadd.f32 %v1873_v11, %v1865_v5 }
0x2418   :  { %3004 = vtanh.f32 %v3858_v6 }
0x2419   :  { %3006 = vtanh.f32 %v3860_v12 }
0x2422   :  { %v3005_v7 = vpop.eup %3004 }
0x2423   :  { %v3007_v16 = vpop.eup %3006  ;;  %1903 = vrot.lane.b32.xlu1 %v3005_v7, %s3039_s15 }
0x2424   :  { %1878 = vrot.lane.b32.xlu0 %v3007_v16, %s3039_s15 }
0x2495   :  { %v1904_v19 = vpop.permute.xlu1 %1903 }
0x2496   :  { %v1879_v17 = vpop.permute.xlu0 %1878  ;;  %v3868_v22 = vmul.f32 %v3001_v53, %v1904_v19 }
0x2497   :  { %v1881_v18 = vmul.f32 %v3003_v52, %v1879_v17 }
0x2499   :  { %1911 = vrot.lane.b32.xlu1 %v1881_v18, %s3039_s15  ;;  %1908 = vrot.lane.b32.xlu0 %v1881_v18, %s3040_s16 }
0x249d   :  { %1915 = vrot.lane.b32.xlu0 %v3868_v22, %s3041_s19 }
0x250b   :  { %v1909_v23 = vpop.permute.xlu0 %1908  ;;  %v1912_v8 = vpop.permute.xlu1 %1911 }
0x250c   :  { %v1918_v9 = vsel %vm161_vm0, %v1909_v23, %v1912_v8 }
0x250f   :  { %v1916_v39 = vpop.permute.xlu0 %1915 }
0x2510   :  { %v1919_v15 = vsel %vm163_vm1, %v1918_v9, %v1916_v39 }
0x2511   :  { %2455 = vmatmul.mubr.msk.f32.vlgmr.msra.gmra.mrb[12].mxu1 %vm53_vm2, %v1919_v15 }
0x2512   :  { %2833 = vmatpush1.bf16.msra.mxu1 %v3591_v33  ;;  %2267 = vmatprep.mubr.f32.mxu1 %v3038_v3  ;;  %v2456_v33 = vld [vmem:[%s3973_s1 + $0xa] sm:$0x3] }
0x2513   :  { %2835 = vmatprep.subr.bf16.mxu1 %v3593_v25 }
0x2516   :  { %2837 = vmatpush1.bf16.msra.mxu1 %v3610_v31 }
0x2517   :  { %2839 = vmatprep.subr.bf16.mxu1 %v3614_v35 }
0x251a   :  { %2841 = vmatpush1.bf16.msra.mxu1 %v3632_v44 }
0x251b   :  { %2843 = vmatprep.subr.bf16.mxu1 %v3636_v45 }
0x251e   :  { %2845 = vmatpush1.bf16.msra.mxu1 %v3652_v50 }
0x251f   :  { %2847 = vmatprep.subr.bf16.mxu1 %v3656_v41 }
0x2522   :  { %2849 = vmatpush1.bf16.msra.mxu1 %v3666_v2 }
0x2523   :  { %2851 = vmatprep.subr.bf16.mxu1 %v3679_v55 }
0x2526   :  { %2853 = vmatpush1.bf16.msra.mxu1 %v3687_v58 }
0x25e4   :  { %v1989_v3 = vpop.f32.mrb[12].mxu1 }
0x25e5   :  { %v1990_v25 = vadd.f32 %v1989_v3, %v3720_v10  ;;  %v1991_v31 = vpop.f32.mrb[13].mxu1 }
0x25e6   :  { %v1992_v35 = vadd.f32 %v1991_v31, %v3723_v13 }
0x25e7   :  { %v1996_v44 = vadd.f32 %v2456_v33, %v1990_v25 }
0x25e8   :  { %v2459_v45 = vmul.f32 -1.442695, %v1992_v35 }
0x25e9   :  { %v2457_v50 = vmul.f32 -1.442695, %v1996_v44 }
0x25ea   :  { %3008 = vpow2.f32 %v2459_v45 }
0x25eb   :  { %3010 = vpow2.f32 %v2457_v50 }
0x25f4   :  { %v3009_v41 = vpop.eup %3008 }
0x25f5   :  { %v3011_v2 = vpop.eup %3010  ;;  %v2025_v55 = vadd.f32 1.0, %v3009_v41 }
0x25f6   :  { %v2000_v21 = vadd.f32 1.0, %v3011_v2 }
0x25f7   :  { %3012 = vrcp.f32 %v2025_v55 }
0x25f8   :  { %3014 = vrcp.f32 %v2000_v21 }
0x2601   :  { %v3013_v58 = vpop.eup %3012 }
0x2602   :  { %v3015_v1 = vpop.eup %3014  ;;  %v2028_v61 = vmul.f32 2.0, %v3013_v58  ;;  %v2030_v34 = vmul.f32 %v3013_v58, %v3858_v6 }
0x2603   :  { %v2003_v24 = vmul.f32 2.0, %v3015_v1  ;;  %v2005_v40 = vmul.f32 %v3015_v1, %v3860_v12 }
0x2604   :  { %v2460_v27 = vadd.f32 -1.0, %v2028_v61 }
0x2605   :  { %v2458_v32 = vadd.f32 -1.0, %v2003_v24 }
0x2606   :  { %2032 = vrot.lane.b32.xlu0 %v2460_v27, %s3039_s15 }
0x2607   :  { %2007 = vrot.lane.b32.xlu1 %v2458_v32, %s3039_s15 }
0x2678   :  { %v2033_v36 = vpop.permute.xlu0 %2032 }
0x2679   :  { %v2035_v28 = vmul.f32 %v3013_v58, %v2033_v36  ;;  %v2008_v29 = vpop.permute.xlu1 %2007 }
0x267a   :  { %v2010_v30 = vmul.f32 %v3015_v1, %v2008_v29 }
0x267b   :  { %2037 = vrot.lane.b32.xlu0 %v2035_v28, %s3040_s16 }
0x267c   :  { %2012 = vrot.lane.b32.xlu1 %v2010_v30, %s3040_s16 }
0x26ed   :  { %v2038_v37 = vpop.permute.xlu0 %2037 }
0x26ee   :  { %v2040_v42 = vadd.f32 %v2038_v37, %v2030_v34  ;;  %v2013_v43 = vpop.permute.xlu1 %2012 }
0x26ef   :  { %v2015_v46 = vadd.f32 %v2013_v43, %v2005_v40 }
0x26f0   :  { %3016 = vtanh.f32 %v2040_v42 }
0x26f1   :  { %3018 = vtanh.f32 %v2015_v46 }
0x26fa   :  { %v3017_v47 = vpop.eup %3016 }
0x26fb   :  { %v3019_v48 = vpop.eup %3018  ;;  %2043 = vrot.lane.b32.xlu0 %v3017_v47, %s3039_s15 }
0x26fc   :  { %2018 = vrot.lane.b32.xlu1 %v3019_v48, %s3039_s15 }
0x276d   :  { %v2044_v53 = vpop.permute.xlu0 %2043 }
0x276e   :  { %v2019_v49 = vpop.permute.xlu1 %2018  ;;  %v3902_v52 = vmul.f32 %v3013_v58, %v2044_v53 }
0x276f   :  { %v2021_v14 = vmul.f32 %v3015_v1, %v2019_v49 }
0x2771   :  { %2051 = vrot.lane.b32.xlu0 %v2021_v14, %s3039_s15  ;;  %2048 = vrot.lane.b32.xlu1 %v2021_v14, %s3040_s16 }
0x2775   :  { %2055 = vrot.lane.b32.xlu1 %v3902_v52, %s3041_s19 }
0x27e3   :  { %v2049_v51 = vpop.permute.xlu1 %2048  ;;  %v2052_v54 = vpop.permute.xlu0 %2051 }
0x27e4   :  { %v2058_v56 = vsel %vm161_vm0, %v2049_v51, %v2052_v54 }
0x27e7   :  { %v2056_v57 = vpop.permute.xlu1 %2055 }
0x27e8   :  { %v2059_v59 = vsel %vm163_vm1, %v2058_v56, %v2056_v57 }
0x27e9   :  { %2461 = vmatmul.mubr.msk.f32.vlgmr.msra.gmra.mrb[14].mxu0 %vm53_vm2, %v2059_v59 }
0x28bc   :  { %v2129_v60 = vpop.f32.mrb[14].mxu0 }
0x28bd   :  { %v2130_v26 = vadd.f32 %v2129_v60, %v3720_v10  ;;  %v2131_v62 = vpop.f32.mrb[15].mxu0 }
0x28be   :  { %v2132_v0 = vadd.f32 %v2131_v62, %v3723_v13 }
0x28bf   :  { %v2136_v5 = vadd.f32 %v2462_v4, %v2130_v26 }
0x28c0   :  { %v2465_v6 = vmul.f32 -1.442695, %v2132_v0 }
0x28c1   :  { %v2463_v11 = vmul.f32 -1.442695, %v2136_v5 }
0x28c2   :  { %3020 = vpow2.f32 %v2465_v6 }
0x28c3   :  { %3022 = vpow2.f32 %v2463_v11 }
0x28cc   :  { %v3021_v12 = vpop.eup %3020 }
0x28cd   :  { %v3023_v7 = vpop.eup %3022  ;;  %v2165_v16 = vadd.f32 1.0, %v3021_v12 }
0x28ce   :  { %v2140_v17 = vadd.f32 1.0, %v3023_v7 }
0x28cf   :  { %3024 = vrcp.f32 %v2165_v16 }
0x28d0   :  { %3026 = vrcp.f32 %v2140_v17 }
0x28d9   :  { %v3025_v18 = vpop.eup %3024 }
0x28da   :  { %v3027_v19 = vpop.eup %3026  ;;  %v2168_v23 = vmul.f32 2.0, %v3025_v18  ;;  %v2170_v25 = vmul.f32 %v3025_v18, %v2040_v42 }
0x28db   :  { %v2143_v8 = vmul.f32 2.0, %v3027_v19  ;;  %v2145_v35 = vmul.f32 %v3027_v19, %v2015_v46 }
0x28dc   :  { %v2466_v9 = vadd.f32 -1.0, %v2168_v23 }
0x28dd   :  { %v2464_v10 = vadd.f32 -1.0, %v2143_v8 }
0x28de   :  { %2172 = vrot.lane.b32.xlu1 %v2466_v9, %s3039_s15 }
0x28df   :  { %2147 = vrot.lane.b32.xlu0 %v2464_v10, %s3039_s15 }
0x2950   :  { %v2173_v39 = vpop.permute.xlu1 %2172 }
0x2951   :  { %v2175_v15 = vmul.f32 %v3025_v18, %v2173_v39  ;;  %v2148_v3 = vpop.permute.xlu0 %2147 }
0x2952   :  { %v2150_v33 = vmul.f32 %v3027_v19, %v2148_v3 }
0x2953   :  { %2177 = vrot.lane.b32.xlu1 %v2175_v15, %s3040_s16 }
0x2954   :  { %2152 = vrot.lane.b32.xlu0 %v2150_v33, %s3040_s16 }
0x29c5   :  { %v2178_v31 = vpop.permute.xlu1 %2177 }
0x29c6   :  { %v2180_v44 = vadd.f32 %v2178_v31, %v2170_v25  ;;  %v2153_v45 = vpop.permute.xlu0 %2152 }
0x29c7   :  { %v2155_v50 = vadd.f32 %v2153_v45, %v2145_v35 }
0x29c8   :  { %3028 = vtanh.f32 %v2180_v44 }
0x29c9   :  { %3030 = vtanh.f32 %v2155_v50 }
0x29d2   :  { %v3029_v41 = vpop.eup %3028 }
0x29d3   :  { %v3031_v2 = vpop.eup %3030  ;;  %2183 = vrot.lane.b32.xlu1 %v3029_v41, %s3039_s15 }
0x29d4   :  { %2158 = vrot.lane.b32.xlu0 %v3031_v2, %s3039_s15 }
0x2a45   :  { %v2184_v58 = vpop.permute.xlu1 %2183 }
0x2a46   :  { %v2159_v55 = vpop.permute.xlu0 %2158  ;;  %v2186_v1 = vmul.f32 %v3025_v18, %v2184_v58 }
0x2a47   :  { %v2161_v21 = vmul.f32 %v3027_v19, %v2159_v55 }
0x2a49   :  { %2191 = vrot.lane.b32.xlu1 %v2161_v21, %s3039_s15  ;;  %2188 = vrot.lane.b32.xlu0 %v2161_v21, %s3040_s16 }
0x2a4d   :  { %2195 = vrot.lane.b32.xlu0 %v2186_v1, %s3041_s19 }
0x2abb   :  { %v2189_v61 = vpop.permute.xlu0 %2188  ;;  %v2192_v24 = vpop.permute.xlu1 %2191 }
0x2abc   :  { %v2198_v27 = vsel %vm161_vm0, %v2189_v61, %v2192_v24 }
0x2abf   :  { %v2196_v32 = vpop.permute.xlu0 %2195 }
0x2ac0   :  { %v2199_v36 = vsel %vm163_vm1, %v2198_v27, %v2196_v32 }
0x2ac1   :  { %2467 = vmatmul.mubr.msk.f32.vlgmr.msra.gmra.mrb[14].mxu1 %vm53_vm2, %v2199_v36 }
0x2b94   :  { %v2269_v28 = vpop.f32.mrb[14].mxu1 }
0x2b95   :  { %v2270_v29 = vpop.f32.mrb[15].mxu1 }
0x2b96   :  { %v2271_v30 = vadd.f32 %v2270_v29, %v3723_v13 }
0x2b98   :  { %v2468_v34 = vmul.f32 -1.442695, %v2271_v30 }
0x2b9a   :  { %3032 = vpow2.f32 %v2468_v34 }
0x2ba4   :  { %v3033_v37 = vpop.eup %3032 }
0x2ba5   :  { %v2276_v40 = vadd.f32 1.0, %v3033_v37 }
0x2ba7   :  { %3034 = vrcp.f32 %v2276_v40 }
0x2bb1   :  { %v3035_v42 = vpop.eup %3034 }
0x2bb2   :  { %v2279_v43 = vmul.f32 2.0, %v3035_v42  ;;  %v2281_v13 = vmul.f32 %v3035_v42, %v2180_v44 }
0x2bb4   :  { %v2469_v46 = vadd.f32 -1.0, %v2279_v43 }
0x2bb6   :  { %2283 = vrot.lane.b32.xlu1 %v2469_v46, %s3039_s15 }
0x2c28   :  { %v2284_v47 = vpop.permute.xlu1 %2283 }
0x2c29   :  { %v2286_v48 = vmul.f32 %v3035_v42, %v2284_v47 }
0x2c2b   :  { %2288 = vrot.lane.b32.xlu0 %v2286_v48, %s3040_s16 }
0x2c2f   :  { %2299 = vrot.lane.b32.xlu0 %v3746_v20, %s3040_s16 }
0x2c33   :  { %2303 = vrot.lane.b32.xlu0 %v3828_v63, %s3040_s16 }
0x2c37   :  { %2307 = vrot.lane.b32.xlu0 %v3902_v52, %s3040_s16 }
0x2c9d   :  { %v2289_v49 = vpop.permute.xlu0 %2288 }
0x2c9e   :  { %v2291_v14 = vadd.f32 %v2289_v49, %v2281_v13 }
0x2ca0   :  { %3036 = vtanh.f32 %v2291_v14 }
0x2ca1   :  { %v2300_v53 = vpop.permute.xlu0 %2299 }
0x2ca2   :  { %2321 = vst.msk [vmem:[%s3974_s4] sm:$0x3] %vm2320_vm3, %v2300_v53 }
0x2ca5   :  { %v2304_v51 = vpop.permute.xlu0 %2303 }
0x2ca6   :  { %2323 = vst.msk [vmem:[%s3974_s4 + $0x4] sm:$0x3] %vm2320_vm3, %v2304_v51 }
0x2ca9   :  { %v2308_v20 = vpop.permute.xlu0 %2307 }
0x2caa   :  { %v3037_v63 = vpop.eup %3036  ;;  %2325 = vst.msk [vmem:[%s3974_s4 + $0x8] sm:$0x3] %vm2320_vm3, %v2308_v20 }
0x2cab   :  { %2294 = vrot.lane.b32.xlu1 %v3037_v63, %s3039_s15 }
0x2caf   :  { %2301 = vrot.lane.b32.xlu1 %v3787_v38, %s3040_s16 }
0x2cb3   :  { %2305 = vrot.lane.b32.xlu1 %v3868_v22, %s3040_s16 }
0x2cb7   :  { %2309 = vrot.lane.b32.xlu1 %v2186_v1, %s3040_s16 }
0x2d1d   :  { %v2295_v52 = vpop.permute.xlu1 %2294 }
0x2d1e   :  { %v2297_v54 = vmul.f32 %v3035_v42, %v2295_v52 }
0x2d20   :  { %2311 = vrot.lane.b32.xlu0 %v2297_v54, %s3040_s16 }
0x2d21   :  { %v2302_v56 = vpop.permute.xlu1 %2301 }
0x2d22   :  { %2322 = vst.msk [vmem:[%s3974_s4 + $0x2] sm:$0x3] %vm2320_vm3, %v2302_v56 }
0x2d25   :  { %v2306_v57 = vpop.permute.xlu1 %2305 }
0x2d26   :  { %2324 = vst.msk [vmem:[%s3974_s4 + $0x6] sm:$0x3] %vm2320_vm3, %v2306_v57 }
0x2d29   :  { %v2310_v38 = vpop.permute.xlu1 %2309 }
0x2d2a   :  { %2326 = vst.msk [vmem:[%s3974_s4 + $0xa] sm:$0x3] %vm2320_vm3, %v2310_v38 }
0x2d92   :  { %v2312_v22 = vpop.permute.xlu0 %2311 }
0x2d93   :  { %2327 = vst.msk [vmem:[%s3974_s4 + $0xc] sm:$0x3] %vm2320_vm3, %v2312_v22 }

</bundles_post_ra>
